<compile_context>
chip_gen: v7x
topology: tpu7x:2x2x1
jax: 0.10.0
libtpu: 0.0.40
codegen_flags: <defaults>
</compile_context>

<pallas_src>
import math

import jax
import jax.numpy as jnp
from jax.experimental import pallas as pl
from jax.experimental.pallas import tpu as pltpu

# ----------------------------- model config --------------------------------
B, S, D = 2, 8, 128          # batch, seq-len, hidden ("bert_dim")
H = 4                        # attention heads
HD = D // H                  # head dim
FFN = 4 * D                  # feed-forward dim
VOCAB = 512                  # synthetic len(tokenizer)
TYPE_VOCAB = 2
MAX_POS = 64
N_LAYERS = 2                 # small synthetic encoder depth
LN_EPS = 1e-12
EMOTIONS = ("love", "joy", "fright", "anger", "fear", "sorrow")
NUM_EMOTIONS = len(EMOTIONS)
HEAD_PAD = 128               # lane-dense head output (6 real cols + zero pad)

_F32 = jnp.float32
_BF16 = jnp.bfloat16


def _layer_norm(x, gamma, beta):
    mu = jnp.mean(x, axis=-1, keepdims=True)
    var = jnp.mean((x - mu) ** 2, axis=-1, keepdims=True)
    return (x - mu) * jax.lax.rsqrt(var + LN_EPS) * gamma + beta


# --------------------------- fused Pallas kernel -----------------------------
def fused_model_kernel(ids_ref, tt_ref, mask_ref,
                       wemb_ref, pemb_ref, temb_ref, elng_ref, elnb_ref,
                       wqkv_ref, bqkv_ref, wo_ref, bo_ref,
                       ln1g_ref, ln1b_ref, w1_ref, b1_ref,
                       w2_ref, b2_ref, ln2g_ref, ln2b_ref,
                       wp_ref, bp_ref, wh_ref, bh_ref,
                       out_ref):
    """Single grid step: embeddings -> statically-unrolled encoder layers ->
    pooler -> 6 fused emotion heads (lane-dense padded output)."""
    # ---- embeddings: one-hot gather on the MXU (no dynamic sublane loads) ---
    ids = ids_ref[...]                                            # (B*S, 1) i32
    vocab_iota = jax.lax.broadcasted_iota(jnp.int32, (B * S, VOCAB), 1)
    onehot = (vocab_iota == ids).astype(_F32)                     # (B*S, VOCAB)
    word_e = jnp.dot(onehot, wemb_ref[...],
                     preferred_element_type=_F32)                 # (B*S, D) f32

    # Token-type gather: exact 0/1 lerp between the two type rows.
    tt = tt_ref[...].astype(_F32)                                 # (B*S, 1)
    t0 = jnp.broadcast_to(temb_ref[0:1, :], (B * S, D))
    t1 = jnp.broadcast_to(temb_ref[1:2, :], (B * S, D))
    type_e = (1.0 - tt) * t0 + tt * t1

    pos_e = jnp.tile(pemb_ref[0:S, :], (B, 1))                    # (B*S, D)

    x = _layer_norm(word_e + pos_e + type_e, elng_ref[...], elnb_ref[...])

    # Additive key mask, built once (hoisted out of layers / heads).
    # NOTE: rows with ALL keys masked degrade to uniform attention (same as
    # stock additive-mask BERT); not triggered by these inputs.
    neg_b = jnp.broadcast_to((1.0 - mask_ref[...]) * -1e9, (B, S, S))

    scale = 1.0 / math.sqrt(HD)

    # ---- encoder layers, statically unrolled (weights all VMEM-resident) ----
    for l in range(N_LAYERS):
        x_bf = x.astype(_BF16)
        qkv = jnp.dot(x_bf, wqkv_ref[l],
                      preferred_element_type=_F32) + bqkv_ref[l]  # (B*S, 3D)
        # bf16 casts hoisted out of the head loop (v5e has no bf16 VPU path).
        q = (qkv[:, 0 * D:1 * D] * scale).astype(_BF16)
        k = qkv[:, 1 * D:2 * D].astype(_BF16)
        v = qkv[:, 2 * D:3 * D].astype(_BF16)

        ctx_heads = []
        for h in range(H):
            lo, hi = h * HD, (h + 1) * HD
            qh = q[:, lo:hi].reshape(B, S, HD)
            kh = k[:, lo:hi].reshape(B, S, HD)
            vh = v[:, lo:hi].reshape(B, S, HD)
            s = jnp.einsum("bqd,bkd->bqk", qh, kh,
                           preferred_element_type=_F32) + neg_b
            s = s - jnp.max(s, axis=-1, keepdims=True)            # f32 stats
            p = jnp.exp(s)
            p = p * pl.reciprocal(jnp.sum(p, axis=-1, keepdims=True),
                                  approx=True)
            ctx = jnp.einsum("bqk,bkd->bqd", p.astype(_BF16), vh,
                             preferred_element_type=_F32)         # (B, S, HD)
            ctx_heads.append(ctx.reshape(B * S, HD))
        # Merge the four per-head K=32 W_o folds into ONE K=128 matmul.
        ctx_all = jnp.concatenate(ctx_heads, axis=1).astype(_BF16)  # (B*S, D)
        attn = jnp.dot(ctx_all, wo_ref[l],
                       preferred_element_type=_F32) + bo_ref[l]

        h1 = _layer_norm(x + attn, ln1g_ref[l], ln1b_ref[l])      # f32

        ff = jnp.dot(h1.astype(_BF16), w1_ref[l],
                     preferred_element_type=_F32) + b1_ref[l]
        # tanh GELU -> EUP slot (small deviation from BERT's exact erf GELU).
        ff = jax.nn.gelu(ff, approximate=True)
        ff = jnp.dot(ff.astype(_BF16), w2_ref[l],
                     preferred_element_type=_F32) + b2_ref[l]
        x = _layer_norm(h1 + ff, ln2g_ref[l], ln2b_ref[l])

    # ---- pooler (tanh over CLS token) + 6 emotion heads ----------------------
    cls = x.reshape(B, S, D)[:, 0:1, :].reshape(B, D)             # (B, D)
    pooled = jnp.tanh(jnp.dot(cls.astype(_BF16), wp_ref[...],
                              preferred_element_type=_F32) + bp_ref[...])
    out_ref[...] = jnp.dot(pooled.astype(_BF16), wh_ref[...],
                           preferred_element_type=_F32) + bh_ref[...]


# --------------------------- pallas_call wrapper ------------------------------
def fused_model(ids2, tt2, mask3, p):
    L = N_LAYERS
    in_specs = [
        pl.BlockSpec((B * S, 1), lambda i: (0, 0)),               # input_ids
        pl.BlockSpec((B * S, 1), lambda i: (0, 0)),               # token_type_ids
        pl.BlockSpec((B, 1, S), lambda i: (0, 0, 0)),             # attention mask
        pl.BlockSpec((VOCAB, D), lambda i: (0, 0)),               # word_emb
        pl.BlockSpec((MAX_POS, D), lambda i: (0, 0)),             # pos_emb
        pl.BlockSpec((TYPE_VOCAB, D), lambda i: (0, 0)),          # type_emb
        pl.BlockSpec((1, D), lambda i: (0, 0)),                   # emb_ln_g
        pl.BlockSpec((1, D), lambda i: (0, 0)),                   # emb_ln_b
        pl.BlockSpec((L, D, 3 * D), lambda i: (0, 0, 0)),         # wqkv (stacked)
        pl.BlockSpec((L, 1, 3 * D), lambda i: (0, 0, 0)),         # bqkv
        pl.BlockSpec((L, D, D), lambda i: (0, 0, 0)),             # wo
        pl.BlockSpec((L, 1, D), lambda i: (0, 0, 0)),             # bo
        pl.BlockSpec((L, 1, D), lambda i: (0, 0, 0)),             # ln1_g
        pl.BlockSpec((L, 1, D), lambda i: (0, 0, 0)),             # ln1_b
        pl.BlockSpec((L, D, FFN), lambda i: (0, 0, 0)),           # w1
        pl.BlockSpec((L, 1, FFN), lambda i: (0, 0, 0)),           # b1
        pl.BlockSpec((L, FFN, D), lambda i: (0, 0, 0)),           # w2
        pl.BlockSpec((L, 1, D), lambda i: (0, 0, 0)),             # b2
        pl.BlockSpec((L, 1, D), lambda i: (0, 0, 0)),             # ln2_g
        pl.BlockSpec((L, 1, D), lambda i: (0, 0, 0)),             # ln2_b
        pl.BlockSpec((D, D), lambda i: (0, 0)),                   # pooler_w
        pl.BlockSpec((1, D), lambda i: (0, 0)),                   # pooler_b
        pl.BlockSpec((D, HEAD_PAD), lambda i: (0, 0)),            # heads_w (padded)
        pl.BlockSpec((1, HEAD_PAD), lambda i: (0, 0)),            # heads_b (padded)
    ]
    grid_spec = pltpu.PrefetchScalarGridSpec(
        num_scalar_prefetch=0,
        grid=(1,),                       # single step: everything resident
        in_specs=in_specs,
        out_specs=pl.BlockSpec((B, HEAD_PAD), lambda i: (0, 0)),
    )

    # Advisory cost estimate so XLA can schedule around the custom call.
    flops = (2 * B * S * VOCAB * D                               # one-hot gather
             + N_LAYERS * (2 * B * S * D * 3 * D                 # QKV
                           + 4 * B * H * S * S * HD              # scores + ctx
                           + 2 * B * S * D * D                   # output proj
                           + 4 * B * S * D * FFN)                # FFN (w1 + w2)
             + 2 * B * D * D + 2 * B * D * HEAD_PAD)             # pooler + heads
    transcendentals = N_LAYERS * (B * H * S * S + B * S * FFN) + B * D
    bytes_accessed = (
        2 * B * S * 4 + B * S * 4 + B * HEAD_PAD * 4
        + 4 * (VOCAB * D + MAX_POS * D + TYPE_VOCAB * D + 2 * D)
        + N_LAYERS * 2 * (D * 3 * D + D * D + 2 * D * FFN)       # bf16 weights
        + N_LAYERS * 4 * (3 * D + D + FFN + D + 4 * D)           # f32 bias / LN
        + 2 * (D * D + D * HEAD_PAD) + 4 * (D + HEAD_PAD))

    return pl.pallas_call(
        fused_model_kernel,
        out_shape=jax.ShapeDtypeStruct((B, HEAD_PAD), jnp.float32),
        grid_spec=grid_spec,
        compiler_params=pltpu.CompilerParams(
            dimension_semantics=("arbitrary",)),
        cost_estimate=pl.CostEstimate(flops=flops,
                                      transcendentals=transcendentals,
                                      bytes_accessed=bytes_accessed),
    )(ids2, tt2, mask3,
      p["word_emb"], p["pos_emb"], p["type_emb"], p["emb_ln_g"], p["emb_ln_b"],
      p["wqkv"], p["bqkv"], p["wo"], p["bo"], p["ln1_g"], p["ln1_b"],
      p["w1"], p["b1"], p["w2"], p["b2"], p["ln2_g"], p["ln2_b"],
      p["pooler_w"], p["pooler_b"], p["heads_w"], p["heads_b"])


# ------------------------------- parameters ----------------------------------
def _xavier(key, shape, fan_in, fan_out):
    bound = math.sqrt(6.0 / (fan_in + fan_out))
    return jax.random.uniform(key, shape, jnp.float32, -bound, bound)


def init_params(key):
    keys = iter(jax.random.split(key, 64))
    p = {
        "word_emb": jax.random.normal(next(keys), (VOCAB, D), _F32) * 0.02,
        "pos_emb": jax.random.normal(next(keys), (MAX_POS, D), _F32) * 0.02,
        "type_emb": jax.random.normal(next(keys), (TYPE_VOCAB, D), _F32) * 0.02,
        "emb_ln_g": jnp.ones((1, D), _F32),
        "emb_ln_b": jnp.zeros((1, D), _F32),
    }
    # Stacked per-layer weights (leading dim = layer); all layers are loaded
    # once and stay VMEM-resident for the single grid step.
    wqkv, wo, w1, w2 = [], [], [], []
    for _ in range(N_LAYERS):
        wqkv.append(_xavier(next(keys), (D, 3 * D), D, D))
        wo.append(_xavier(next(keys), (D, D), D, D))
        w1.append(_xavier(next(keys), (D, FFN), D, FFN))
        w2.append(_xavier(next(keys), (FFN, D), FFN, D))
    p["wqkv"] = jnp.stack(wqkv).astype(_BF16)          # (L, D, 3D)
    p["wo"] = jnp.stack(wo).astype(_BF16)              # (L, D, D)
    p["w1"] = jnp.stack(w1).astype(_BF16)              # (L, D, FFN)
    p["w2"] = jnp.stack(w2).astype(_BF16)              # (L, FFN, D)
    p["bqkv"] = jnp.zeros((N_LAYERS, 1, 3 * D), _F32)
    p["bo"] = jnp.zeros((N_LAYERS, 1, D), _F32)
    p["b1"] = jnp.zeros((N_LAYERS, 1, FFN), _F32)
    p["b2"] = jnp.zeros((N_LAYERS, 1, D), _F32)
    p["ln1_g"] = jnp.ones((N_LAYERS, 1, D), _F32)
    p["ln1_b"] = jnp.zeros((N_LAYERS, 1, D), _F32)
    p["ln2_g"] = jnp.ones((N_LAYERS, 1, D), _F32)
    p["ln2_b"] = jnp.zeros((N_LAYERS, 1, D), _F32)

    p["pooler_w"] = _xavier(next(keys), (D, D), D, D).astype(_BF16)
    p["pooler_b"] = jnp.zeros((1, D), _F32)

    # Emotion heads: nn.Linear(bert_dim, 1) x 6, xavier_uniform weight (per
    # init_params in the module), torch-default uniform bias.  Fused into one
    # (D, 6) matmul and padded to 128 lanes for a lane-dense store.
    head_ws, head_bs = [], []
    bb = 1.0 / math.sqrt(D)
    for _ in range(NUM_EMOTIONS):
        head_ws.append(_xavier(next(keys), (D, 1), D, 1))
        head_bs.append(jax.random.uniform(next(keys), (1,), _F32, -bb, bb))
    hw = jnp.concatenate(head_ws, axis=1)                        # (D, 6)
    hb = jnp.concatenate(head_bs)                                # (6,)
    p["heads_w"] = jnp.pad(hw, ((0, 0), (0, HEAD_PAD - NUM_EMOTIONS))
                           ).astype(_BF16)                       # (D, 128)
    p["heads_b"] = jnp.pad(hb, (0, HEAD_PAD - NUM_EMOTIONS))[None, :]  # (1, 128)
    return p


# ------------------------------ forward pass ---------------------------------
def base_model_forward(params, input_ids, token_type_ids, attention_mask):
    # Only reshapes / dtype casts live outside the kernel: the embedding
    # gather, embedding LayerNorm, mask construction, encoder, pooler and the
    # 6 emotion heads are all fused into one pallas_call.
    ids2 = input_ids.reshape(B * S, 1).astype(jnp.int32)
    tt2 = token_type_ids.reshape(B * S, 1).astype(jnp.int32)
    mask3 = attention_mask.astype(_F32).reshape(B, 1, S)

    logits_pad = fused_model(ids2, tt2, mask3, params)           # (B, 128)
    logits = logits_pad[:, :NUM_EMOTIONS]                        # (B, 6)
    return {name: logits[:, i:i + 1] for i, name in enumerate(EMOTIONS)}


# ---------------------------------- main --------------------------------------
if __name__ == "__main__":
    key = jax.random.PRNGKey(0)
    k_param, k_ids = jax.random.split(key)

    params = init_params(k_param)
    input_ids = jax.random.randint(k_ids, (B, S), 0, VOCAB, dtype=jnp.int32)
    token_type_ids = jnp.zeros((B, S), jnp.int32)
    attention_mask = jnp.ones((B, S), jnp.int32).at[1, S - 2:].set(0)  # pad tail

    out = jax.jit(base_model_forward)(params, input_ids, token_type_ids,
                                      attention_mask)
    jax.block_until_ready(out)

    assert set(out.keys()) == set(EMOTIONS)
    for name in EMOTIONS:
        assert out[name].shape == (B, 1), (name, out[name].shape)
        assert out[name].dtype == jnp.float32
        assert bool(jnp.all(jnp.isfinite(out[name])))

    print("KERNEL_OK")
</pallas_src>

<mosaic_0001>
module attributes {stable_mosaic.version = 11 : i64} {
  func.func @fused_model_kernel(%arg0: i32, %arg1: memref<16x1xi32, #tpu.memory_space<vmem>>, %arg2: memref<16x1xi32, #tpu.memory_space<vmem>>, %arg3: memref<2x1x8xf32, #tpu.memory_space<vmem>>, %arg4: memref<512x128xf32, #tpu.memory_space<vmem>>, %arg5: memref<64x128xf32, #tpu.memory_space<vmem>>, %arg6: memref<2x128xf32, #tpu.memory_space<vmem>>, %arg7: memref<1x128xf32, #tpu.memory_space<vmem>>, %arg8: memref<1x128xf32, #tpu.memory_space<vmem>>, %arg9: memref<2x128x384xbf16, #tpu.memory_space<vmem>>, %arg10: memref<2x1x384xf32, #tpu.memory_space<vmem>>, %arg11: memref<2x128x128xbf16, #tpu.memory_space<vmem>>, %arg12: memref<2x1x128xf32, #tpu.memory_space<vmem>>, %arg13: memref<2x1x128xf32, #tpu.memory_space<vmem>>, %arg14: memref<2x1x128xf32, #tpu.memory_space<vmem>>, %arg15: memref<2x128x512xbf16, #tpu.memory_space<vmem>>, %arg16: memref<2x1x512xf32, #tpu.memory_space<vmem>>, %arg17: memref<2x512x128xbf16, #tpu.memory_space<vmem>>, %arg18: memref<2x1x128xf32, #tpu.memory_space<vmem>>, %arg19: memref<2x1x128xf32, #tpu.memory_space<vmem>>, %arg20: memref<2x1x128xf32, #tpu.memory_space<vmem>>, %arg21: memref<128x128xbf16, #tpu.memory_space<vmem>>, %arg22: memref<1x128xf32, #tpu.memory_space<vmem>>, %arg23: memref<128x128xbf16, #tpu.memory_space<vmem>>, %arg24: memref<1x128xf32, #tpu.memory_space<vmem>>, %arg25: memref<2x128xf32, #tpu.memory_space<vmem>>) attributes {dimension_semantics = [#tpu.dimension_semantics<arbitrary>], iteration_bounds = array<i64: 1>, scalar_prefetch = 0 : i64, scratch_operands = 0 : i64, tpu.core_type = #tpu.core_type<tc>, window_params = [{pipeline_mode = #tpu.pipeline_mode<synchronous>, transform_indices = @transform_0, window_bounds = array<i64: 16, 1>}, {pipeline_mode = #tpu.pipeline_mode<synchronous>, transform_indices = @transform_1, window_bounds = array<i64: 16, 1>}, {pipeline_mode = #tpu.pipeline_mode<synchronous>, transform_indices = @transform_2, window_bounds = array<i64: 2, 1, 8>}, {pipeline_mode = #tpu.pipeline_mode<synchronous>, transform_indices = @transform_3, window_bounds = array<i64: 512, 128>}, {pipeline_mode = #tpu.pipeline_mode<synchronous>, transform_indices = @transform_4, window_bounds = array<i64: 64, 128>}, {pipeline_mode = #tpu.pipeline_mode<synchronous>, transform_indices = @transform_5, window_bounds = array<i64: 2, 128>}, {pipeline_mode = #tpu.pipeline_mode<synchronous>, transform_indices = @transform_6, window_bounds = array<i64: 1, 128>}, {pipeline_mode = #tpu.pipeline_mode<synchronous>, transform_indices = @transform_7, window_bounds = array<i64: 1, 128>}, {pipeline_mode = #tpu.pipeline_mode<synchronous>, transform_indices = @transform_8, window_bounds = array<i64: 2, 128, 384>}, {pipeline_mode = #tpu.pipeline_mode<synchronous>, transform_indices = @transform_9, window_bounds = array<i64: 2, 1, 384>}, {pipeline_mode = #tpu.pipeline_mode<synchronous>, transform_indices = @transform_10, window_bounds = array<i64: 2, 128, 128>}, {pipeline_mode = #tpu.pipeline_mode<synchronous>, transform_indices = @transform_11, window_bounds = array<i64: 2, 1, 128>}, {pipeline_mode = #tpu.pipeline_mode<synchronous>, transform_indices = @transform_12, window_bounds = array<i64: 2, 1, 128>}, {pipeline_mode = #tpu.pipeline_mode<synchronous>, transform_indices = @transform_13, window_bounds = array<i64: 2, 1, 128>}, {pipeline_mode = #tpu.pipeline_mode<synchronous>, transform_indices = @transform_14, window_bounds = array<i64: 2, 128, 512>}, {pipeline_mode = #tpu.pipeline_mode<synchronous>, transform_indices = @transform_15, window_bounds = array<i64: 2, 1, 512>}, {pipeline_mode = #tpu.pipeline_mode<synchronous>, transform_indices = @transform_16, window_bounds = array<i64: 2, 512, 128>}, {pipeline_mode = #tpu.pipeline_mode<synchronous>, transform_indices = @transform_17, window_bounds = array<i64: 2, 1, 128>}, {pipeline_mode = #tpu.pipeline_mode<synchronous>, transform_indices = @transform_18, window_bounds = array<i64: 2, 1, 128>}, {pipeline_mode = #tpu.pipeline_mode<synchronous>, transform_indices = @transform_19, window_bounds = array<i64: 2, 1, 128>}, {pipeline_mode = #tpu.pipeline_mode<synchronous>, transform_indices = @transform_20, window_bounds = array<i64: 128, 128>}, {pipeline_mode = #tpu.pipeline_mode<synchronous>, transform_indices = @transform_21, window_bounds = array<i64: 1, 128>}, {pipeline_mode = #tpu.pipeline_mode<synchronous>, transform_indices = @transform_22, window_bounds = array<i64: 128, 128>}, {pipeline_mode = #tpu.pipeline_mode<synchronous>, transform_indices = @transform_23, window_bounds = array<i64: 1, 128>}, {pipeline_mode = #tpu.pipeline_mode<synchronous>, transform_indices = @transform_24, window_bounds = array<i64: 2, 128>}]} {
    %c0 = arith.constant 0 : index
    %c0_0 = arith.constant 0 : index
    %0 = vector.load %arg1[%c0, %c0_0] : memref<16x1xi32, #tpu.memory_space<vmem>>, vector<16x1xi32>
    %1 = tpu.iota {dimensions = array<i32: 1>} : vector<16x512xi32>
    %2 = vector.broadcast %0 : vector<16x1xi32> to vector<16x512xi32>
    %3 = arith.cmpi eq, %1, %2 : vector<16x512xi32>
    %4 = arith.extui %3 : vector<16x512xi1> to vector<16x512xi32>
    %5 = arith.sitofp %4 : vector<16x512xi32> to vector<16x512xf32>
    %c0_1 = arith.constant 0 : index
    %c0_2 = arith.constant 0 : index
    %6 = vector.load %arg4[%c0_1, %c0_2] : memref<512x128xf32, #tpu.memory_space<vmem>>, vector<512x128xf32>
    %cst = arith.constant dense<0.000000e+00> : vector<16x128xf32>
    %7 = tpu.matmul %5, %6, %cst {dimension_numbers = #tpu.dot_dimension_numbers<[1], [0], [0], [1], [0, 0, 1, 1], [], []>} : vector<16x512xf32>, vector<512x128xf32>, vector<16x128xf32> -> vector<16x128xf32>
    %c0_3 = arith.constant 0 : index
    %c0_4 = arith.constant 0 : index
    %8 = vector.load %arg2[%c0_3, %c0_4] : memref<16x1xi32, #tpu.memory_space<vmem>>, vector<16x1xi32>
    %9 = arith.sitofp %8 : vector<16x1xi32> to vector<16x1xf32>
    %c0_5 = arith.constant 0 : index
    %c0_6 = arith.constant 0 : index
    %10 = vector.load %arg6[%c0_5, %c0_6] : memref<2x128xf32, #tpu.memory_space<vmem>>, vector<1x128xf32>
    %11 = vector.shape_cast %10 : vector<1x128xf32> to vector<1x128xf32>
    %12 = vector.broadcast %11 : vector<1x128xf32> to vector<16x128xf32>
    %c1 = arith.constant 1 : index
    %c0_7 = arith.constant 0 : index
    %13 = vector.load %arg6[%c1, %c0_7] : memref<2x128xf32, #tpu.memory_space<vmem>>, vector<1x128xf32>
    %14 = vector.shape_cast %13 : vector<1x128xf32> to vector<1x128xf32>
    %15 = vector.broadcast %14 : vector<1x128xf32> to vector<16x128xf32>
    %cst_8 = arith.constant 1.000000e+00 : f32
    %16 = vector.broadcast %cst_8 : f32 to vector<16x1xf32>
    %17 = arith.subf %16, %9 : vector<16x1xf32>
    %18 = vector.broadcast %17 : vector<16x1xf32> to vector<16x128xf32>
    %19 = arith.mulf %18, %12 : vector<16x128xf32>
    %20 = vector.broadcast %9 : vector<16x1xf32> to vector<16x128xf32>
    %21 = arith.mulf %20, %15 : vector<16x128xf32>
    %22 = arith.addf %19, %21 : vector<16x128xf32>
    %c0_9 = arith.constant 0 : index
    %c0_10 = arith.constant 0 : index
    %23 = vector.load %arg5[%c0_9, %c0_10] : memref<64x128xf32, #tpu.memory_space<vmem>>, vector<8x128xf32>
    %24 = tpu.concatenate %23, %23 in 0 : vector<8x128xf32>, vector<8x128xf32> -> vector<16x128xf32>
    %25 = arith.addf %7, %24 : vector<16x128xf32>
    %26 = arith.addf %25, %22 : vector<16x128xf32>
    %c0_11 = arith.constant 0 : index
    %c0_12 = arith.constant 0 : index
    %27 = vector.load %arg7[%c0_11, %c0_12] : memref<1x128xf32, #tpu.memory_space<vmem>>, vector<1x128xf32>
    %c0_13 = arith.constant 0 : index
    %c0_14 = arith.constant 0 : index
    %28 = vector.load %arg8[%c0_13, %c0_14] : memref<1x128xf32, #tpu.memory_space<vmem>>, vector<1x128xf32>
    %cst_15 = arith.constant dense<0.000000e+00> : vector<16xf32>
    %29 = vector.multi_reduction <add>, %26, %cst_15 [1] : vector<16x128xf32> to vector<16xf32>
    %30 = vector.shape_cast %29 : vector<16xf32> to vector<16x1xf32>
    %cst_16 = arith.constant 1.280000e+02 : f32
    %31 = vector.broadcast %cst_16 : f32 to vector<16x1xf32>
    %32 = arith.divf %30, %31 : vector<16x1xf32>
    %33 = vector.broadcast %32 : vector<16x1xf32> to vector<16x128xf32>
    %34 = arith.subf %26, %33 : vector<16x128xf32>
    %35 = arith.mulf %34, %34 : vector<16x128xf32>
    %cst_17 = arith.constant dense<0.000000e+00> : vector<16xf32>
    %36 = vector.multi_reduction <add>, %35, %cst_17 [1] : vector<16x128xf32> to vector<16xf32>
    %37 = vector.shape_cast %36 : vector<16xf32> to vector<16x1xf32>
    %cst_18 = arith.constant 1.280000e+02 : f32
    %38 = vector.broadcast %cst_18 : f32 to vector<16x1xf32>
    %39 = arith.divf %37, %38 : vector<16x1xf32>
    %40 = vector.broadcast %32 : vector<16x1xf32> to vector<16x128xf32>
    %41 = arith.subf %26, %40 : vector<16x128xf32>
    %cst_19 = arith.constant 9.99999996E-13 : f32
    %42 = vector.broadcast %cst_19 : f32 to vector<16x1xf32>
    %43 = arith.addf %39, %42 : vector<16x1xf32>
    %44 = math.rsqrt %43 : vector<16x1xf32>
    %45 = vector.broadcast %44 : vector<16x1xf32> to vector<16x128xf32>
    %46 = arith.mulf %41, %45 : vector<16x128xf32>
    %47 = vector.broadcast %27 : vector<1x128xf32> to vector<16x128xf32>
    %48 = arith.mulf %46, %47 : vector<16x128xf32>
    %49 = vector.broadcast %28 : vector<1x128xf32> to vector<16x128xf32>
    %50 = arith.addf %48, %49 : vector<16x128xf32>
    %c0_20 = arith.constant 0 : index
    %c0_21 = arith.constant 0 : index
    %c0_22 = arith.constant 0 : index
    %51 = vector.load %arg3[%c0_20, %c0_21, %c0_22] : memref<2x1x8xf32, #tpu.memory_space<vmem>>, vector<2x1x8xf32>
    %cst_23 = arith.constant 1.000000e+00 : f32
    %52 = vector.broadcast %cst_23 : f32 to vector<2x1x8xf32>
    %53 = arith.subf %52, %51 : vector<2x1x8xf32>
    %cst_24 = arith.constant -1.000000e+09 : f32
    %54 = vector.broadcast %cst_24 : f32 to vector<2x1x8xf32>
    %55 = arith.mulf %53, %54 : vector<2x1x8xf32>
    %56 = vector.shape_cast %55 : vector<2x1x8xf32> to vector<2x1x8xf32>
    %57 = vector.broadcast %56 : vector<2x1x8xf32> to vector<2x8x8xf32>
    %58 = arith.truncf %50 : vector<16x128xf32> to vector<16x128xbf16>
    %c0_25 = arith.constant 0 : index
    %c0_26 = arith.constant 0 : index
    %c0_27 = arith.constant 0 : index
    %59 = vector.load %arg9[%c0_25, %c0_26, %c0_27] : memref<2x128x384xbf16, #tpu.memory_space<vmem>>, vector<1x128x384xbf16>
    %60 = vector.shape_cast %59 : vector<1x128x384xbf16> to vector<128x384xbf16>
    %cst_28 = arith.constant dense<0.000000e+00> : vector<16x384xf32>
    %61 = tpu.matmul %58, %60, %cst_28 {dimension_numbers = #tpu.dot_dimension_numbers<[1], [0], [0], [1], [0, 0, 1, 1], [], []>} : vector<16x128xbf16>, vector<128x384xbf16>, vector<16x384xf32> -> vector<16x384xf32>
    %c0_29 = arith.constant 0 : index
    %c0_30 = arith.constant 0 : index
    %c0_31 = arith.constant 0 : index
    %62 = vector.load %arg10[%c0_29, %c0_30, %c0_31] : memref<2x1x384xf32, #tpu.memory_space<vmem>>, vector<1x1x384xf32>
    %63 = vector.shape_cast %62 : vector<1x1x384xf32> to vector<1x384xf32>
    %64 = vector.broadcast %63 : vector<1x384xf32> to vector<16x384xf32>
    %65 = arith.addf %61, %64 : vector<16x384xf32>
    %66 = vector.extract_strided_slice %65 {offsets = [0, 0], sizes = [16, 128], strides = [1, 1]} : vector<16x384xf32> to vector<16x128xf32>
    %cst_32 = arith.constant 0.176776692 : f32
    %67 = vector.broadcast %cst_32 : f32 to vector<16x128xf32>
    %68 = arith.mulf %66, %67 : vector<16x128xf32>
    %69 = arith.truncf %68 : vector<16x128xf32> to vector<16x128xbf16>
    %70 = vector.extract_strided_slice %65 {offsets = [0, 128], sizes = [16, 128], strides = [1, 1]} : vector<16x384xf32> to vector<16x128xf32>
    %71 = arith.truncf %70 : vector<16x128xf32> to vector<16x128xbf16>
    %72 = vector.extract_strided_slice %65 {offsets = [0, 256], sizes = [16, 128], strides = [1, 1]} : vector<16x384xf32> to vector<16x128xf32>
    %73 = arith.truncf %72 : vector<16x128xf32> to vector<16x128xbf16>
    %74 = vector.extract_strided_slice %69 {offsets = [0, 0], sizes = [16, 32], strides = [1, 1]} : vector<16x128xbf16> to vector<16x32xbf16>
    %75 = vector.shape_cast %74 : vector<16x32xbf16> to vector<2x8x32xbf16>
    %76 = vector.extract_strided_slice %71 {offsets = [0, 0], sizes = [16, 32], strides = [1, 1]} : vector<16x128xbf16> to vector<16x32xbf16>
    %77 = vector.shape_cast %76 : vector<16x32xbf16> to vector<2x8x32xbf16>
    %78 = vector.extract_strided_slice %73 {offsets = [0, 0], sizes = [16, 32], strides = [1, 1]} : vector<16x128xbf16> to vector<16x32xbf16>
    %79 = vector.shape_cast %78 : vector<16x32xbf16> to vector<2x8x32xbf16>
    "tpu.trace_start"() <{level = 10 : i32, message = "bqd,bkd->bqk"}> : () -> ()
    %cst_33 = arith.constant dense<0.000000e+00> : vector<2x8x8xf32>
    %80 = tpu.matmul %75, %77, %cst_33 {dimension_numbers = #tpu.dot_dimension_numbers<[2], [2], [1], [1], [0, 0, 0, 1, 1, 1], [0], [0]>} : vector<2x8x32xbf16>, vector<2x8x32xbf16>, vector<2x8x8xf32> -> vector<2x8x8xf32>
    "tpu.trace_stop"() : () -> ()
    %81 = arith.addf %80, %57 : vector<2x8x8xf32>
    %cst_34 = arith.constant dense<0xFF800000> : vector<2x8xf32>
    %82 = vector.multi_reduction <maximumf>, %81, %cst_34 [2] : vector<2x8x8xf32> to vector<2x8xf32>
    %83 = vector.shape_cast %82 : vector<2x8xf32> to vector<2x8x1xf32>
    %84 = vector.broadcast %83 : vector<2x8x1xf32> to vector<2x8x8xf32>
    %85 = arith.subf %81, %84 : vector<2x8x8xf32>
    %86 = math.exp %85 : vector<2x8x8xf32>
    %cst_35 = arith.constant dense<0.000000e+00> : vector<2x8xf32>
    %87 = vector.multi_reduction <add>, %86, %cst_35 [2] : vector<2x8x8xf32> to vector<2x8xf32>
    %88 = vector.shape_cast %87 : vector<2x8xf32> to vector<2x8x1xf32>
    %89 = tpu.reciprocal %88 {approx = true} : vector<2x8x1xf32> -> vector<2x8x1xf32>
    %90 = vector.broadcast %89 : vector<2x8x1xf32> to vector<2x8x8xf32>
    %91 = arith.mulf %86, %90 : vector<2x8x8xf32>
    %92 = arith.truncf %91 : vector<2x8x8xf32> to vector<2x8x8xbf16>
    "tpu.trace_start"() <{level = 10 : i32, message = "bqk,bkd->bqd"}> : () -> ()
    %cst_36 = arith.constant dense<0.000000e+00> : vector<2x8x32xf32>
    %93 = tpu.matmul %92, %79, %cst_36 {dimension_numbers = #tpu.dot_dimension_numbers<[2], [1], [1], [2], [0, 0, 0, 1, 1, 2], [0], [0]>} : vector<2x8x8xbf16>, vector<2x8x32xbf16>, vector<2x8x32xf32> -> vector<2x8x32xf32>
    "tpu.trace_stop"() : () -> ()
    %94 = vector.shape_cast %93 : vector<2x8x32xf32> to vector<16x32xf32>
    %95 = vector.extract_strided_slice %69 {offsets = [0, 32], sizes = [16, 32], strides = [1, 1]} : vector<16x128xbf16> to vector<16x32xbf16>
    %96 = vector.shape_cast %95 : vector<16x32xbf16> to vector<2x8x32xbf16>
    %97 = vector.extract_strided_slice %71 {offsets = [0, 32], sizes = [16, 32], strides = [1, 1]} : vector<16x128xbf16> to vector<16x32xbf16>
    %98 = vector.shape_cast %97 : vector<16x32xbf16> to vector<2x8x32xbf16>
    %99 = vector.extract_strided_slice %73 {offsets = [0, 32], sizes = [16, 32], strides = [1, 1]} : vector<16x128xbf16> to vector<16x32xbf16>
    %100 = vector.shape_cast %99 : vector<16x32xbf16> to vector<2x8x32xbf16>
    "tpu.trace_start"() <{level = 10 : i32, message = "bqd,bkd->bqk"}> : () -> ()
    %cst_37 = arith.constant dense<0.000000e+00> : vector<2x8x8xf32>
    %101 = tpu.matmul %96, %98, %cst_37 {dimension_numbers = #tpu.dot_dimension_numbers<[2], [2], [1], [1], [0, 0, 0, 1, 1, 1], [0], [0]>} : vector<2x8x32xbf16>, vector<2x8x32xbf16>, vector<2x8x8xf32> -> vector<2x8x8xf32>
    "tpu.trace_stop"() : () -> ()
    %102 = arith.addf %101, %57 : vector<2x8x8xf32>
    %cst_38 = arith.constant dense<0xFF800000> : vector<2x8xf32>
    %103 = vector.multi_reduction <maximumf>, %102, %cst_38 [2] : vector<2x8x8xf32> to vector<2x8xf32>
    %104 = vector.shape_cast %103 : vector<2x8xf32> to vector<2x8x1xf32>
    %105 = vector.broadcast %104 : vector<2x8x1xf32> to vector<2x8x8xf32>
    %106 = arith.subf %102, %105 : vector<2x8x8xf32>
    %107 = math.exp %106 : vector<2x8x8xf32>
    %cst_39 = arith.constant dense<0.000000e+00> : vector<2x8xf32>
    %108 = vector.multi_reduction <add>, %107, %cst_39 [2] : vector<2x8x8xf32> to vector<2x8xf32>
    %109 = vector.shape_cast %108 : vector<2x8xf32> to vector<2x8x1xf32>
    %110 = tpu.reciprocal %109 {approx = true} : vector<2x8x1xf32> -> vector<2x8x1xf32>
    %111 = vector.broadcast %110 : vector<2x8x1xf32> to vector<2x8x8xf32>
    %112 = arith.mulf %107, %111 : vector<2x8x8xf32>
    %113 = arith.truncf %112 : vector<2x8x8xf32> to vector<2x8x8xbf16>
    "tpu.trace_start"() <{level = 10 : i32, message = "bqk,bkd->bqd"}> : () -> ()
    %cst_40 = arith.constant dense<0.000000e+00> : vector<2x8x32xf32>
    %114 = tpu.matmul %113, %100, %cst_40 {dimension_numbers = #tpu.dot_dimension_numbers<[2], [1], [1], [2], [0, 0, 0, 1, 1, 2], [0], [0]>} : vector<2x8x8xbf16>, vector<2x8x32xbf16>, vector<2x8x32xf32> -> vector<2x8x32xf32>
    "tpu.trace_stop"() : () -> ()
    %115 = vector.shape_cast %114 : vector<2x8x32xf32> to vector<16x32xf32>
    %116 = vector.extract_strided_slice %69 {offsets = [0, 64], sizes = [16, 32], strides = [1, 1]} : vector<16x128xbf16> to vector<16x32xbf16>
    %117 = vector.shape_cast %116 : vector<16x32xbf16> to vector<2x8x32xbf16>
    %118 = vector.extract_strided_slice %71 {offsets = [0, 64], sizes = [16, 32], strides = [1, 1]} : vector<16x128xbf16> to vector<16x32xbf16>
    %119 = vector.shape_cast %118 : vector<16x32xbf16> to vector<2x8x32xbf16>
    %120 = vector.extract_strided_slice %73 {offsets = [0, 64], sizes = [16, 32], strides = [1, 1]} : vector<16x128xbf16> to vector<16x32xbf16>
    %121 = vector.shape_cast %120 : vector<16x32xbf16> to vector<2x8x32xbf16>
    "tpu.trace_start"() <{level = 10 : i32, message = "bqd,bkd->bqk"}> : () -> ()
    %cst_41 = arith.constant dense<0.000000e+00> : vector<2x8x8xf32>
    %122 = tpu.matmul %117, %119, %cst_41 {dimension_numbers = #tpu.dot_dimension_numbers<[2], [2], [1], [1], [0, 0, 0, 1, 1, 1], [0], [0]>} : vector<2x8x32xbf16>, vector<2x8x32xbf16>, vector<2x8x8xf32> -> vector<2x8x8xf32>
    "tpu.trace_stop"() : () -> ()
    %123 = arith.addf %122, %57 : vector<2x8x8xf32>
    %cst_42 = arith.constant dense<0xFF800000> : vector<2x8xf32>
    %124 = vector.multi_reduction <maximumf>, %123, %cst_42 [2] : vector<2x8x8xf32> to vector<2x8xf32>
    %125 = vector.shape_cast %124 : vector<2x8xf32> to vector<2x8x1xf32>
    %126 = vector.broadcast %125 : vector<2x8x1xf32> to vector<2x8x8xf32>
    %127 = arith.subf %123, %126 : vector<2x8x8xf32>
    %128 = math.exp %127 : vector<2x8x8xf32>
    %cst_43 = arith.constant dense<0.000000e+00> : vector<2x8xf32>
    %129 = vector.multi_reduction <add>, %128, %cst_43 [2] : vector<2x8x8xf32> to vector<2x8xf32>
    %130 = vector.shape_cast %129 : vector<2x8xf32> to vector<2x8x1xf32>
    %131 = tpu.reciprocal %130 {approx = true} : vector<2x8x1xf32> -> vector<2x8x1xf32>
    %132 = vector.broadcast %131 : vector<2x8x1xf32> to vector<2x8x8xf32>
    %133 = arith.mulf %128, %132 : vector<2x8x8xf32>
    %134 = arith.truncf %133 : vector<2x8x8xf32> to vector<2x8x8xbf16>
    "tpu.trace_start"() <{level = 10 : i32, message = "bqk,bkd->bqd"}> : () -> ()
    %cst_44 = arith.constant dense<0.000000e+00> : vector<2x8x32xf32>
    %135 = tpu.matmul %134, %121, %cst_44 {dimension_numbers = #tpu.dot_dimension_numbers<[2], [1], [1], [2], [0, 0, 0, 1, 1, 2], [0], [0]>} : vector<2x8x8xbf16>, vector<2x8x32xbf16>, vector<2x8x32xf32> -> vector<2x8x32xf32>
    "tpu.trace_stop"() : () -> ()
    %136 = vector.shape_cast %135 : vector<2x8x32xf32> to vector<16x32xf32>
    %137 = vector.extract_strided_slice %69 {offsets = [0, 96], sizes = [16, 32], strides = [1, 1]} : vector<16x128xbf16> to vector<16x32xbf16>
    %138 = vector.shape_cast %137 : vector<16x32xbf16> to vector<2x8x32xbf16>
    %139 = vector.extract_strided_slice %71 {offsets = [0, 96], sizes = [16, 32], strides = [1, 1]} : vector<16x128xbf16> to vector<16x32xbf16>
    %140 = vector.shape_cast %139 : vector<16x32xbf16> to vector<2x8x32xbf16>
    %141 = vector.extract_strided_slice %73 {offsets = [0, 96], sizes = [16, 32], strides = [1, 1]} : vector<16x128xbf16> to vector<16x32xbf16>
    %142 = vector.shape_cast %141 : vector<16x32xbf16> to vector<2x8x32xbf16>
    "tpu.trace_start"() <{level = 10 : i32, message = "bqd,bkd->bqk"}> : () -> ()
    %cst_45 = arith.constant dense<0.000000e+00> : vector<2x8x8xf32>
    %143 = tpu.matmul %138, %140, %cst_45 {dimension_numbers = #tpu.dot_dimension_numbers<[2], [2], [1], [1], [0, 0, 0, 1, 1, 1], [0], [0]>} : vector<2x8x32xbf16>, vector<2x8x32xbf16>, vector<2x8x8xf32> -> vector<2x8x8xf32>
    "tpu.trace_stop"() : () -> ()
    %144 = arith.addf %143, %57 : vector<2x8x8xf32>
    %cst_46 = arith.constant dense<0xFF800000> : vector<2x8xf32>
    %145 = vector.multi_reduction <maximumf>, %144, %cst_46 [2] : vector<2x8x8xf32> to vector<2x8xf32>
    %146 = vector.shape_cast %145 : vector<2x8xf32> to vector<2x8x1xf32>
    %147 = vector.broadcast %146 : vector<2x8x1xf32> to vector<2x8x8xf32>
    %148 = arith.subf %144, %147 : vector<2x8x8xf32>
    %149 = math.exp %148 : vector<2x8x8xf32>
    %cst_47 = arith.constant dense<0.000000e+00> : vector<2x8xf32>
    %150 = vector.multi_reduction <add>, %149, %cst_47 [2] : vector<2x8x8xf32> to vector<2x8xf32>
    %151 = vector.shape_cast %150 : vector<2x8xf32> to vector<2x8x1xf32>
    %152 = tpu.reciprocal %151 {approx = true} : vector<2x8x1xf32> -> vector<2x8x1xf32>
    %153 = vector.broadcast %152 : vector<2x8x1xf32> to vector<2x8x8xf32>
    %154 = arith.mulf %149, %153 : vector<2x8x8xf32>
    %155 = arith.truncf %154 : vector<2x8x8xf32> to vector<2x8x8xbf16>
    "tpu.trace_start"() <{level = 10 : i32, message = "bqk,bkd->bqd"}> : () -> ()
    %cst_48 = arith.constant dense<0.000000e+00> : vector<2x8x32xf32>
    %156 = tpu.matmul %155, %142, %cst_48 {dimension_numbers = #tpu.dot_dimension_numbers<[2], [1], [1], [2], [0, 0, 0, 1, 1, 2], [0], [0]>} : vector<2x8x8xbf16>, vector<2x8x32xbf16>, vector<2x8x32xf32> -> vector<2x8x32xf32>
    "tpu.trace_stop"() : () -> ()
    %157 = vector.shape_cast %156 : vector<2x8x32xf32> to vector<16x32xf32>
    %158 = tpu.concatenate %94, %115, %136, %157 in 1 : vector<16x32xf32>, vector<16x32xf32>, vector<16x32xf32>, vector<16x32xf32> -> vector<16x128xf32>
    %159 = arith.truncf %158 : vector<16x128xf32> to vector<16x128xbf16>
    %c0_49 = arith.constant 0 : index
    %c0_50 = arith.constant 0 : index
    %c0_51 = arith.constant 0 : index
    %160 = vector.load %arg11[%c0_49, %c0_50, %c0_51] : memref<2x128x128xbf16, #tpu.memory_space<vmem>>, vector<1x128x128xbf16>
    %161 = vector.shape_cast %160 : vector<1x128x128xbf16> to vector<128x128xbf16>
    %cst_52 = arith.constant dense<0.000000e+00> : vector<16x128xf32>
    %162 = tpu.matmul %159, %161, %cst_52 {dimension_numbers = #tpu.dot_dimension_numbers<[1], [0], [0], [1], [0, 0, 1, 1], [], []>} : vector<16x128xbf16>, vector<128x128xbf16>, vector<16x128xf32> -> vector<16x128xf32>
    %c0_53 = arith.constant 0 : index
    %c0_54 = arith.constant 0 : index
    %c0_55 = arith.constant 0 : index
    %163 = vector.load %arg12[%c0_53, %c0_54, %c0_55] : memref<2x1x128xf32, #tpu.memory_space<vmem>>, vector<1x1x128xf32>
    %164 = vector.shape_cast %163 : vector<1x1x128xf32> to vector<1x128xf32>
    %165 = vector.broadcast %164 : vector<1x128xf32> to vector<16x128xf32>
    %166 = arith.addf %162, %165 : vector<16x128xf32>
    %167 = arith.addf %50, %166 : vector<16x128xf32>
    %c0_56 = arith.constant 0 : index
    %c0_57 = arith.constant 0 : index
    %c0_58 = arith.constant 0 : index
    %168 = vector.load %arg13[%c0_56, %c0_57, %c0_58] : memref<2x1x128xf32, #tpu.memory_space<vmem>>, vector<1x1x128xf32>
    %169 = vector.shape_cast %168 : vector<1x1x128xf32> to vector<1x128xf32>
    %c0_59 = arith.constant 0 : index
    %c0_60 = arith.constant 0 : index
    %c0_61 = arith.constant 0 : index
    %170 = vector.load %arg14[%c0_59, %c0_60, %c0_61] : memref<2x1x128xf32, #tpu.memory_space<vmem>>, vector<1x1x128xf32>
    %171 = vector.shape_cast %170 : vector<1x1x128xf32> to vector<1x128xf32>
    %cst_62 = arith.constant dense<0.000000e+00> : vector<16xf32>
    %172 = vector.multi_reduction <add>, %167, %cst_62 [1] : vector<16x128xf32> to vector<16xf32>
    %173 = vector.shape_cast %172 : vector<16xf32> to vector<16x1xf32>
    %cst_63 = arith.constant 1.280000e+02 : f32
    %174 = vector.broadcast %cst_63 : f32 to vector<16x1xf32>
    %175 = arith.divf %173, %174 : vector<16x1xf32>
    %176 = vector.broadcast %175 : vector<16x1xf32> to vector<16x128xf32>
    %177 = arith.subf %167, %176 : vector<16x128xf32>
    %178 = arith.mulf %177, %177 : vector<16x128xf32>
    %cst_64 = arith.constant dense<0.000000e+00> : vector<16xf32>
    %179 = vector.multi_reduction <add>, %178, %cst_64 [1] : vector<16x128xf32> to vector<16xf32>
    %180 = vector.shape_cast %179 : vector<16xf32> to vector<16x1xf32>
    %cst_65 = arith.constant 1.280000e+02 : f32
    %181 = vector.broadcast %cst_65 : f32 to vector<16x1xf32>
    %182 = arith.divf %180, %181 : vector<16x1xf32>
    %183 = vector.broadcast %175 : vector<16x1xf32> to vector<16x128xf32>
    %184 = arith.subf %167, %183 : vector<16x128xf32>
    %cst_66 = arith.constant 9.99999996E-13 : f32
    %185 = vector.broadcast %cst_66 : f32 to vector<16x1xf32>
    %186 = arith.addf %182, %185 : vector<16x1xf32>
    %187 = math.rsqrt %186 : vector<16x1xf32>
    %188 = vector.broadcast %187 : vector<16x1xf32> to vector<16x128xf32>
    %189 = arith.mulf %184, %188 : vector<16x128xf32>
    %190 = vector.broadcast %169 : vector<1x128xf32> to vector<16x128xf32>
    %191 = arith.mulf %189, %190 : vector<16x128xf32>
    %192 = vector.broadcast %171 : vector<1x128xf32> to vector<16x128xf32>
    %193 = arith.addf %191, %192 : vector<16x128xf32>
    %194 = arith.truncf %193 : vector<16x128xf32> to vector<16x128xbf16>
    %c0_67 = arith.constant 0 : index
    %c0_68 = arith.constant 0 : index
    %c0_69 = arith.constant 0 : index
    %195 = vector.load %arg15[%c0_67, %c0_68, %c0_69] : memref<2x128x512xbf16, #tpu.memory_space<vmem>>, vector<1x128x512xbf16>
    %196 = vector.shape_cast %195 : vector<1x128x512xbf16> to vector<128x512xbf16>
    %cst_70 = arith.constant dense<0.000000e+00> : vector<16x512xf32>
    %197 = tpu.matmul %194, %196, %cst_70 {dimension_numbers = #tpu.dot_dimension_numbers<[1], [0], [0], [1], [0, 0, 1, 1], [], []>} : vector<16x128xbf16>, vector<128x512xbf16>, vector<16x512xf32> -> vector<16x512xf32>
    %c0_71 = arith.constant 0 : index
    %c0_72 = arith.constant 0 : index
    %c0_73 = arith.constant 0 : index
    %198 = vector.load %arg16[%c0_71, %c0_72, %c0_73] : memref<2x1x512xf32, #tpu.memory_space<vmem>>, vector<1x1x512xf32>
    %199 = vector.shape_cast %198 : vector<1x1x512xf32> to vector<1x512xf32>
    %200 = vector.broadcast %199 : vector<1x512xf32> to vector<16x512xf32>
    %201 = arith.addf %197, %200 : vector<16x512xf32>
    %202 = arith.mulf %201, %201 : vector<16x512xf32>
    %203 = arith.mulf %201, %202 : vector<16x512xf32>
    %cst_74 = arith.constant 4.471500e-02 : f32
    %204 = vector.broadcast %cst_74 : f32 to vector<16x512xf32>
    %205 = arith.mulf %204, %203 : vector<16x512xf32>
    %206 = arith.addf %201, %205 : vector<16x512xf32>
    %cst_75 = arith.constant 0.797884583 : f32
    %207 = vector.broadcast %cst_75 : f32 to vector<16x512xf32>
    %208 = arith.mulf %207, %206 : vector<16x512xf32>
    %209 = math.tanh %208 : vector<16x512xf32>
    %cst_76 = arith.constant 1.000000e+00 : f32
    %210 = vector.broadcast %cst_76 : f32 to vector<16x512xf32>
    %211 = arith.addf %210, %209 : vector<16x512xf32>
    %cst_77 = arith.constant 5.000000e-01 : f32
    %212 = vector.broadcast %cst_77 : f32 to vector<16x512xf32>
    %213 = arith.mulf %212, %211 : vector<16x512xf32>
    %214 = arith.mulf %201, %213 : vector<16x512xf32>
    %215 = arith.truncf %214 : vector<16x512xf32> to vector<16x512xbf16>
    %c0_78 = arith.constant 0 : index
    %c0_79 = arith.constant 0 : index
    %c0_80 = arith.constant 0 : index
    %216 = vector.load %arg17[%c0_78, %c0_79, %c0_80] : memref<2x512x128xbf16, #tpu.memory_space<vmem>>, vector<1x512x128xbf16>
    %217 = vector.shape_cast %216 : vector<1x512x128xbf16> to vector<512x128xbf16>
    %cst_81 = arith.constant dense<0.000000e+00> : vector<16x128xf32>
    %218 = tpu.matmul %215, %217, %cst_81 {dimension_numbers = #tpu.dot_dimension_numbers<[1], [0], [0], [1], [0, 0, 1, 1], [], []>} : vector<16x512xbf16>, vector<512x128xbf16>, vector<16x128xf32> -> vector<16x128xf32>
    %c0_82 = arith.constant 0 : index
    %c0_83 = arith.constant 0 : index
    %c0_84 = arith.constant 0 : index
    %219 = vector.load %arg18[%c0_82, %c0_83, %c0_84] : memref<2x1x128xf32, #tpu.memory_space<vmem>>, vector<1x1x128xf32>
    %220 = vector.shape_cast %219 : vector<1x1x128xf32> to vector<1x128xf32>
    %221 = vector.broadcast %220 : vector<1x128xf32> to vector<16x128xf32>
    %222 = arith.addf %218, %221 : vector<16x128xf32>
    %223 = arith.addf %193, %222 : vector<16x128xf32>
    %c0_85 = arith.constant 0 : index
    %c0_86 = arith.constant 0 : index
    %c0_87 = arith.constant 0 : index
    %224 = vector.load %arg19[%c0_85, %c0_86, %c0_87] : memref<2x1x128xf32, #tpu.memory_space<vmem>>, vector<1x1x128xf32>
    %225 = vector.shape_cast %224 : vector<1x1x128xf32> to vector<1x128xf32>
    %c0_88 = arith.constant 0 : index
    %c0_89 = arith.constant 0 : index
    %c0_90 = arith.constant 0 : index
    %226 = vector.load %arg20[%c0_88, %c0_89, %c0_90] : memref<2x1x128xf32, #tpu.memory_space<vmem>>, vector<1x1x128xf32>
    %227 = vector.shape_cast %226 : vector<1x1x128xf32> to vector<1x128xf32>
    %cst_91 = arith.constant dense<0.000000e+00> : vector<16xf32>
    %228 = vector.multi_reduction <add>, %223, %cst_91 [1] : vector<16x128xf32> to vector<16xf32>
    %229 = vector.shape_cast %228 : vector<16xf32> to vector<16x1xf32>
    %cst_92 = arith.constant 1.280000e+02 : f32
    %230 = vector.broadcast %cst_92 : f32 to vector<16x1xf32>
    %231 = arith.divf %229, %230 : vector<16x1xf32>
    %232 = vector.broadcast %231 : vector<16x1xf32> to vector<16x128xf32>
    %233 = arith.subf %223, %232 : vector<16x128xf32>
    %234 = arith.mulf %233, %233 : vector<16x128xf32>
    %cst_93 = arith.constant dense<0.000000e+00> : vector<16xf32>
    %235 = vector.multi_reduction <add>, %234, %cst_93 [1] : vector<16x128xf32> to vector<16xf32>
    %236 = vector.shape_cast %235 : vector<16xf32> to vector<16x1xf32>
    %cst_94 = arith.constant 1.280000e+02 : f32
    %237 = vector.broadcast %cst_94 : f32 to vector<16x1xf32>
    %238 = arith.divf %236, %237 : vector<16x1xf32>
    %239 = vector.broadcast %231 : vector<16x1xf32> to vector<16x128xf32>
    %240 = arith.subf %223, %239 : vector<16x128xf32>
    %cst_95 = arith.constant 9.99999996E-13 : f32
    %241 = vector.broadcast %cst_95 : f32 to vector<16x1xf32>
    %242 = arith.addf %238, %241 : vector<16x1xf32>
    %243 = math.rsqrt %242 : vector<16x1xf32>
    %244 = vector.broadcast %243 : vector<16x1xf32> to vector<16x128xf32>
    %245 = arith.mulf %240, %244 : vector<16x128xf32>
    %246 = vector.broadcast %225 : vector<1x128xf32> to vector<16x128xf32>
    %247 = arith.mulf %245, %246 : vector<16x128xf32>
    %248 = vector.broadcast %227 : vector<1x128xf32> to vector<16x128xf32>
    %249 = arith.addf %247, %248 : vector<16x128xf32>
    %250 = arith.truncf %249 : vector<16x128xf32> to vector<16x128xbf16>
    %c1_96 = arith.constant 1 : index
    %c0_97 = arith.constant 0 : index
    %c0_98 = arith.constant 0 : index
    %251 = vector.load %arg9[%c1_96, %c0_97, %c0_98] : memref<2x128x384xbf16, #tpu.memory_space<vmem>>, vector<1x128x384xbf16>
    %252 = vector.shape_cast %251 : vector<1x128x384xbf16> to vector<128x384xbf16>
    %cst_99 = arith.constant dense<0.000000e+00> : vector<16x384xf32>
    %253 = tpu.matmul %250, %252, %cst_99 {dimension_numbers = #tpu.dot_dimension_numbers<[1], [0], [0], [1], [0, 0, 1, 1], [], []>} : vector<16x128xbf16>, vector<128x384xbf16>, vector<16x384xf32> -> vector<16x384xf32>
    %c1_100 = arith.constant 1 : index
    %c0_101 = arith.constant 0 : index
    %c0_102 = arith.constant 0 : index
    %254 = vector.load %arg10[%c1_100, %c0_101, %c0_102] : memref<2x1x384xf32, #tpu.memory_space<vmem>>, vector<1x1x384xf32>
    %255 = vector.shape_cast %254 : vector<1x1x384xf32> to vector<1x384xf32>
    %256 = vector.broadcast %255 : vector<1x384xf32> to vector<16x384xf32>
    %257 = arith.addf %253, %256 : vector<16x384xf32>
    %258 = vector.extract_strided_slice %257 {offsets = [0, 0], sizes = [16, 128], strides = [1, 1]} : vector<16x384xf32> to vector<16x128xf32>
    %cst_103 = arith.constant 0.176776692 : f32
    %259 = vector.broadcast %cst_103 : f32 to vector<16x128xf32>
    %260 = arith.mulf %258, %259 : vector<16x128xf32>
    %261 = arith.truncf %260 : vector<16x128xf32> to vector<16x128xbf16>
    %262 = vector.extract_strided_slice %257 {offsets = [0, 128], sizes = [16, 128], strides = [1, 1]} : vector<16x384xf32> to vector<16x128xf32>
    %263 = arith.truncf %262 : vector<16x128xf32> to vector<16x128xbf16>
    %264 = vector.extract_strided_slice %257 {offsets = [0, 256], sizes = [16, 128], strides = [1, 1]} : vector<16x384xf32> to vector<16x128xf32>
    %265 = arith.truncf %264 : vector<16x128xf32> to vector<16x128xbf16>
    %266 = vector.extract_strided_slice %261 {offsets = [0, 0], sizes = [16, 32], strides = [1, 1]} : vector<16x128xbf16> to vector<16x32xbf16>
    %267 = vector.shape_cast %266 : vector<16x32xbf16> to vector<2x8x32xbf16>
    %268 = vector.extract_strided_slice %263 {offsets = [0, 0], sizes = [16, 32], strides = [1, 1]} : vector<16x128xbf16> to vector<16x32xbf16>
    %269 = vector.shape_cast %268 : vector<16x32xbf16> to vector<2x8x32xbf16>
    %270 = vector.extract_strided_slice %265 {offsets = [0, 0], sizes = [16, 32], strides = [1, 1]} : vector<16x128xbf16> to vector<16x32xbf16>
    %271 = vector.shape_cast %270 : vector<16x32xbf16> to vector<2x8x32xbf16>
    "tpu.trace_start"() <{level = 10 : i32, message = "bqd,bkd->bqk"}> : () -> ()
    %cst_104 = arith.constant dense<0.000000e+00> : vector<2x8x8xf32>
    %272 = tpu.matmul %267, %269, %cst_104 {dimension_numbers = #tpu.dot_dimension_numbers<[2], [2], [1], [1], [0, 0, 0, 1, 1, 1], [0], [0]>} : vector<2x8x32xbf16>, vector<2x8x32xbf16>, vector<2x8x8xf32> -> vector<2x8x8xf32>
    "tpu.trace_stop"() : () -> ()
    %273 = arith.addf %272, %57 : vector<2x8x8xf32>
    %cst_105 = arith.constant dense<0xFF800000> : vector<2x8xf32>
    %274 = vector.multi_reduction <maximumf>, %273, %cst_105 [2] : vector<2x8x8xf32> to vector<2x8xf32>
    %275 = vector.shape_cast %274 : vector<2x8xf32> to vector<2x8x1xf32>
    %276 = vector.broadcast %275 : vector<2x8x1xf32> to vector<2x8x8xf32>
    %277 = arith.subf %273, %276 : vector<2x8x8xf32>
    %278 = math.exp %277 : vector<2x8x8xf32>
    %cst_106 = arith.constant dense<0.000000e+00> : vector<2x8xf32>
    %279 = vector.multi_reduction <add>, %278, %cst_106 [2] : vector<2x8x8xf32> to vector<2x8xf32>
    %280 = vector.shape_cast %279 : vector<2x8xf32> to vector<2x8x1xf32>
    %281 = tpu.reciprocal %280 {approx = true} : vector<2x8x1xf32> -> vector<2x8x1xf32>
    %282 = vector.broadcast %281 : vector<2x8x1xf32> to vector<2x8x8xf32>
    %283 = arith.mulf %278, %282 : vector<2x8x8xf32>
    %284 = arith.truncf %283 : vector<2x8x8xf32> to vector<2x8x8xbf16>
    "tpu.trace_start"() <{level = 10 : i32, message = "bqk,bkd->bqd"}> : () -> ()
    %cst_107 = arith.constant dense<0.000000e+00> : vector<2x8x32xf32>
    %285 = tpu.matmul %284, %271, %cst_107 {dimension_numbers = #tpu.dot_dimension_numbers<[2], [1], [1], [2], [0, 0, 0, 1, 1, 2], [0], [0]>} : vector<2x8x8xbf16>, vector<2x8x32xbf16>, vector<2x8x32xf32> -> vector<2x8x32xf32>
    "tpu.trace_stop"() : () -> ()
    %286 = vector.shape_cast %285 : vector<2x8x32xf32> to vector<16x32xf32>
    %287 = vector.extract_strided_slice %261 {offsets = [0, 32], sizes = [16, 32], strides = [1, 1]} : vector<16x128xbf16> to vector<16x32xbf16>
    %288 = vector.shape_cast %287 : vector<16x32xbf16> to vector<2x8x32xbf16>
    %289 = vector.extract_strided_slice %263 {offsets = [0, 32], sizes = [16, 32], strides = [1, 1]} : vector<16x128xbf16> to vector<16x32xbf16>
    %290 = vector.shape_cast %289 : vector<16x32xbf16> to vector<2x8x32xbf16>
    %291 = vector.extract_strided_slice %265 {offsets = [0, 32], sizes = [16, 32], strides = [1, 1]} : vector<16x128xbf16> to vector<16x32xbf16>
    %292 = vector.shape_cast %291 : vector<16x32xbf16> to vector<2x8x32xbf16>
    "tpu.trace_start"() <{level = 10 : i32, message = "bqd,bkd->bqk"}> : () -> ()
    %cst_108 = arith.constant dense<0.000000e+00> : vector<2x8x8xf32>
    %293 = tpu.matmul %288, %290, %cst_108 {dimension_numbers = #tpu.dot_dimension_numbers<[2], [2], [1], [1], [0, 0, 0, 1, 1, 1], [0], [0]>} : vector<2x8x32xbf16>, vector<2x8x32xbf16>, vector<2x8x8xf32> -> vector<2x8x8xf32>
    "tpu.trace_stop"() : () -> ()
    %294 = arith.addf %293, %57 : vector<2x8x8xf32>
    %cst_109 = arith.constant dense<0xFF800000> : vector<2x8xf32>
    %295 = vector.multi_reduction <maximumf>, %294, %cst_109 [2] : vector<2x8x8xf32> to vector<2x8xf32>
    %296 = vector.shape_cast %295 : vector<2x8xf32> to vector<2x8x1xf32>
    %297 = vector.broadcast %296 : vector<2x8x1xf32> to vector<2x8x8xf32>
    %298 = arith.subf %294, %297 : vector<2x8x8xf32>
    %299 = math.exp %298 : vector<2x8x8xf32>
    %cst_110 = arith.constant dense<0.000000e+00> : vector<2x8xf32>
    %300 = vector.multi_reduction <add>, %299, %cst_110 [2] : vector<2x8x8xf32> to vector<2x8xf32>
    %301 = vector.shape_cast %300 : vector<2x8xf32> to vector<2x8x1xf32>
    %302 = tpu.reciprocal %301 {approx = true} : vector<2x8x1xf32> -> vector<2x8x1xf32>
    %303 = vector.broadcast %302 : vector<2x8x1xf32> to vector<2x8x8xf32>
    %304 = arith.mulf %299, %303 : vector<2x8x8xf32>
    %305 = arith.truncf %304 : vector<2x8x8xf32> to vector<2x8x8xbf16>
    "tpu.trace_start"() <{level = 10 : i32, message = "bqk,bkd->bqd"}> : () -> ()
    %cst_111 = arith.constant dense<0.000000e+00> : vector<2x8x32xf32>
    %306 = tpu.matmul %305, %292, %cst_111 {dimension_numbers = #tpu.dot_dimension_numbers<[2], [1], [1], [2], [0, 0, 0, 1, 1, 2], [0], [0]>} : vector<2x8x8xbf16>, vector<2x8x32xbf16>, vector<2x8x32xf32> -> vector<2x8x32xf32>
    "tpu.trace_stop"() : () -> ()
    %307 = vector.shape_cast %306 : vector<2x8x32xf32> to vector<16x32xf32>
    %308 = vector.extract_strided_slice %261 {offsets = [0, 64], sizes = [16, 32], strides = [1, 1]} : vector<16x128xbf16> to vector<16x32xbf16>
    %309 = vector.shape_cast %308 : vector<16x32xbf16> to vector<2x8x32xbf16>
    %310 = vector.extract_strided_slice %263 {offsets = [0, 64], sizes = [16, 32], strides = [1, 1]} : vector<16x128xbf16> to vector<16x32xbf16>
    %311 = vector.shape_cast %310 : vector<16x32xbf16> to vector<2x8x32xbf16>
    %312 = vector.extract_strided_slice %265 {offsets = [0, 64], sizes = [16, 32], strides = [1, 1]} : vector<16x128xbf16> to vector<16x32xbf16>
    %313 = vector.shape_cast %312 : vector<16x32xbf16> to vector<2x8x32xbf16>
    "tpu.trace_start"() <{level = 10 : i32, message = "bqd,bkd->bqk"}> : () -> ()
    %cst_112 = arith.constant dense<0.000000e+00> : vector<2x8x8xf32>
    %314 = tpu.matmul %309, %311, %cst_112 {dimension_numbers = #tpu.dot_dimension_numbers<[2], [2], [1], [1], [0, 0, 0, 1, 1, 1], [0], [0]>} : vector<2x8x32xbf16>, vector<2x8x32xbf16>, vector<2x8x8xf32> -> vector<2x8x8xf32>
    "tpu.trace_stop"() : () -> ()
    %315 = arith.addf %314, %57 : vector<2x8x8xf32>
    %cst_113 = arith.constant dense<0xFF800000> : vector<2x8xf32>
    %316 = vector.multi_reduction <maximumf>, %315, %cst_113 [2] : vector<2x8x8xf32> to vector<2x8xf32>
    %317 = vector.shape_cast %316 : vector<2x8xf32> to vector<2x8x1xf32>
    %318 = vector.broadcast %317 : vector<2x8x1xf32> to vector<2x8x8xf32>
    %319 = arith.subf %315, %318 : vector<2x8x8xf32>
    %320 = math.exp %319 : vector<2x8x8xf32>
    %cst_114 = arith.constant dense<0.000000e+00> : vector<2x8xf32>
    %321 = vector.multi_reduction <add>, %320, %cst_114 [2] : vector<2x8x8xf32> to vector<2x8xf32>
    %322 = vector.shape_cast %321 : vector<2x8xf32> to vector<2x8x1xf32>
    %323 = tpu.reciprocal %322 {approx = true} : vector<2x8x1xf32> -> vector<2x8x1xf32>
    %324 = vector.broadcast %323 : vector<2x8x1xf32> to vector<2x8x8xf32>
    %325 = arith.mulf %320, %324 : vector<2x8x8xf32>
    %326 = arith.truncf %325 : vector<2x8x8xf32> to vector<2x8x8xbf16>
    "tpu.trace_start"() <{level = 10 : i32, message = "bqk,bkd->bqd"}> : () -> ()
    %cst_115 = arith.constant dense<0.000000e+00> : vector<2x8x32xf32>
    %327 = tpu.matmul %326, %313, %cst_115 {dimension_numbers = #tpu.dot_dimension_numbers<[2], [1], [1], [2], [0, 0, 0, 1, 1, 2], [0], [0]>} : vector<2x8x8xbf16>, vector<2x8x32xbf16>, vector<2x8x32xf32> -> vector<2x8x32xf32>
    "tpu.trace_stop"() : () -> ()
    %328 = vector.shape_cast %327 : vector<2x8x32xf32> to vector<16x32xf32>
    %329 = vector.extract_strided_slice %261 {offsets = [0, 96], sizes = [16, 32], strides = [1, 1]} : vector<16x128xbf16> to vector<16x32xbf16>
    %330 = vector.shape_cast %329 : vector<16x32xbf16> to vector<2x8x32xbf16>
    %331 = vector.extract_strided_slice %263 {offsets = [0, 96], sizes = [16, 32], strides = [1, 1]} : vector<16x128xbf16> to vector<16x32xbf16>
    %332 = vector.shape_cast %331 : vector<16x32xbf16> to vector<2x8x32xbf16>
    %333 = vector.extract_strided_slice %265 {offsets = [0, 96], sizes = [16, 32], strides = [1, 1]} : vector<16x128xbf16> to vector<16x32xbf16>
    %334 = vector.shape_cast %333 : vector<16x32xbf16> to vector<2x8x32xbf16>
    "tpu.trace_start"() <{level = 10 : i32, message = "bqd,bkd->bqk"}> : () -> ()
    %cst_116 = arith.constant dense<0.000000e+00> : vector<2x8x8xf32>
    %335 = tpu.matmul %330, %332, %cst_116 {dimension_numbers = #tpu.dot_dimension_numbers<[2], [2], [1], [1], [0, 0, 0, 1, 1, 1], [0], [0]>} : vector<2x8x32xbf16>, vector<2x8x32xbf16>, vector<2x8x8xf32> -> vector<2x8x8xf32>
    "tpu.trace_stop"() : () -> ()
    %336 = arith.addf %335, %57 : vector<2x8x8xf32>
    %cst_117 = arith.constant dense<0xFF800000> : vector<2x8xf32>
    %337 = vector.multi_reduction <maximumf>, %336, %cst_117 [2] : vector<2x8x8xf32> to vector<2x8xf32>
    %338 = vector.shape_cast %337 : vector<2x8xf32> to vector<2x8x1xf32>
    %339 = vector.broadcast %338 : vector<2x8x1xf32> to vector<2x8x8xf32>
    %340 = arith.subf %336, %339 : vector<2x8x8xf32>
    %341 = math.exp %340 : vector<2x8x8xf32>
    %cst_118 = arith.constant dense<0.000000e+00> : vector<2x8xf32>
    %342 = vector.multi_reduction <add>, %341, %cst_118 [2] : vector<2x8x8xf32> to vector<2x8xf32>
    %343 = vector.shape_cast %342 : vector<2x8xf32> to vector<2x8x1xf32>
    %344 = tpu.reciprocal %343 {approx = true} : vector<2x8x1xf32> -> vector<2x8x1xf32>
    %345 = vector.broadcast %344 : vector<2x8x1xf32> to vector<2x8x8xf32>
    %346 = arith.mulf %341, %345 : vector<2x8x8xf32>
    %347 = arith.truncf %346 : vector<2x8x8xf32> to vector<2x8x8xbf16>
    "tpu.trace_start"() <{level = 10 : i32, message = "bqk,bkd->bqd"}> : () -> ()
    %cst_119 = arith.constant dense<0.000000e+00> : vector<2x8x32xf32>
    %348 = tpu.matmul %347, %334, %cst_119 {dimension_numbers = #tpu.dot_dimension_numbers<[2], [1], [1], [2], [0, 0, 0, 1, 1, 2], [0], [0]>} : vector<2x8x8xbf16>, vector<2x8x32xbf16>, vector<2x8x32xf32> -> vector<2x8x32xf32>
    "tpu.trace_stop"() : () -> ()
    %349 = vector.shape_cast %348 : vector<2x8x32xf32> to vector<16x32xf32>
    %350 = tpu.concatenate %286, %307, %328, %349 in 1 : vector<16x32xf32>, vector<16x32xf32>, vector<16x32xf32>, vector<16x32xf32> -> vector<16x128xf32>
    %351 = arith.truncf %350 : vector<16x128xf32> to vector<16x128xbf16>
    %c1_120 = arith.constant 1 : index
    %c0_121 = arith.constant 0 : index
    %c0_122 = arith.constant 0 : index
    %352 = vector.load %arg11[%c1_120, %c0_121, %c0_122] : memref<2x128x128xbf16, #tpu.memory_space<vmem>>, vector<1x128x128xbf16>
    %353 = vector.shape_cast %352 : vector<1x128x128xbf16> to vector<128x128xbf16>
    %cst_123 = arith.constant dense<0.000000e+00> : vector<16x128xf32>
    %354 = tpu.matmul %351, %353, %cst_123 {dimension_numbers = #tpu.dot_dimension_numbers<[1], [0], [0], [1], [0, 0, 1, 1], [], []>} : vector<16x128xbf16>, vector<128x128xbf16>, vector<16x128xf32> -> vector<16x128xf32>
    %c1_124 = arith.constant 1 : index
    %c0_125 = arith.constant 0 : index
    %c0_126 = arith.constant 0 : index
    %355 = vector.load %arg12[%c1_124, %c0_125, %c0_126] : memref<2x1x128xf32, #tpu.memory_space<vmem>>, vector<1x1x128xf32>
    %356 = vector.shape_cast %355 : vector<1x1x128xf32> to vector<1x128xf32>
    %357 = vector.broadcast %356 : vector<1x128xf32> to vector<16x128xf32>
    %358 = arith.addf %354, %357 : vector<16x128xf32>
    %359 = arith.addf %249, %358 : vector<16x128xf32>
    %c1_127 = arith.constant 1 : index
    %c0_128 = arith.constant 0 : index
    %c0_129 = arith.constant 0 : index
    %360 = vector.load %arg13[%c1_127, %c0_128, %c0_129] : memref<2x1x128xf32, #tpu.memory_space<vmem>>, vector<1x1x128xf32>
    %361 = vector.shape_cast %360 : vector<1x1x128xf32> to vector<1x128xf32>
    %c1_130 = arith.constant 1 : index
    %c0_131 = arith.constant 0 : index
    %c0_132 = arith.constant 0 : index
    %362 = vector.load %arg14[%c1_130, %c0_131, %c0_132] : memref<2x1x128xf32, #tpu.memory_space<vmem>>, vector<1x1x128xf32>
    %363 = vector.shape_cast %362 : vector<1x1x128xf32> to vector<1x128xf32>
    %cst_133 = arith.constant dense<0.000000e+00> : vector<16xf32>
    %364 = vector.multi_reduction <add>, %359, %cst_133 [1] : vector<16x128xf32> to vector<16xf32>
    %365 = vector.shape_cast %364 : vector<16xf32> to vector<16x1xf32>
    %cst_134 = arith.constant 1.280000e+02 : f32
    %366 = vector.broadcast %cst_134 : f32 to vector<16x1xf32>
    %367 = arith.divf %365, %366 : vector<16x1xf32>
    %368 = vector.broadcast %367 : vector<16x1xf32> to vector<16x128xf32>
    %369 = arith.subf %359, %368 : vector<16x128xf32>
    %370 = arith.mulf %369, %369 : vector<16x128xf32>
    %cst_135 = arith.constant dense<0.000000e+00> : vector<16xf32>
    %371 = vector.multi_reduction <add>, %370, %cst_135 [1] : vector<16x128xf32> to vector<16xf32>
    %372 = vector.shape_cast %371 : vector<16xf32> to vector<16x1xf32>
    %cst_136 = arith.constant 1.280000e+02 : f32
    %373 = vector.broadcast %cst_136 : f32 to vector<16x1xf32>
    %374 = arith.divf %372, %373 : vector<16x1xf32>
    %375 = vector.broadcast %367 : vector<16x1xf32> to vector<16x128xf32>
    %376 = arith.subf %359, %375 : vector<16x128xf32>
    %cst_137 = arith.constant 9.99999996E-13 : f32
    %377 = vector.broadcast %cst_137 : f32 to vector<16x1xf32>
    %378 = arith.addf %374, %377 : vector<16x1xf32>
    %379 = math.rsqrt %378 : vector<16x1xf32>
    %380 = vector.broadcast %379 : vector<16x1xf32> to vector<16x128xf32>
    %381 = arith.mulf %376, %380 : vector<16x128xf32>
    %382 = vector.broadcast %361 : vector<1x128xf32> to vector<16x128xf32>
    %383 = arith.mulf %381, %382 : vector<16x128xf32>
    %384 = vector.broadcast %363 : vector<1x128xf32> to vector<16x128xf32>
    %385 = arith.addf %383, %384 : vector<16x128xf32>
    %386 = arith.truncf %385 : vector<16x128xf32> to vector<16x128xbf16>
    %c1_138 = arith.constant 1 : index
    %c0_139 = arith.constant 0 : index
    %c0_140 = arith.constant 0 : index
    %387 = vector.load %arg15[%c1_138, %c0_139, %c0_140] : memref<2x128x512xbf16, #tpu.memory_space<vmem>>, vector<1x128x512xbf16>
    %388 = vector.shape_cast %387 : vector<1x128x512xbf16> to vector<128x512xbf16>
    %cst_141 = arith.constant dense<0.000000e+00> : vector<16x512xf32>
    %389 = tpu.matmul %386, %388, %cst_141 {dimension_numbers = #tpu.dot_dimension_numbers<[1], [0], [0], [1], [0, 0, 1, 1], [], []>} : vector<16x128xbf16>, vector<128x512xbf16>, vector<16x512xf32> -> vector<16x512xf32>
    %c1_142 = arith.constant 1 : index
    %c0_143 = arith.constant 0 : index
    %c0_144 = arith.constant 0 : index
    %390 = vector.load %arg16[%c1_142, %c0_143, %c0_144] : memref<2x1x512xf32, #tpu.memory_space<vmem>>, vector<1x1x512xf32>
    %391 = vector.shape_cast %390 : vector<1x1x512xf32> to vector<1x512xf32>
    %392 = vector.broadcast %391 : vector<1x512xf32> to vector<16x512xf32>
    %393 = arith.addf %389, %392 : vector<16x512xf32>
    %394 = arith.mulf %393, %393 : vector<16x512xf32>
    %395 = arith.mulf %393, %394 : vector<16x512xf32>
    %cst_145 = arith.constant 4.471500e-02 : f32
    %396 = vector.broadcast %cst_145 : f32 to vector<16x512xf32>
    %397 = arith.mulf %396, %395 : vector<16x512xf32>
    %398 = arith.addf %393, %397 : vector<16x512xf32>
    %cst_146 = arith.constant 0.797884583 : f32
    %399 = vector.broadcast %cst_146 : f32 to vector<16x512xf32>
    %400 = arith.mulf %399, %398 : vector<16x512xf32>
    %401 = math.tanh %400 : vector<16x512xf32>
    %cst_147 = arith.constant 1.000000e+00 : f32
    %402 = vector.broadcast %cst_147 : f32 to vector<16x512xf32>
    %403 = arith.addf %402, %401 : vector<16x512xf32>
    %cst_148 = arith.constant 5.000000e-01 : f32
    %404 = vector.broadcast %cst_148 : f32 to vector<16x512xf32>
    %405 = arith.mulf %404, %403 : vector<16x512xf32>
    %406 = arith.mulf %393, %405 : vector<16x512xf32>
    %407 = arith.truncf %406 : vector<16x512xf32> to vector<16x512xbf16>
    %c1_149 = arith.constant 1 : index
    %c0_150 = arith.constant 0 : index
    %c0_151 = arith.constant 0 : index
    %408 = vector.load %arg17[%c1_149, %c0_150, %c0_151] : memref<2x512x128xbf16, #tpu.memory_space<vmem>>, vector<1x512x128xbf16>
    %409 = vector.shape_cast %408 : vector<1x512x128xbf16> to vector<512x128xbf16>
    %cst_152 = arith.constant dense<0.000000e+00> : vector<16x128xf32>
    %410 = tpu.matmul %407, %409, %cst_152 {dimension_numbers = #tpu.dot_dimension_numbers<[1], [0], [0], [1], [0, 0, 1, 1], [], []>} : vector<16x512xbf16>, vector<512x128xbf16>, vector<16x128xf32> -> vector<16x128xf32>
    %c1_153 = arith.constant 1 : index
    %c0_154 = arith.constant 0 : index
    %c0_155 = arith.constant 0 : index
    %411 = vector.load %arg18[%c1_153, %c0_154, %c0_155] : memref<2x1x128xf32, #tpu.memory_space<vmem>>, vector<1x1x128xf32>
    %412 = vector.shape_cast %411 : vector<1x1x128xf32> to vector<1x128xf32>
    %413 = vector.broadcast %412 : vector<1x128xf32> to vector<16x128xf32>
    %414 = arith.addf %410, %413 : vector<16x128xf32>
    %415 = arith.addf %385, %414 : vector<16x128xf32>
    %c1_156 = arith.constant 1 : index
    %c0_157 = arith.constant 0 : index
    %c0_158 = arith.constant 0 : index
    %416 = vector.load %arg19[%c1_156, %c0_157, %c0_158] : memref<2x1x128xf32, #tpu.memory_space<vmem>>, vector<1x1x128xf32>
    %417 = vector.shape_cast %416 : vector<1x1x128xf32> to vector<1x128xf32>
    %c1_159 = arith.constant 1 : index
    %c0_160 = arith.constant 0 : index
    %c0_161 = arith.constant 0 : index
    %418 = vector.load %arg20[%c1_159, %c0_160, %c0_161] : memref<2x1x128xf32, #tpu.memory_space<vmem>>, vector<1x1x128xf32>
    %419 = vector.shape_cast %418 : vector<1x1x128xf32> to vector<1x128xf32>
    %cst_162 = arith.constant dense<0.000000e+00> : vector<16xf32>
    %420 = vector.multi_reduction <add>, %415, %cst_162 [1] : vector<16x128xf32> to vector<16xf32>
    %421 = vector.shape_cast %420 : vector<16xf32> to vector<16x1xf32>
    %cst_163 = arith.constant 1.280000e+02 : f32
    %422 = vector.broadcast %cst_163 : f32 to vector<16x1xf32>
    %423 = arith.divf %421, %422 : vector<16x1xf32>
    %424 = vector.broadcast %423 : vector<16x1xf32> to vector<16x128xf32>
    %425 = arith.subf %415, %424 : vector<16x128xf32>
    %426 = arith.mulf %425, %425 : vector<16x128xf32>
    %cst_164 = arith.constant dense<0.000000e+00> : vector<16xf32>
    %427 = vector.multi_reduction <add>, %426, %cst_164 [1] : vector<16x128xf32> to vector<16xf32>
    %428 = vector.shape_cast %427 : vector<16xf32> to vector<16x1xf32>
    %cst_165 = arith.constant 1.280000e+02 : f32
    %429 = vector.broadcast %cst_165 : f32 to vector<16x1xf32>
    %430 = arith.divf %428, %429 : vector<16x1xf32>
    %431 = vector.broadcast %423 : vector<16x1xf32> to vector<16x128xf32>
    %432 = arith.subf %415, %431 : vector<16x128xf32>
    %cst_166 = arith.constant 9.99999996E-13 : f32
    %433 = vector.broadcast %cst_166 : f32 to vector<16x1xf32>
    %434 = arith.addf %430, %433 : vector<16x1xf32>
    %435 = math.rsqrt %434 : vector<16x1xf32>
    %436 = vector.broadcast %435 : vector<16x1xf32> to vector<16x128xf32>
    %437 = arith.mulf %432, %436 : vector<16x128xf32>
    %438 = vector.broadcast %417 : vector<1x128xf32> to vector<16x128xf32>
    %439 = arith.mulf %437, %438 : vector<16x128xf32>
    %440 = vector.broadcast %419 : vector<1x128xf32> to vector<16x128xf32>
    %441 = arith.addf %439, %440 : vector<16x128xf32>
    %442 = vector.shape_cast %441 : vector<16x128xf32> to vector<2x8x128xf32>
    %443 = vector.extract_strided_slice %442 {offsets = [0, 0, 0], sizes = [2, 1, 128], strides = [1, 1, 1]} : vector<2x8x128xf32> to vector<2x1x128xf32>
    %444 = vector.shape_cast %443 : vector<2x1x128xf32> to vector<2x128xf32>
    %445 = arith.truncf %444 : vector<2x128xf32> to vector<2x128xbf16>
    %c0_167 = arith.constant 0 : index
    %c0_168 = arith.constant 0 : index
    %446 = vector.load %arg21[%c0_167, %c0_168] : memref<128x128xbf16, #tpu.memory_space<vmem>>, vector<128x128xbf16>
    %cst_169 = arith.constant dense<0.000000e+00> : vector<2x128xf32>
    %447 = tpu.matmul %445, %446, %cst_169 {dimension_numbers = #tpu.dot_dimension_numbers<[1], [0], [0], [1], [0, 0, 1, 1], [], []>} : vector<2x128xbf16>, vector<128x128xbf16>, vector<2x128xf32> -> vector<2x128xf32>
    %c0_170 = arith.constant 0 : index
    %c0_171 = arith.constant 0 : index
    %448 = vector.load %arg22[%c0_170, %c0_171] : memref<1x128xf32, #tpu.memory_space<vmem>>, vector<1x128xf32>
    %449 = vector.broadcast %448 : vector<1x128xf32> to vector<2x128xf32>
    %450 = arith.addf %447, %449 : vector<2x128xf32>
    %451 = math.tanh %450 : vector<2x128xf32>
    %452 = arith.truncf %451 : vector<2x128xf32> to vector<2x128xbf16>
    %c0_172 = arith.constant 0 : index
    %c0_173 = arith.constant 0 : index
    %453 = vector.load %arg23[%c0_172, %c0_173] : memref<128x128xbf16, #tpu.memory_space<vmem>>, vector<128x128xbf16>
    %cst_174 = arith.constant dense<0.000000e+00> : vector<2x128xf32>
    %454 = tpu.matmul %452, %453, %cst_174 {dimension_numbers = #tpu.dot_dimension_numbers<[1], [0], [0], [1], [0, 0, 1, 1], [], []>} : vector<2x128xbf16>, vector<128x128xbf16>, vector<2x128xf32> -> vector<2x128xf32>
    %c0_175 = arith.constant 0 : index
    %c0_176 = arith.constant 0 : index
    %455 = vector.load %arg24[%c0_175, %c0_176] : memref<1x128xf32, #tpu.memory_space<vmem>>, vector<1x128xf32>
    %456 = vector.broadcast %455 : vector<1x128xf32> to vector<2x128xf32>
    %457 = arith.addf %454, %456 : vector<2x128xf32>
    %c0_177 = arith.constant 0 : index
    %c0_178 = arith.constant 0 : index
    %458 = vector.load %arg25[%c0_177, %c0_178] : memref<2x128xf32, #tpu.memory_space<vmem>>, vector<2x128xf32>
    tpu.vector_store %arg25[%c0_177, %c0_178], %457 {strides = array<i32>} : memref<2x128xf32, #tpu.memory_space<vmem>>, vector<2x128xf32>,
    return
  }
  func.func @transform_0(%arg0: i32) -> (i32, i32) {
    %c0_i32 = arith.constant 0 : i32
    %c0_i32_0 = arith.constant 0 : i32
    %c0_i32_1 = arith.constant 0 : i32
    return %c0_i32, %c0_i32_0 : i32, i32
  }
  func.func @transform_1(%arg0: i32) -> (i32, i32) {
    %c0_i32 = arith.constant 0 : i32
    %c0_i32_0 = arith.constant 0 : i32
    %c0_i32_1 = arith.constant 0 : i32
    return %c0_i32, %c0_i32_0 : i32, i32
  }
  func.func @transform_2(%arg0: i32) -> (i32, i32, i32) {
    %c0_i32 = arith.constant 0 : i32
    %c0_i32_0 = arith.constant 0 : i32
    %c0_i32_1 = arith.constant 0 : i32
    %c0_i32_2 = arith.constant 0 : i32
    return %c0_i32, %c0_i32_0, %c0_i32_1 : i32, i32, i32
  }
  func.func @transform_3(%arg0: i32) -> (i32, i32) {
    %c0_i32 = arith.constant 0 : i32
    %c0_i32_0 = arith.constant 0 : i32
    %c0_i32_1 = arith.constant 0 : i32
    return %c0_i32, %c0_i32_0 : i32, i32
  }
  func.func @transform_4(%arg0: i32) -> (i32, i32) {
    %c0_i32 = arith.constant 0 : i32
    %c0_i32_0 = arith.constant 0 : i32
    %c0_i32_1 = arith.constant 0 : i32
    return %c0_i32, %c0_i32_0 : i32, i32
  }
  func.func @transform_5(%arg0: i32) -> (i32, i32) {
    %c0_i32 = arith.constant 0 : i32
    %c0_i32_0 = arith.constant 0 : i32
    %c0_i32_1 = arith.constant 0 : i32
    return %c0_i32, %c0_i32_0 : i32, i32
  }
  func.func @transform_6(%arg0: i32) -> (i32, i32) {
    %c0_i32 = arith.constant 0 : i32
    %c0_i32_0 = arith.constant 0 : i32
    %c0_i32_1 = arith.constant 0 : i32
    return %c0_i32, %c0_i32_0 : i32, i32
  }
  func.func @transform_7(%arg0: i32) -> (i32, i32) {
    %c0_i32 = arith.constant 0 : i32
    %c0_i32_0 = arith.constant 0 : i32
    %c0_i32_1 = arith.constant 0 : i32
    return %c0_i32, %c0_i32_0 : i32, i32
  }
  func.func @transform_8(%arg0: i32) -> (i32, i32, i32) {
    %c0_i32 = arith.constant 0 : i32
    %c0_i32_0 = arith.constant 0 : i32
    %c0_i32_1 = arith.constant 0 : i32
    %c0_i32_2 = arith.constant 0 : i32
    return %c0_i32, %c0_i32_0, %c0_i32_1 : i32, i32, i32
  }
  func.func @transform_9(%arg0: i32) -> (i32, i32, i32) {
    %c0_i32 = arith.constant 0 : i32
    %c0_i32_0 = arith.constant 0 : i32
    %c0_i32_1 = arith.constant 0 : i32
    %c0_i32_2 = arith.constant 0 : i32
    return %c0_i32, %c0_i32_0, %c0_i32_1 : i32, i32, i32
  }
  func.func @transform_10(%arg0: i32) -> (i32, i32, i32) {
    %c0_i32 = arith.constant 0 : i32
    %c0_i32_0 = arith.constant 0 : i32
    %c0_i32_1 = arith.constant 0 : i32
    %c0_i32_2 = arith.constant 0 : i32
    return %c0_i32, %c0_i32_0, %c0_i32_1 : i32, i32, i32
  }
  func.func @transform_11(%arg0: i32) -> (i32, i32, i32) {
    %c0_i32 = arith.constant 0 : i32
    %c0_i32_0 = arith.constant 0 : i32
    %c0_i32_1 = arith.constant 0 : i32
    %c0_i32_2 = arith.constant 0 : i32
    return %c0_i32, %c0_i32_0, %c0_i32_1 : i32, i32, i32
  }
  func.func @transform_12(%arg0: i32) -> (i32, i32, i32) {
    %c0_i32 = arith.constant 0 : i32
    %c0_i32_0 = arith.constant 0 : i32
    %c0_i32_1 = arith.constant 0 : i32
    %c0_i32_2 = arith.constant 0 : i32
    return %c0_i32, %c0_i32_0, %c0_i32_1 : i32, i32, i32
  }
  func.func @transform_13(%arg0: i32) -> (i32, i32, i32) {
    %c0_i32 = arith.constant 0 : i32
    %c0_i32_0 = arith.constant 0 : i32
    %c0_i32_1 = arith.constant 0 : i32
    %c0_i32_2 = arith.constant 0 : i32
    return %c0_i32, %c0_i32_0, %c0_i32_1 : i32, i32, i32
  }
  func.func @transform_14(%arg0: i32) -> (i32, i32, i32) {
    %c0_i32 = arith.constant 0 : i32
    %c0_i32_0 = arith.constant 0 : i32
    %c0_i32_1 = arith.constant 0 : i32
    %c0_i32_2 = arith.constant 0 : i32
    return %c0_i32, %c0_i32_0, %c0_i32_1 : i32, i32, i32
  }
  func.func @transform_15(%arg0: i32) -> (i32, i32, i32) {
    %c0_i32 = arith.constant 0 : i32
    %c0_i32_0 = arith.constant 0 : i32
    %c0_i32_1 = arith.constant 0 : i32
    %c0_i32_2 = arith.constant 0 : i32
    return %c0_i32, %c0_i32_0, %c0_i32_1 : i32, i32, i32
  }
  func.func @transform_16(%arg0: i32) -> (i32, i32, i32) {
    %c0_i32 = arith.constant 0 : i32
    %c0_i32_0 = arith.constant 0 : i32
    %c0_i32_1 = arith.constant 0 : i32
    %c0_i32_2 = arith.constant 0 : i32
    return %c0_i32, %c0_i32_0, %c0_i32_1 : i32, i32, i32
  }
  func.func @transform_17(%arg0: i32) -> (i32, i32, i32) {
    %c0_i32 = arith.constant 0 : i32
    %c0_i32_0 = arith.constant 0 : i32
    %c0_i32_1 = arith.constant 0 : i32
    %c0_i32_2 = arith.constant 0 : i32
    return %c0_i32, %c0_i32_0, %c0_i32_1 : i32, i32, i32
  }
  func.func @transform_18(%arg0: i32) -> (i32, i32, i32) {
    %c0_i32 = arith.constant 0 : i32
    %c0_i32_0 = arith.constant 0 : i32
    %c0_i32_1 = arith.constant 0 : i32
    %c0_i32_2 = arith.constant 0 : i32
    return %c0_i32, %c0_i32_0, %c0_i32_1 : i32, i32, i32
  }
  func.func @transform_19(%arg0: i32) -> (i32, i32, i32) {
    %c0_i32 = arith.constant 0 : i32
    %c0_i32_0 = arith.constant 0 : i32
    %c0_i32_1 = arith.constant 0 : i32
    %c0_i32_2 = arith.constant 0 : i32
    return %c0_i32, %c0_i32_0, %c0_i32_1 : i32, i32, i32
  }
  func.func @transform_20(%arg0: i32) -> (i32, i32) {
    %c0_i32 = arith.constant 0 : i32
    %c0_i32_0 = arith.constant 0 : i32
    %c0_i32_1 = arith.constant 0 : i32
    return %c0_i32, %c0_i32_0 : i32, i32
  }
  func.func @transform_21(%arg0: i32) -> (i32, i32) {
    %c0_i32 = arith.constant 0 : i32
    %c0_i32_0 = arith.constant 0 : i32
    %c0_i32_1 = arith.constant 0 : i32
    return %c0_i32, %c0_i32_0 : i32, i32
  }
  func.func @transform_22(%arg0: i32) -> (i32, i32) {
    %c0_i32 = arith.constant 0 : i32
    %c0_i32_0 = arith.constant 0 : i32
    %c0_i32_1 = arith.constant 0 : i32
    return %c0_i32, %c0_i32_0 : i32, i32
  }
  func.func @transform_23(%arg0: i32) -> (i32, i32) {
    %c0_i32 = arith.constant 0 : i32
    %c0_i32_0 = arith.constant 0 : i32
    %c0_i32_1 = arith.constant 0 : i32
    return %c0_i32, %c0_i32_0 : i32, i32
  }
  func.func @transform_24(%arg0: i32) -> (i32, i32) {
    %c0_i32 = arith.constant 0 : i32
    %c0_i32_0 = arith.constant 0 : i32
    %c0_i32_1 = arith.constant 0 : i32
    return %c0_i32, %c0_i32_0 : i32, i32
  }
}

</mosaic_0001>

<bundles_post_ra>
// kernel: base_model_forward.1
= control target key start
LH: loop header
LB: loop body
LE: loop exit
PB: predicated region body
PF: predicated region fallthrough
CT: control target
= control target key end

     0   :  { %s7621_s0 = inlined_call_operand.vmem [shape: s32[16,1], index: 0, kind: input, shape index: {}]   ;;  %s7622_s1 = inlined_call_operand.vmem [shape: s32[16,1], index: 1, kind: input, shape index: {}]   ;;  %s7623_s2 = inlined_call_operand.vmem [shape: f32[2,1,8], index: 2, kind: input, shape index: {}]   ;;  %s7624_s3 = inlined_call_operand.hbm [shape: f32[512,128], index: 3, kind: input, shape index: {}]   ;;  %s7625_s4 = inlined_call_operand.vmem [shape: f32[64,128], index: 4, kind: input, shape index: {}]   ;;  %s7626_s5 = inlined_call_operand.vmem [shape: f32[2,128], index: 5, kind: input, shape index: {}]   ;;  %s7627_s6 = inlined_call_operand.vmem [shape: f32[1,128], index: 6, kind: input, shape index: {}]   ;;  %s7628_s7 = inlined_call_operand.vmem [shape: f32[1,128], index: 7, kind: input, shape index: {}]   ;;  %s7629_s8 = inlined_call_operand.hbm [shape: bf16[2,128,384], index: 8, kind: input, shape index: {}]   ;;  %s7630_s9 = inlined_call_operand.vmem [shape: f32[2,1,384], index: 9, kind: input, shape index: {}]   ;;  %s7631_s10 = inlined_call_operand.hbm [shape: bf16[2,128,128], index: 10, kind: input, shape index: {}]   ;;  %s7632_s11 = inlined_call_operand.vmem [shape: f32[2,1,128], index: 11, kind: input, shape index: {}]   ;;  %s7633_s12 = inlined_call_operand.vmem [shape: f32[2,1,128], index: 12, kind: input, shape index: {}]   ;;  %s7634_s13 = inlined_call_operand.vmem [shape: f32[2,1,128], index: 13, kind: input, shape index: {}]   ;;  %s7635_s14 = inlined_call_operand.hbm [shape: bf16[2,128,512], index: 14, kind: input, shape index: {}]   ;;  %s7636_s15 = inlined_call_operand.vmem [shape: f32[2,1,512], index: 15, kind: input, shape index: {}]   ;;  %s7637_s16 = inlined_call_operand.hbm [shape: bf16[2,512,128], index: 16, kind: input, shape index: {}]   ;;  %s7638_s17 = inlined_call_operand.vmem [shape: f32[2,1,128], index: 17, kind: input, shape index: {}]   ;;  %s7639_s18 = inlined_call_operand.vmem [shape: f32[2,1,128], index: 18, kind: input, shape index: {}]   ;;  %s7640_s19 = inlined_call_operand.vmem [shape: f32[2,1,128], index: 19, kind: input, shape index: {}]   ;;  %s7641_s20 = inlined_call_operand.hbm [shape: bf16[128,128], index: 20, kind: input, shape index: {}]   ;;  %s7642_s21 = inlined_call_operand.hbm [shape: f32[1,128], index: 21, kind: input, shape index: {}]   ;;  %s7643_s22 = inlined_call_operand.hbm [shape: bf16[128,128], index: 22, kind: input, shape index: {}]   ;;  %s7644_s23 = inlined_call_operand.hbm [shape: f32[1,128], index: 23, kind: input, shape index: {}]   ;;  %s7645_s24 = inlined_call_operand.vmem [shape: f32[2,128], index: 24, kind: output, shape index: {}]  }
   0x1   :  { %7652 = sst [smem:[#allocation21_spill]] %s7621_s0 }
   0x2   :  { %7653 = sst [smem:[#allocation22_spill]] %s7622_s1 }
   0x3   :  { %7654 = sst [smem:[#allocation23_spill]] %s7623_s2 }
   0x4   :  { %7655 = sst [smem:[#allocation24_spill]] %s7624_s3 }
   0x5   :  { %7656 = sst [smem:[#allocation25_spill]] %s7625_s4 }
   0x6   :  { %7657 = sst [smem:[#allocation26_spill]] %s7626_s5 }
   0x7   :  { %7658 = sst [smem:[#allocation27_spill]] %s7627_s6 }
   0x8   :  { %7659 = sst [smem:[#allocation28_spill]] %s7628_s7 }
   0x9   :  { %7660 = sst [smem:[#allocation29_spill]] %s7629_s8 }
   0xa   :  { %7661 = sst [smem:[#allocation30_spill]] %s7645_s24 }
   0xb   :  { %29 = vsyncpa [#allocation3], 0 }
   0xc   :  { %30 = vsyncpa [#allocation5], 0 }
   0xd   :  { %31 = vsyncpa [#allocation8], 0 }
   0xe   :  { %32 = vsyncpa [#allocation11], 0 }
   0xf   :  { %33 = vsyncpa [#allocation14], 0  ;;  %s6612_s5 = smov [#allocation4]   ;;  %s7662_s6 = sld [smem:[#allocation29_spill]] }
  0x10   :  { %s65_s26 = sshll.u32 %s6612_s5, 4  ;;  %s66_s26 = int_to_ptr.vmem [resolvable:$true] %s65_s26 }
  0x15   :  { %s6404_s2 = scalar_lea.hbm %s7662_s6, 6144 }
  0x16   :  { %p6405_p0 = scmp.ne.s32.totalorder %s7662_s6, %s6404_s2  ;;  %p6408_p1 = scmp.lt.u32.totalorder %s6404_s2, %s7662_s6 }
  0x18   :  { %p6410_p2 = pnand %p6408_p1, %p6405_p0 }
  0x1a   :  { %6413 = shalt.err (!%p6410_p2)
}
  0x1b   :  { %s6414_s3 = scalar_lea.vmem %s66_s26, 6144  ;;  %p6419_p4 = scmp.lt.s32.totalorder %s66_s26, %s66_s26 }
  0x1c   :  { %p6415_p3 = scmp.ne.s32.totalorder %s66_s26, %s6414_s3  ;;  %p6420_p5 = scmp.lt.s32.totalorder %s6414_s3, %s6414_s3 }
  0x1e   :  { %p6421_p6 = por %p6420_p5, %p6419_p4 }
  0x20   :  { %p6422_p7 = pnand %p6421_p6, %p6415_p3 }
  0x22   :  { %6425 = shalt.err (!%p6422_p7)
}
  0x23   :  { %s6613_s25 = smov 192   ;;  %s6614_s8 = smov 12  }
  0x24   :  { %71 = dma.hbm_to_vmem [thread:$0]  %s7662_s6, 6144, %s66_s26, [#allocation5], %s6613_s25, %s6613_s25, %s6614_s8  }
  0x25   :  { %s6615_s5 = smov [#allocation7]   ;;  %s6426_s29 = scalar_lea.hbm %s7635_s14, 8192 }
  0x26   :  { %s97_s27 = sshll.u32 %s6615_s5, 4  ;;  %p6427_p8 = scmp.ne.s32.totalorder %s7635_s14, %s6426_s29  ;;  %s98_s27 = int_to_ptr.vmem [resolvable:$true] %s97_s27 }
  0x27   :  { %p6430_p9 = scmp.lt.u32.totalorder %s6426_s29, %s7635_s14 }
  0x29   :  { %p6432_p10 = pnand %p6430_p9, %p6427_p8 }
  0x2b   :  { %6435 = shalt.err (!%p6432_p10)
}
  0x2c   :  { %s6436_s24 = scalar_lea.vmem %s98_s27, 8192  ;;  %p6441_p12 = scmp.lt.s32.totalorder %s98_s27, %s98_s27 }
  0x2d   :  { %p6437_p11 = scmp.ne.s32.totalorder %s98_s27, %s6436_s24  ;;  %p6442_p13 = scmp.lt.s32.totalorder %s6436_s24, %s6436_s24 }
  0x2f   :  { %p6443_p0 = por %p6442_p13, %p6441_p12 }
  0x31   :  { %p6444_p1 = pnand %p6443_p0, %p6437_p11 }
  0x33   :  { %6447 = shalt.err (!%p6444_p1)
}
  0x34   :  { %s6616_s26 = smov 256   ;;  %s6617_s6 = smov 16  }
  0x35   :  { %103 = dma.hbm_to_vmem [thread:$0]  %s7635_s14, 8192, %s98_s27, [#allocation8], %s6616_s26, %s6616_s26, %s6617_s6  }
  0x36   :  { %s6618_s4 = smov [#allocation10]   ;;  %s6619_s5 = smov [#allocation13]  }
  0x37   :  { %s129_s1 = sshll.u32 %s6618_s4, 4  ;;  %s151_s28 = sshll.u32 %s6619_s5, 4  ;;  %s130_s1 = int_to_ptr.vmem [resolvable:$true] %s129_s1  ;;  %s6784_s28 = int_to_ptr.vmem [resolvable:$true] %s151_s28 }
  0x38   :  { %s6448_s24 = scalar_lea.hbm %s7641_s20, 1024 }
  0x39   :  { %p6449_p2 = scmp.ne.s32.totalorder %s7641_s20, %s6448_s24  ;;  %p6452_p3 = scmp.lt.u32.totalorder %s6448_s24, %s7641_s20 }
  0x3b   :  { %p6454_p4 = pnand %p6452_p3, %p6449_p2 }
  0x3d   :  { %6457 = shalt.err (!%p6454_p4)
}
  0x3e   :  { %s6458_s14 = scalar_lea.vmem %s130_s1, 1024  ;;  %p6463_p6 = scmp.lt.s32.totalorder %s130_s1, %s130_s1 }
  0x3f   :  { %p6459_p5 = scmp.ne.s32.totalorder %s130_s1, %s6458_s14  ;;  %p6464_p7 = scmp.lt.s32.totalorder %s6458_s14, %s6458_s14 }
  0x41   :  { %p6465_p8 = por %p6464_p7, %p6463_p6 }
  0x43   :  { %p6466_p9 = pnand %p6465_p8, %p6459_p5 }
  0x45   :  { %6469 = shalt.err (!%p6466_p9)
}
  0x46   :  { %s6620_s27 = smov 64   ;;  %s6621_s26 = smov 4  }
  0x47   :  { %135 = dma.hbm_to_vmem [thread:$0]  %s7641_s20, 1024, %s130_s1, [#allocation11], %s6620_s27, %s6620_s27, %s6621_s26  }
  0x48   :  { %s6470_s5 = scalar_lea.hbm %s7643_s22, 1024 }
  0x49   :  { %p6471_p10 = scmp.ne.s32.totalorder %s7643_s22, %s6470_s5  ;;  %p6474_p11 = scmp.lt.u32.totalorder %s6470_s5, %s7643_s22 }
  0x4b   :  { %p6476_p12 = pnand %p6474_p11, %p6471_p10 }
  0x4d   :  { %6479 = shalt.err (!%p6476_p12)
}
  0x4e   :  { %s6480_s7 = scalar_lea.vmem %s6784_s28, 1024  ;;  %p6485_p0 = scmp.lt.s32.totalorder %s6784_s28, %s6784_s28 }
  0x4f   :  { %p6481_p13 = scmp.ne.s32.totalorder %s6784_s28, %s6480_s7  ;;  %p6486_p1 = scmp.lt.s32.totalorder %s6480_s7, %s6480_s7 }
  0x51   :  { %p6487_p2 = por %p6486_p1, %p6485_p0 }
  0x53   :  { %p6488_p3 = pnand %p6487_p2, %p6481_p13 }
  0x55   :  { %6491 = shalt.err (!%p6488_p3)
}
  0x56   :  { %157 = dma.hbm_to_vmem [thread:$0]  %s7643_s22, 1024, %s6784_s28, [#allocation14], %s6620_s27, %s6620_s27, %s6621_s26  }
  0x57   :  { %s6622_s30 = smov [#allocation2]   ;;  %s7663_s25 = sld [smem:[#allocation24_spill]] }
  0x58   :  { %s45_s3 = sshll.u32 %s6622_s30, 4  ;;  %s46_s3 = int_to_ptr.vmem [resolvable:$true] %s45_s3 }
  0x5d   :  { %s6492_s8 = scalar_lea.hbm %s7663_s25, 8192 }
  0x5e   :  { %p6493_p4 = scmp.ne.s32.totalorder %s7663_s25, %s6492_s8  ;;  %p6496_p5 = scmp.lt.u32.totalorder %s6492_s8, %s7663_s25 }
  0x60   :  { %p6498_p6 = pnand %p6496_p5, %p6493_p4 }
  0x62   :  { %6501 = shalt.err (!%p6498_p6)
}
  0x63   :  { %s6502_s24 = scalar_lea.vmem %s46_s3, 8192  ;;  %p6507_p8 = scmp.lt.s32.totalorder %s46_s3, %s46_s3 }
  0x64   :  { %p6503_p7 = scmp.ne.s32.totalorder %s46_s3, %s6502_s24  ;;  %p6508_p9 = scmp.lt.s32.totalorder %s6502_s24, %s6502_s24 }
  0x66   :  { %p6509_p10 = por %p6508_p9, %p6507_p8 }
  0x68   :  { %p6510_p11 = pnand %p6509_p10, %p6503_p7 }
  0x6a   :  { %6513 = shalt.err (!%p6510_p11)
}
  0x6b   :  { %s6623_s22 = smov 128   ;;  %s6624_s28 = smov 8  }
  0x6c   :  { %51 = dma.hbm_to_vmem [thread:$0]  %s7663_s25, 8192, %s46_s3, [#allocation3], %s6623_s22, %s6623_s22, %s6624_s28  }
  0x6d   :  { %s6625_s20 = smov [#allocation6]   ;;  %s6626_s30 = smov [#allocation9]  }
  0x6e   :  { %s79_s1 = sshll.u32 %s6625_s20, 4  ;;  %s111_s14 = sshll.u32 %s6626_s30, 4  ;;  %s80_s1 = int_to_ptr.vmem [resolvable:$true] %s79_s1  ;;  %s112_s14 = int_to_ptr.vmem [resolvable:$true] %s111_s14 }
  0x6f   :  { %s6514_s4 = scalar_lea.hbm %s7631_s10, 2048 }
  0x70   :  { %p6515_p12 = scmp.ne.s32.totalorder %s7631_s10, %s6514_s4  ;;  %p6518_p13 = scmp.lt.u32.totalorder %s6514_s4, %s7631_s10 }
  0x72   :  { %p6520_p0 = pnand %p6518_p13, %p6515_p12 }
  0x74   :  { %6523 = shalt.err (!%p6520_p0)
}
  0x75   :  { %s6524_s3 = scalar_lea.vmem %s80_s1, 2048  ;;  %p6529_p2 = scmp.lt.s32.totalorder %s80_s1, %s80_s1 }
  0x76   :  { %p6525_p1 = scmp.ne.s32.totalorder %s80_s1, %s6524_s3  ;;  %p6530_p3 = scmp.lt.s32.totalorder %s6524_s3, %s6524_s3 }
  0x78   :  { %p6531_p4 = por %p6530_p3, %p6529_p2 }
  0x7a   :  { %p6532_p5 = pnand %p6531_p4, %p6525_p1 }
  0x7c   :  { %6535 = shalt.err (!%p6532_p5)
}
  0x7d   :  { %85 = dma.hbm_to_vmem [thread:$0]  %s7631_s10, 2048, %s80_s1, [#allocation5], %s6620_s27, %s6620_s27, %s6621_s26  }
  0x7e   :  { %s6536_s7 = scalar_lea.hbm %s7637_s16, 8192 }
  0x7f   :  { %p6537_p6 = scmp.ne.s32.totalorder %s7637_s16, %s6536_s7  ;;  %p6540_p7 = scmp.lt.u32.totalorder %s6536_s7, %s7637_s16 }
  0x81   :  { %p6542_p8 = pnand %p6540_p7, %p6537_p6 }
  0x83   :  { %6545 = shalt.err (!%p6542_p8)
}
  0x84   :  { %s6546_s4 = scalar_lea.vmem %s112_s14, 8192  ;;  %p6551_p10 = scmp.lt.s32.totalorder %s112_s14, %s112_s14 }
  0x85   :  { %p6547_p9 = scmp.ne.s32.totalorder %s112_s14, %s6546_s4  ;;  %p6552_p11 = scmp.lt.s32.totalorder %s6546_s4, %s6546_s4 }
  0x87   :  { %p6553_p12 = por %p6552_p11, %p6551_p10 }
  0x89   :  { %p6554_p13 = pnand %p6553_p12, %p6547_p9 }
  0x8b   :  { %6557 = shalt.err (!%p6554_p13)
}
  0x8c   :  { %117 = dma.hbm_to_vmem [thread:$0]  %s7637_s16, 8192, %s112_s14, [#allocation8], %s6620_s27, %s6620_s27, %s6621_s26  }
  0x8d   :  { %s6627_s5 = smov [#allocation12]   ;;  %s6628_s29 = smov [#allocation15]  }
  0x8e   :  { %s142_s2 = sshll.u32 %s6627_s5, 4  ;;  %s164_s24 = sshll.u32 %s6628_s29, 4  ;;  %s143_s2 = int_to_ptr.vmem [resolvable:$true] %s142_s2  ;;  %s165_s24 = int_to_ptr.vmem [resolvable:$true] %s164_s24 }
  0x8f   :  { %s6558_s22 = scalar_lea.hbm %s7642_s21, 16 }
  0x90   :  { %p6559_p0 = scmp.ne.s32.totalorder %s7642_s21, %s6558_s22  ;;  %p6562_p1 = scmp.lt.u32.totalorder %s6558_s22, %s7642_s21 }
  0x92   :  { %p6564_p2 = pnand %p6562_p1, %p6559_p0 }
  0x94   :  { %6567 = shalt.err (!%p6564_p2)
}
  0x95   :  { %s6568_s16 = scalar_lea.vmem %s143_s2, 16  ;;  %s6572_s26 = scalar_lea.vmem %s143_s2, 32 }
  0x96   :  { %p6569_p3 = scmp.ne.s32.totalorder %s143_s2, %s6568_s16  ;;  %p6573_p4 = scmp.lt.s32.totalorder %s143_s2, %s143_s2 }
  0x97   :  { %p6574_p5 = scmp.lt.s32.totalorder %s6572_s26, %s6568_s16 }
  0x99   :  { %p6575_p6 = por %p6574_p5, %p6573_p4 }
  0x9b   :  { %p6576_p7 = pnand %p6575_p6, %p6569_p3 }
  0x9d   :  { %6579 = shalt.err (!%p6576_p7)
}
  0x9e   :  { %145 = dma.hbm_to_vmem [thread:$0]  %s7642_s21, 16, %s143_s2, [#allocation11]  }
  0x9f   :  { %s6580_s4 = scalar_lea.hbm %s7644_s23, 16 }
  0xa0   :  { %p6581_p8 = scmp.ne.s32.totalorder %s7644_s23, %s6580_s4  ;;  %p6584_p9 = scmp.lt.u32.totalorder %s6580_s4, %s7644_s23 }
  0xa2   :  { %p6586_p10 = pnand %p6584_p9, %p6581_p8 }
  0xa4   :  { %6589 = shalt.err (!%p6586_p10)
}
  0xa5   :  { %s6590_s3 = scalar_lea.vmem %s165_s24, 16  ;;  %s6594_s25 = scalar_lea.vmem %s165_s24, 32 }
  0xa6   :  { %p6591_p11 = scmp.ne.s32.totalorder %s165_s24, %s6590_s3  ;;  %p6595_p12 = scmp.lt.s32.totalorder %s165_s24, %s165_s24 }
  0xa7   :  { %p6596_p13 = scmp.lt.s32.totalorder %s6594_s25, %s6590_s3 }
  0xa9   :  { %p6597_p0 = por %p6596_p13, %p6595_p12 }
  0xab   :  { %p6598_p1 = pnand %p6597_p0, %p6591_p11 }
  0xad   :  { %6601 = shalt.err (!%p6598_p1)
}
  0xae   :  { %167 = dma.hbm_to_vmem [thread:$0]  %s7644_s23, 16, %s165_s24, [#allocation14]  }
  0xaf   :  { %6602 = dma.done.wait [#allocation3], 8192  }
  0xb0   :  { %6603 = vsyncadd [#allocation3], 4294959104 }
  0xb1   :  { %6604 = dma.done.wait [#allocation5], 8192  }
  0xb2   :  { %6605 = vsyncadd [#allocation5], 4294959104 }
  0xb3   :  { %6606 = dma.done.wait [#allocation8], 16384  }
  0xb4   :  { %6607 = vsyncadd [#allocation8], 4294950912 }
  0xb5   :  { %6608 = dma.done.wait [#allocation11], 1040  }
  0xb6   :  { %6609 = vsyncadd [#allocation11], 4294966256 }
  0xb7   :  { %6610 = dma.done.wait [#allocation14], 1040  }
  0xb8   :  { %6611 = vsyncadd [#allocation14], 4294966256  ;;  %v6629_v0 = vmov 0   ;;  %s7664_s0 = sld [smem:[#allocation21_spill]]  ;;  %s7665_s16 = sld [smem:[#allocation22_spill]]  ;;  %v249_v5 = vld [vmem:[#allocation2 + $0x80] sm:$0xff] }
  0xb9   :  { %5998 = vset.pattern.permute.xlu0 %v6629_v0  ;;  %5999 = vset.pattern.permute.xlu1 %v6629_v0  ;;  %v250_v6 = vld [vmem:[#allocation2 + $0x88] sm:$0xff]  ;;  %v281_v7 = vld [vmem:[#allocation2 + $0x180] sm:$0xff]  ;;  %v251_v17 = vld [vmem:[#allocation2 + $0x90] sm:$0xff]  ;;  %s7666_s8 = sld [smem:[#allocation26_spill]]  ;;  %s7667_s29 = sld [smem:[#allocation25_spill]]  ;;  %vm6632_vm8 = vmmov 0  }
  0xba   :  { %v5911_v8 = vpack.c.bf16 %v250_v6, %v249_v5  ;;  %v282_v9 = vld [vmem:[#allocation2 + $0x188] sm:$0xff]  ;;  %v233_v10 = vld [vmem:[#allocation2] sm:$0xff]  ;;  %v252_v19 = vld [vmem:[#allocation2 + $0x98] sm:$0xff]  ;;  %s7668_s21 = sld [smem:[#allocation27_spill]]  ;;  %s7669_s28 = sld [smem:[#allocation28_spill]]  ;;  %vm833_vm9 = vcmask 261120  }
  0xbb   :  { %v234_v11 = vld [vmem:[#allocation2 + $0x8] sm:$0xff]  ;;  %v5943_v13 = vpack.c.bf16 %v282_v9, %v281_v7  ;;  %v265_v15 = vld [vmem:[#allocation2 + $0x100] sm:$0xff]  ;;  %v283_v20 = vld [vmem:[#allocation2 + $0x190] sm:$0xff]  ;;  %v5915_v22 = vpack.c.bf16 %v252_v19, %v251_v17  ;;  %vm954_vm10 = vcmask 1043456   ;;  %s7670_s20 = sld [smem:[#allocation23_spill]]  ;;  %vm926_vm11 = vcmask 64512  }
  0xbc   :  { %v5913_v14 = vpack.c.bf16 %v234_v11, %v233_v10  ;;  %v266_v16 = vld [vmem:[#allocation2 + $0x108] sm:$0xff]  ;;  %5912 = vmatprep.subr.bf16.mxu0 %v5911_v8  ;;  %v284_v21 = vld [vmem:[#allocation2 + $0x198] sm:$0xff]  ;;  %v235_v24 = vld [vmem:[#allocation2 + $0x10] sm:$0xff]  ;;  %s6633_s14 = smov 96   ;;  %s6634_s30 = smov 32   ;;  %vm1730_vm12 = vcmask 523264  }
  0xbd   :  { %v5945_v18 = vpack.c.bf16 %v266_v16, %v265_v15  ;;  %v5947_v23 = vpack.c.bf16 %v284_v21, %v283_v20  ;;  %v236_v25 = vld [vmem:[#allocation2 + $0x18] sm:$0xff]  ;;  %v267_v26 = vld [vmem:[#allocation2 + $0x110] sm:$0xff]  ;;  %5944 = vmatprep.subr.bf16.mxu1 %v5943_v13  ;;  %v253_v29 = vld [vmem:[#allocation2 + $0xa0] sm:$0xff]  ;;  %vm1733_vm13 = vcmask 785408   ;;  %vm4796_vm14 = vcmask 1041409  }
  0xbe   :  { %v196_v1 = vld [vmem:[%s7664_s0] sm:$0xff]  ;;  %v197_v2 = vld [vmem:[%s7664_s0 + $0x8] sm:$0xff]  ;;  %5914 = vmatpush3.bf16.msra.mxu0 %v5913_v14  ;;  %v5917_v27 = vpack.c.bf16 %v236_v25, %v235_v24  ;;  %v268_v28 = vld [vmem:[#allocation2 + $0x118] sm:$0xff] }
  0xbf   :  { %v297_v3 = vld [vmem:[%s7665_s16] sm:$0xff]  ;;  %204 = vperm.xlu0 %5998, %v196_v1   ;;  %v254_v30 = vld [vmem:[#allocation2 + $0xa8] sm:$0xff]  ;;  %5946 = vmatpush3.bf16.msra.mxu1 %v5945_v18  ;;  %v5949_v31 = vpack.c.bf16 %v268_v28, %v267_v26  ;;  %v255_v40 = vld [vmem:[#allocation2 + $0xb0] sm:$0xff] }
  0xc0   :  { %v299_v4 = vcvt.s32.f32 %v297_v3  ;;  %5916 = vmatprep.subr.bf16.mxu0 %v5915_v22  ;;  %v5919_v32 = vpack.c.bf16 %v254_v30, %v253_v29  ;;  %v285_v33 = vld [vmem:[#allocation2 + $0x1a0] sm:$0xff]  ;;  %v286_v34 = vld [vmem:[#allocation2 + $0x1a8] sm:$0xff]  ;;  %5948 = vmatprep.subr.bf16.mxu1 %v5947_v23  ;;  %v256_v41 = vld [vmem:[#allocation2 + $0xb8] sm:$0xff] }
  0xc1   :  { %v237_v35 = vld [vmem:[#allocation2 + $0x20] sm:$0xff]  ;;  %v5951_v36 = vpack.c.bf16 %v286_v34, %v285_v33  ;;  %v238_v37 = vld [vmem:[#allocation2 + $0x28] sm:$0xff]  ;;  %v287_v42 = vld [vmem:[#allocation2 + $0x1b0] sm:$0xff]  ;;  %v5923_v46 = vpack.c.bf16 %v256_v41, %v255_v40 }
  0xc2   :  { %v311_v12 = vsub.f32 1.0, %v299_v4  ;;  %v269_v38 = vld [vmem:[#allocation2 + $0x120] sm:$0xff]  ;;  %v270_v39 = vld [vmem:[#allocation2 + $0x128] sm:$0xff]  ;;  %5918 = vmatpush3.bf16.msra.mxu0 %v5917_v27  ;;  %v5921_v43 = vpack.c.bf16 %v238_v37, %v237_v35  ;;  %v288_v44 = vld [vmem:[#allocation2 + $0x1b8] sm:$0xff] }
  0xc3   :  { %207 = vperm.xlu0 %5998, %v197_v2   ;;  %5950 = vmatpush3.bf16.msra.mxu1 %v5949_v31  ;;  %v5953_v45 = vpack.c.bf16 %v270_v39, %v269_v38  ;;  %v239_v47 = vld [vmem:[#allocation2 + $0x30] sm:$0xff]  ;;  %v240_v48 = vld [vmem:[#allocation2 + $0x38] sm:$0xff]  ;;  %v5955_v50 = vpack.c.bf16 %v288_v44, %v287_v42  ;;  %v257_v52 = vld [vmem:[#allocation2 + $0xc0] sm:$0xff]  ;;  %v198_v42 = vlaneseq }
  0xc4   :  { %315 = vperm.xlu1 %5999, %v311_v12   ;;  %5920 = vmatprep.subr.bf16.mxu0 %v5919_v32  ;;  %v271_v49 = vld [vmem:[#allocation2 + $0x130] sm:$0xff]  ;;  %v272_v51 = vld [vmem:[#allocation2 + $0x138] sm:$0xff]  ;;  %v258_v53 = vld [vmem:[#allocation2 + $0xc8] sm:$0xff]  ;;  %v5925_v56 = vpack.c.bf16 %v240_v48, %v239_v47  ;;  %v6630_v48 = vmov 1.0  }
  0xc5   :  { %5952 = vmatprep.subr.bf16.mxu1 %v5951_v36  ;;  %v289_v54 = vld [vmem:[#allocation2 + $0x1c0] sm:$0xff]  ;;  %v290_v55 = vld [vmem:[#allocation2 + $0x1c8] sm:$0xff]  ;;  %v5957_v57 = vpack.c.bf16 %v272_v51, %v271_v49  ;;  %v5927_v58 = vpack.c.bf16 %v258_v53, %v257_v52  ;;  %v259_v1 = vld [vmem:[#allocation2 + $0xd0] sm:$0xff] }
  0xc6   :  { %5922 = vmatpush3.bf16.msra.mxu0 %v5921_v43  ;;  %v241_v59 = vld [vmem:[#allocation2 + $0x40] sm:$0xff]  ;;  %v242_v60 = vld [vmem:[#allocation2 + $0x48] sm:$0xff]  ;;  %v5959_v62 = vpack.c.bf16 %v290_v55, %v289_v54  ;;  %v260_v2 = vld [vmem:[#allocation2 + $0xd8] sm:$0xff]  ;;  %v199_v43 = vand.u32 127, %v198_v42 }
  0xc7   :  { %327 = vperm.xlu0 %5998, %v299_v4   ;;  %5954 = vmatpush3.bf16.msra.mxu1 %v5953_v45  ;;  %v273_v61 = vld [vmem:[#allocation2 + $0x140] sm:$0xff]  ;;  %v274_v63 = vld [vmem:[#allocation2 + $0x148] sm:$0xff]  ;;  %v291_v3 = vld [vmem:[#allocation2 + $0x1d0] sm:$0xff]  ;;  %v5929_v5 = vpack.c.bf16 %v242_v60, %v241_v59  ;;  %v5931_v8 = vpack.c.bf16 %v260_v2, %v259_v1 }
  0xc8   :  { %5924 = vmatprep.subr.bf16.mxu0 %v5923_v46  ;;  %5956 = vmatprep.subr.bf16.mxu1 %v5955_v50  ;;  %v292_v4 = vld [vmem:[#allocation2 + $0x1d8] sm:$0xff]  ;;  %v243_v6 = vld [vmem:[#allocation2 + $0x50] sm:$0xff]  ;;  %v5961_v7 = vpack.c.bf16 %v274_v63, %v273_v61  ;;  %v261_v13 = vld [vmem:[#allocation2 + $0xe0] sm:$0xff]  ;;  %v200_v44 = vadd.s32 128, %v199_v43  ;;  %v202_v45 = vadd.s32 384, %v199_v43  ;;  %v201_v46 = vadd.s32 256, %v199_v43 }
  0xc9   :  { %v244_v9 = vld [vmem:[#allocation2 + $0x58] sm:$0xff]  ;;  %v275_v10 = vld [vmem:[#allocation2 + $0x150] sm:$0xff]  ;;  %v5963_v12 = vpack.c.bf16 %v292_v4, %v291_v3  ;;  %v262_v14 = vld [vmem:[#allocation2 + $0xe8] sm:$0xff] }
  0xca   :  { %5926 = vmatpush3.bf16.msra.mxu0 %v5925_v56  ;;  %v276_v11 = vld [vmem:[#allocation2 + $0x158] sm:$0xff]  ;;  %v293_v15 = vld [vmem:[#allocation2 + $0x1e0] sm:$0xff]  ;;  %v294_v16 = vld [vmem:[#allocation2 + $0x1e8] sm:$0xff]  ;;  %v5933_v19 = vpack.c.bf16 %v244_v9, %v243_v6  ;;  %v5935_v25 = vpack.c.bf16 %v262_v14, %v261_v13 }
  0xcb   :  { %5958 = vmatpush3.bf16.msra.mxu1 %v5957_v57  ;;  %5928 = vmatprep.subr.bf16.mxu0 %v5927_v58  ;;  %v245_v17 = vld [vmem:[#allocation2 + $0x60] sm:$0xff]  ;;  %v246_v18 = vld [vmem:[#allocation2 + $0x68] sm:$0xff]  ;;  %v263_v22 = vld [vmem:[#allocation2 + $0xf0] sm:$0xff]  ;;  %v5965_v24 = vpack.c.bf16 %v276_v11, %v275_v10  ;;  %v5967_v29 = vpack.c.bf16 %v294_v16, %v293_v15 }
  0xcc   :  { %5960 = vmatprep.subr.bf16.mxu1 %v5959_v62  ;;  %v277_v20 = vld [vmem:[#allocation2 + $0x160] sm:$0xff]  ;;  %v278_v21 = vld [vmem:[#allocation2 + $0x168] sm:$0xff]  ;;  %v264_v23 = vld [vmem:[#allocation2 + $0xf8] sm:$0xff]  ;;  %v5937_v33 = vpack.c.bf16 %v246_v18, %v245_v17 }
  0xcd   :  { %v295_v26 = vld [vmem:[#allocation2 + $0x1f0] sm:$0xff]  ;;  %v296_v27 = vld [vmem:[#allocation2 + $0x1f8] sm:$0xff]  ;;  %v298_v28 = vld [vmem:[%s7665_s16 + $0x8] sm:$0xff]  ;;  %v5969_v37 = vpack.c.bf16 %v278_v21, %v277_v20  ;;  %v5939_v38 = vpack.c.bf16 %v264_v23, %v263_v22  ;;  %v6631_v20 = vmov 0.0  }
  0xce   :  { %5930 = vmatpush3.bf16.msra.mxu0 %v5929_v5  ;;  %v300_v30 = vcvt.s32.f32 %v298_v28  ;;  %v247_v31 = vld [vmem:[#allocation2 + $0x70] sm:$0xff]  ;;  %v248_v32 = vld [vmem:[#allocation2 + $0x78] sm:$0xff]  ;;  %v5971_v39 = vpack.c.bf16 %v296_v27, %v295_v26  ;;  %v5019_v52 = vld [vmem:[%s7666_s8] ss:$0 sm:$0xff] }
  0xcf   :  { %5962 = vmatpush3.bf16.msra.mxu1 %v5961_v7  ;;  %5932 = vmatprep.subr.bf16.mxu0 %v5931_v8  ;;  %v279_v34 = vld [vmem:[#allocation2 + $0x170] sm:$0xff]  ;;  %v280_v35 = vld [vmem:[#allocation2 + $0x178] sm:$0xff]  ;;  %v5941_v40 = vpack.c.bf16 %v248_v32, %v247_v31  ;;  %v5020_v53 = vld [vmem:[%s7666_s8 + $0x1] ss:$0 sm:$0xff]  ;;  %s7671_s8 = sld [smem:[#allocation30_spill]] }
  0xd0   :  { %5964 = vmatprep.subr.bf16.mxu1 %v5963_v12  ;;  %v312_v36 = vsub.f32 1.0, %v300_v30  ;;  %v5973_v41 = vpack.c.bf16 %v280_v35, %v279_v34  ;;  %v339_v59 = vld [vmem:[%s7667_s29] sm:$0xff]  ;;  %v6033_v21 = vld [vmem:[#allocation4 + $0x8] ss:$12 sps:$4 sm:$0xff]   ;;  %v6038_v34 = vld [vmem:[#allocation4 + $0x30] ss:$12 sps:$4 sm:$0xff]  }
  0xd1   :  { %v6030_v18 = vld [vmem:[#allocation4] ss:$12 sps:$4 sm:$0xff]   ;;  %v6036_v22 = vld [vmem:[#allocation4 + $0x1c] ss:$12 sps:$4 sm:$0xff]   ;;  %v6034_v23 = vld [vmem:[#allocation4 + $0x18] ss:$12 sps:$4 sm:$0xff]  }
  0xd2   :  { %5934 = vmatpush3.bf16.msra.mxu0 %v5933_v19  ;;  %320 = vperm.xlu1 %5999, %v312_v36   ;;  %v6032_v19 = vld [vmem:[#allocation4 + $0x4] ss:$12 sps:$4 sm:$0xff]   ;;  %v6037_v32 = vld [vmem:[#allocation4 + $0x20] ss:$12 sps:$4 sm:$0xff]  }
  0xd3   :  { %5966 = vmatpush3.bf16.msra.mxu1 %v5965_v24  ;;  %5936 = vmatprep.subr.bf16.mxu0 %v5935_v25  ;;  %v6041_v35 = vld [vmem:[#allocation4 + $0x38] ss:$12 sps:$4 sm:$0xff]  }
  0xd4   :  { %5968 = vmatprep.subr.bf16.mxu1 %v5967_v29  ;;  %v6044_v36 = vld [vmem:[#allocation4 + $0x4c] ss:$12 sps:$4 sm:$0xff]  }
  0xd6   :  { %5938 = vmatpush3.bf16.msra.mxu0 %v5937_v33  ;;  %332 = vperm.xlu1 %5999, %v300_v30   ;;  %v6040_v33 = vld [vmem:[#allocation4 + $0x34] ss:$12 sps:$4 sm:$0xff]  }
  0xd7   :  { %5970 = vmatpush3.bf16.msra.mxu1 %v5969_v37  ;;  %5940 = vmatprep.subr.bf16.mxu0 %v5939_v38  ;;  %v6042_v37 = vld [vmem:[#allocation4 + $0x48] ss:$12 sps:$4 sm:$0xff]   ;;  %v6045_v38 = vld [vmem:[#allocation4 + $0x50] ss:$12 sps:$4 sm:$0xff]  }
  0xd8   :  { %5972 = vmatprep.subr.bf16.mxu1 %v5971_v39  ;;  %v6048_v39 = vld [vmem:[#allocation4 + $0x64] ss:$12 sps:$4 sm:$0xff]  }
  0xda   :  { %5942 = vmatpush3.bf16.msra.mxu0 %v5941_v40  ;;  %v6046_v40 = vld [vmem:[#allocation4 + $0x60] ss:$12 sps:$4 sm:$0xff]  }
  0xdb   :  { %5974 = vmatpush3.bf16.msra.mxu1 %v5973_v41  ;;  %729 = vmatprep.subr.bf16.mxu0 %v6032_v19  ;;  %v6049_v41 = vld [vmem:[#allocation4 + $0x68] ss:$12 sps:$4 sm:$0xff]  }
  0xdc   :  { %5599 = vmatprep.subr.bf16.mxu1 %v6631_v20 }
 0x13e   :  { %v205_v47 = vpop.permute.xlu0 %204 }
 0x13f   :  { %vm210_vm0 = vcmp.eq.s32.totalorder %v200_v44, %v205_v47  ;;  %vm212_vm1 = vcmp.eq.s32.totalorder %v202_v45, %v205_v47  ;;  %vm209_vm2 = vcmp.eq.s32.totalorder %v199_v43, %v205_v47  ;;  %vm211_vm3 = vcmp.eq.s32.totalorder %v201_v46, %v205_v47  ;;  %v6054_v47 = vld [vmem:[#allocation4 + $0x90] ss:$12 sps:$4 sm:$0xff]  }
 0x140   :  { %5021 = vmatprep.mubr.msk.f32.mxu0 %vm210_vm0, %v6630_v48  ;;  %5025 = vmatprep.mubr.msk.f32.mxu1 %vm212_vm1, %v6630_v48 }
 0x141   :  { %5022 = vmatmul.mubr.msk.f32.vlgmr.msra.gmra.mrb[0].mxu0 %vm209_vm2, %v6630_v48  ;;  %5026 = vmatmul.mubr.msk.f32.vlgmr.msra.gmra.mrb[0].mxu1 %vm211_vm3, %v6630_v48 }
 0x142   :  { %v208_v49 = vpop.permute.xlu0 %207  ;;  %730 = vmatpush1.bf16.msra.mxu0 %v6030_v18  ;;  %5600 = vmatpush3.bf16.msra.mxu1 %v6033_v21 }
 0x143   :  { %vm214_vm4 = vcmp.eq.s32.totalorder %v200_v44, %v208_v49  ;;  %vm216_vm5 = vcmp.eq.s32.totalorder %v202_v45, %v208_v49  ;;  %vm213_vm6 = vcmp.eq.s32.totalorder %v199_v43, %v208_v49  ;;  %vm215_vm7 = vcmp.eq.s32.totalorder %v201_v46, %v208_v49  ;;  %v316_v50 = vpop.permute.xlu1 %315  ;;  %731 = vmatprep.subr.bf16.mxu0 %v6036_v22  ;;  %v6052_v43 = vld [vmem:[#allocation4 + $0x7c] ss:$12 sps:$4 sm:$0xff]   ;;  %v6050_v44 = vld [vmem:[#allocation4 + $0x78] ss:$12 sps:$4 sm:$0xff]   ;;  %v6053_v45 = vld [vmem:[#allocation4 + $0x80] ss:$12 sps:$4 sm:$0xff]  }
 0x144   :  { %5023 = vmatprep.mubr.msk.f32.mxu0 %vm214_vm4, %v6630_v48  ;;  %5027 = vmatprep.mubr.msk.f32.mxu1 %vm216_vm5, %v6630_v48  ;;  %v323_v57 = vmul.f32 %v5019_v52, %v316_v50  ;;  %v6056_v46 = vld [vmem:[#allocation4 + $0x94] ss:$12 sps:$4 sm:$0xff]   ;;  %v6060_v50 = vld [vmem:[#allocation4 + $0xac] ss:$12 sps:$4 sm:$0xff]  }
 0x145   :  { %5024 = vmatmul.mubr.msk.f32.gmra.mrb[2].mxu0 %vm213_vm6, %v6630_v48  ;;  %5028 = vmatmul.mubr.msk.f32.gmra.mrb[2].mxu1 %vm215_vm7, %v6630_v48  ;;  %v6057_v48 = vld [vmem:[#allocation4 + $0x98] ss:$12 sps:$4 sm:$0xff]   ;;  %v6058_v49 = vld [vmem:[#allocation4 + $0xa8] ss:$12 sps:$4 sm:$0xff]  }
 0x146   :  { %761 = vmatprep.mubr.bf16.mxu0 %v6629_v0  ;;  %v328_v54 = vpop.permute.xlu0 %327  ;;  %5601 = vmatprep.subr.bf16.mxu1 %v6631_v20 }
 0x147   :  { %v335_v58 = vmul.f32 %v5020_v53, %v328_v54  ;;  %732 = vmatpush1.bf16.msra.mxu0 %v6034_v23  ;;  %5602 = vmatpush3.bf16.msra.mxu1 %v6037_v32 }
 0x148   :  { %5603 = vmatprep.subr.bf16.mxu1 %v6631_v20  ;;  %733 = vmatprep.subr.bf16.mxu0 %v6040_v33 }
 0x149   :  { %v337_v5 = vadd.f32 %v335_v58, %v323_v57  ;;  %5615 = vmatprep.mubr.msk.bf16.mxu1 %vm6632_vm8, %v6631_v20 }
 0x14b   :  { %734 = vmatpush1.bf16.msra.mxu0 %v6038_v34  ;;  %5604 = vmatpush3.bf16.msra.mxu1 %v6041_v35 }
 0x14c   :  { %5605 = vmatprep.subr.bf16.mxu1 %v6631_v20  ;;  %735 = vmatprep.subr.bf16.mxu0 %v6044_v36 }
 0x14f   :  { %736 = vmatpush1.bf16.msra.mxu0 %v6042_v37  ;;  %5606 = vmatpush3.bf16.msra.mxu1 %v6045_v38  ;;  %v533_v38 = vld [vmem:[%s7670_s20] sm:$0x1] }
 0x150   :  { %5607 = vmatprep.subr.bf16.mxu1 %v6631_v20  ;;  %737 = vmatprep.subr.bf16.mxu0 %v6048_v39  ;;  %v535_v39 = vsub.f32 1.0, %v533_v38 }
 0x151   :  { %v321_v51 = vpop.permute.xlu1 %320 }
 0x152   :  { %v324_v6 = vmul.f32 %v5019_v52, %v321_v51  ;;  %v6061_v51 = vld [vmem:[#allocation4 + $0xb0] ss:$12 sps:$4 sm:$0xff]  }
 0x153   :  { %738 = vmatpush1.bf16.msra.mxu0 %v6046_v40  ;;  %5608 = vmatpush3.bf16.msra.mxu1 %v6049_v41  ;;  %v537_v40 = vmul.f32 -1e+09, %v535_v39  ;;  %v534_v41 = vld [vmem:[%s7670_s20 + $0x1] sm:$0x1] }
 0x154   :  { %5609 = vmatprep.subr.bf16.mxu1 %v6631_v20  ;;  %739 = vmatprep.subr.bf16.mxu0 %v6052_v43 }
 0x155   :  { %v333_v1 = vpop.permute.xlu1 %332 }
 0x156   :  { %v336_v9 = vmul.f32 %v5020_v53, %v333_v1  ;;  %v5030_v1 = vld [vmem:[%s7669_s28] ss:$0 sm:$0xff] }
 0x157   :  { %740 = vmatpush1.bf16.msra.mxu0 %v6050_v44  ;;  %5610 = vmatpush3.bf16.msra.mxu1 %v6053_v45  ;;  %v536_v44 = vsub.f32 1.0, %v534_v41 }
 0x158   :  { %v338_v15 = vadd.f32 %v336_v9, %v324_v6  ;;  %5611 = vmatprep.subr.bf16.mxu1 %v6631_v20  ;;  %741 = vmatprep.subr.bf16.mxu0 %v6056_v46  ;;  %v6951_v6 = vshrl.u32 %v198_v42, 7 }
 0x15a   :  { %v6960_v9 = vsub.s32 0, %v6951_v6 }
 0x15b   :  { %742 = vmatpush1.bf16.msra.mxu0 %v6054_v47  ;;  %5612 = vmatpush3.bf16.msra.mxu1 %v6057_v48  ;;  %v538_v48 = vmul.f32 -1e+09, %v536_v44 }
 0x15c   :  { %5613 = vmatprep.subr.bf16.mxu1 %v6631_v20  ;;  %743 = vmatprep.subr.bf16.mxu0 %v6060_v50  ;;  %v7004_v43 = vrot.slane %v537_v40, %v6960_v9 }
 0x15f   :  { %744 = vmatpush1.bf16.msra.mxu0 %v6058_v49  ;;  %5614 = vmatpush3.bf16.msra.mxu1 %v6061_v51 }
 0x160   :  { %5619 = vmatprep.subr.bf16.mxu1 %v6631_v20  ;;  %5643 = vmatprep.subr.bf16.mxu0 %v6631_v20 }
 0x214   :  { %v5349_v55 = vpop.f32.mrb[0].mxu0  ;;  %v5387_v56 = vpop.f32.mrb[0].mxu1 }
 0x215   :  { %v5350_v60 = vpop.f32.mrb[1].mxu0  ;;  %v5388_v61 = vpop.f32.mrb[1].mxu1 }
 0x216   :  { %v5351_v62 = vadd.f32 %v5350_v60, %v5349_v55  ;;  %v5389_v63 = vadd.f32 %v5388_v61, %v5387_v56  ;;  %v5029_v60 = vld [vmem:[%s7668_s21] ss:$0 sm:$0xff] }
 0x218   :  { %v407_v2 = vadd.f32 %v5351_v62, %v339_v59  ;;  %v5352_v3 = vpop.f32.mrb[2].mxu0  ;;  %v5390_v4 = vpop.f32.mrb[2].mxu1 }
 0x219   :  { %v5353_v7 = vpop.f32.mrb[3].mxu0  ;;  %v5391_v8 = vpop.f32.mrb[3].mxu1 }
 0x21a   :  { %v482_v10 = vadd.f32 %v5389_v63, %v407_v2  ;;  %v5354_v11 = vadd.f32 %v5353_v7, %v5352_v3  ;;  %v5392_v12 = vadd.f32 %v5391_v8, %v5390_v4  ;;  %v6954_v7 = vsub.s32 1, %v6951_v6  ;;  %v584_v8 = vld [vmem:[%s7630_s9] sm:$0x7] }
 0x21c   :  { %v412_v13 = vadd.f32 %v5354_v11, %v339_v59  ;;  %v490_v14 = vadd.f32 %v482_v10, %v337_v5  ;;  %v6963_v10 = vsub.s32 2, %v6951_v6  ;;  %v593_v11 = vrot.slane %v584_v8, %v6954_v7 }
 0x21e   :  { %v487_v16 = vadd.f32 %v5392_v12, %v412_v13  ;;  %494 = vadd.xlane.f32.xlu0 %v490_v14  ;;  %v589_v12 = vrot.slane %v584_v8, %v6960_v9 }
 0x220   :  { %v491_v17 = vadd.f32 %v487_v16, %v338_v15 }
 0x222   :  { %496 = vadd.xlane.f32.xlu1 %v491_v17 }
 0x2ab   :  { %v495_v24 = vpop.xlane.xlu0 %494 }
 0x2ac   :  { %v499_v25 = vmul.f32 0.0078125, %v495_v24 }
 0x2ae   :  { %v6914_v26 = vsub.f32 %v490_v14, %v499_v25  ;;  %v597_v14 = vrot.slane %v584_v8, %v6963_v10 }
 0x2af   :  { %v497_v27 = vpop.xlane.xlu1 %496 }
 0x2b0   :  { %v500_v28 = vmul.f32 0.0078125, %v497_v27  ;;  %v503_v29 = vmul.f32 %v6914_v26, %v6914_v26 }
 0x2b2   :  { %v6918_v30 = vsub.f32 %v491_v17, %v500_v28  ;;  %505 = vadd.xlane.f32.xlu0 %v503_v29 }
 0x2b4   :  { %v504_v31 = vmul.f32 %v6918_v30, %v6918_v30 }
 0x2b6   :  { %507 = vadd.xlane.f32.xlu0 %v504_v31 }
 0x33f   :  { %v506_v52 = vpop.xlane.xlu0 %505 }
 0x340   :  { %v509_v53 = vmul.f32 0.0078125, %v506_v52  ;;  %v7009_v52 = vrot.slane %v538_v48, %v6960_v9 }
 0x342   :  { %v511_v54 = vadd.f32 1e-12, %v509_v53 }
 0x343   :  { %v508_v55 = vpop.xlane.xlu0 %507 }
 0x344   :  { %6286 = vrsqrt.f32 %v511_v54  ;;  %v510_v56 = vmul.f32 0.0078125, %v508_v55 }
 0x346   :  { %v512_v57 = vadd.f32 1e-12, %v510_v56 }
 0x348   :  { %6288 = vrsqrt.f32 %v512_v57 }
 0x34e   :  { %v6287_v58 = vpop.eup %6286 }
 0x34f   :  { %v515_v59 = vmul.f32 %v6287_v58, %v6914_v26 }
 0x351   :  { %v523_v62 = vmul.f32 %v5029_v60, %v515_v59 }
 0x352   :  { %v6289_v61 = vpop.eup %6288 }
 0x353   :  { %v516_v63 = vmul.f32 %v6289_v61, %v6918_v30  ;;  %v6940_v3 = vadd.f32 %v5030_v1, %v523_v62 }
 0x355   :  { %v524_v2 = vmul.f32 %v5029_v60, %v516_v63 }
 0x357   :  { %v6942_v4 = vadd.f32 %v5030_v1, %v524_v2 }
 0x359   :  { %v551_v5 = vpack.c.bf16 %v6942_v4, %v6940_v3 }
 0x35b   :  { %762 = vmatmul.mubr.bf16.vlgmr.msra.gmra.mrb[4].mxu0 %v551_v5  ;;  %5616 = vmatmul.mubr.bf16.vlgmr.msra.gmra.mrb[4].mxu1 %v551_v5 }
 0x35c   :  { %5621 = vmatprep.mubr.msk.bf16.mxu1 %vm6632_vm8, %v6631_v20  ;;  %5645 = vmatprep.mubr.msk.bf16.mxu0 %vm6632_vm8, %v6631_v20 }
 0x42e   :  { %v763_v13 = vpop.f32.mrb[4].mxu0  ;;  %v806_v42 = vpop.f32.mrb[4].mxu1 }
 0x42f   :  { %v765_v15 = vpop.f32.mrb[5].mxu0  ;;  %v5617_v16 = vpop.f32.mrb[5].mxu1  ;;  %v764_v24 = vadd.f32 %v763_v13, %v589_v12  ;;  %v807_v32 = vadd.f32 %v806_v42, %v597_v14 }
 0x430   :  { %v766_v17 = vadd.f32 %v765_v15, %v593_v11  ;;  %v767_v18 = vpop.f32.mrb[6].mxu0  ;;  %v809_v19 = vpop.f32.mrb[6].mxu1 }
 0x431   :  { %v6968_v21 = vadd.f32 %v809_v19, %v597_v14  ;;  %v769_v22 = vpop.f32.mrb[7].mxu0  ;;  %v5618_v23 = vpop.f32.mrb[7].mxu1  ;;  %v813_v28 = vmul.f32 0.17677669, %v764_v24  ;;  %v768_v31 = vadd.f32 %v767_v18, %v589_v12  ;;  %v6986_v35 = vpack.c.bf16 %v807_v32, %v807_v32 }
 0x432   :  { %v6970_v25 = vpack.c.bf16 %v766_v17, %v766_v17  ;;  %v770_v26 = vadd.f32 %v769_v22, %v593_v11 }
 0x433   :  { %v6977_v30 = vpack.c.bf16 %v813_v28, %v813_v28  ;;  %v814_v34 = vmul.f32 0.17677669, %v768_v31  ;;  %v956_v37 = vsel %vm954_vm10, %v6986_v35, 0  ;;  %v7027_v16 = vpack.c.bf16 %v6968_v21, %v6968_v21 }
 0x434   :  { %v838_v27 = vsel %vm833_vm9, %v6970_v25, 0  ;;  %v6975_v29 = vpack.c.bf16 %v770_v26, %v770_v26 }
 0x435   :  { %5620 = vmatpush3.bf16.xpose.msra.mxu1 %v838_v27  ;;  %v6988_v36 = vpack.c.bf16 %v814_v34, %v814_v34  ;;  %v1002_v22 = vsel %vm954_vm10, %v7027_v16, 0 }
 0x436   :  { %5625 = vmatprep.subr.bf16.mxu1 %v6631_v20  ;;  %v884_v33 = vsel %vm833_vm9, %v6975_v29, 0 }
 0x43c   :  { %5622 = vmatmul.mubr.msk.bf16.vlgmr.msra.gmra.mrb[8].mxu1 %vm833_vm9, %v6977_v30 }
 0x43d   :  { %5626 = vmatpush3.bf16.xpose.msra.mxu1 %v884_v33  ;;  %5627 = vmatprep.mubr.msk.bf16.mxu1 %vm6632_vm8, %v6631_v20 }
 0x43e   :  { %5631 = vmatprep.subr.bf16.mxu1 %v6631_v20 }
 0x444   :  { %5628 = vmatmul.mubr.msk.bf16.vlgmr.msra.gmra.mrb[12].mxu1 %vm833_vm9, %v6988_v36 }
 0x445   :  { %5632 = vmatpush3.bf16.msra.mxu1 %v956_v37  ;;  %5633 = vmatprep.mubr.msk.bf16.mxu1 %vm6632_vm8, %v6631_v20 }
 0x446   :  { %5637 = vmatprep.subr.bf16.mxu1 %v6631_v20 }
 0x50f   :  { %v874_v45 = vpop.f32.mrb[8].mxu1 }
 0x510   :  { %v875_v46 = vadd.f32 %v874_v45, %v7004_v43  ;;  %v5623_v47 = vpop.f32.mrb[9].mxu1 }
 0x511   :  { %v877_v49 = vpop.f32.mrb[10].mxu1 }
 0x512   :  { %v5624_v50 = vpop.f32.mrb[11].mxu1  ;;  %v927_v51 = vsel %vm926_vm11, %v875_v46, -inf }
 0x513   :  { %928 = vmax.xlane.f32.xlu1 %v927_v51 }
 0x517   :  { %v920_v53 = vpop.f32.mrb[12].mxu1 }
 0x518   :  { %v921_v54 = vadd.f32 %v920_v53, %v7009_v52  ;;  %v5629_v55 = vpop.f32.mrb[13].mxu1 }
 0x519   :  { %v923_v56 = vpop.f32.mrb[14].mxu1 }
 0x51a   :  { %v5630_v57 = vpop.f32.mrb[15].mxu1  ;;  %v930_v58 = vsel %vm926_vm11, %v921_v54, -inf }
 0x51b   :  { %931 = vmax.xlane.f32.xlu0 %v930_v58 }
 0x5a0   :  { %v929_v59 = vpop.xlane.xlu1 %928 }
 0x5a1   :  { %v933_v60 = vsub.f32 %v875_v46, %v929_v59 }
 0x5a3   :  { %v935_v61 = vmul.f32 1.442695, %v933_v60 }
 0x5a5   :  { %6290 = vpow2.f32 %v935_v61 }
 0x5a8   :  { %v932_v62 = vpop.xlane.xlu0 %931 }
 0x5a9   :  { %v934_v63 = vsub.f32 %v921_v54, %v932_v62 }
 0x5ab   :  { %v937_v1 = vmul.f32 1.442695, %v934_v63 }
 0x5ad   :  { %6292 = vpow2.f32 %v937_v1 }
 0x5af   :  { %v6291_v2 = vpop.eup %6290 }
 0x5b0   :  { %v939_v5 = vsel %vm926_vm11, %v6291_v2, 0.0 }
 0x5b1   :  { %940 = vadd.xlane.f32.xlu1 %v939_v5 }
 0x5b7   :  { %v6293_v8 = vpop.eup %6292 }
 0x5b8   :  { %v942_v11 = vsel %vm926_vm11, %v6293_v8, 0.0 }
 0x5b9   :  { %943 = vadd.xlane.f32.xlu0 %v942_v11 }
 0x5c2   :  { %1046 = vrot.lane.b32.xlu1 %v6970_v25, %s6633_s14 }
 0x5c6   :  { %1044 = vrot.lane.b32.xlu1 %v6977_v30, %s6633_s14 }
 0x5ca   :  { %1094 = vrot.lane.b32.xlu1 %v6988_v36, %s6633_s14 }
 0x5cf   :  { %1096 = vrot.lane.b32.xlu0 %v6975_v29, %s6633_s14 }
 0x63e   :  { %v941_v12 = vpop.xlane.xlu1 %940 }
 0x63f   :  { %6294 = vrcp.f32 %v941_v12 }
 0x642   :  { %v1047_v13 = vpop.permute.xlu1 %1046 }
 0x643   :  { %v1052_v42 = vsel %vm833_vm9, %v1047_v13, 0 }
 0x644   :  { %5644 = vmatpush3.bf16.xpose.msra.mxu0 %v1052_v42 }
 0x645   :  { %5655 = vmatprep.subr.bf16.mxu0 %v6631_v20 }
 0x646   :  { %v944_v14 = vpop.xlane.xlu0 %943  ;;  %v1045_v18 = vpop.permute.xlu1 %1044 }
 0x647   :  { %6296 = vrcp.f32 %v944_v14 }
 0x649   :  { %v6295_v15 = vpop.eup %6294 }
 0x64a   :  { %v947_v17 = vmul.f32 %v6295_v15, %v6291_v2  ;;  %v1097_v24 = vpop.permute.xlu0 %1096  ;;  %v1095_v28 = vpop.permute.xlu1 %1094 }
 0x64b   :  { %5646 = vmatmul.mubr.msk.bf16.vlgmr.msra.gmra.mrb[8].mxu0 %vm833_vm9, %v1045_v18  ;;  %v1102_v27 = vsel %vm833_vm9, %v1097_v24, 0 }
 0x64c   :  { %v949_v19 = vpack.c.bf16 %v947_v17, %v947_v17  ;;  %5657 = vmatprep.mubr.msk.bf16.mxu0 %vm6632_vm8, %v6631_v20 }
 0x64e   :  { %5634 = vmatmul.mubr.msk.bf16.vlgmr.msra.gmra.mrb[16].mxu1 %vm926_vm11, %v949_v19 }
 0x64f   :  { %5638 = vmatpush3.bf16.msra.mxu1 %v1002_v22  ;;  %5639 = vmatprep.mubr.msk.bf16.mxu1 %vm6632_vm8, %v6631_v20 }
 0x650   :  { %5649 = vmatprep.subr.bf16.mxu1 %v6631_v20 }
 0x651   :  { %v6297_v21 = vpop.eup %6296 }
 0x652   :  { %v948_v23 = vmul.f32 %v6297_v21, %v6293_v8 }
 0x654   :  { %v950_v26 = vpack.c.bf16 %v948_v23, %v948_v23 }
 0x656   :  { %5640 = vmatmul.mubr.msk.bf16.vlgmr.msra.gmra.mrb[20].mxu1 %vm926_vm11, %v950_v26 }
 0x657   :  { %5651 = vmatprep.mubr.msk.bf16.mxu1 %vm6632_vm8, %v6631_v20 }
 0x658   :  { %5650 = vmatpush3.bf16.xpose.msra.mxu1 %v1102_v27 }
 0x659   :  { %5661 = vmatprep.subr.bf16.mxu1 %v6631_v20 }
 0x65f   :  { %5652 = vmatmul.mubr.msk.bf16.vlgmr.msra.gmra.mrb[24].mxu1 %vm833_vm9, %v1095_v28 }
 0x660   :  { %5663 = vmatprep.mubr.msk.bf16.mxu1 %vm6632_vm8, %v6631_v20 }
 0x71e   :  { %v1088_v31 = vpop.f32.mrb[8].mxu0 }
 0x71f   :  { %v1089_v32 = vadd.f32 %v1088_v31, %v7004_v43  ;;  %v5647_v33 = vpop.f32.mrb[9].mxu0 }
 0x720   :  { %v1091_v34 = vpop.f32.mrb[10].mxu0 }
 0x721   :  { %v7047_v37 = vpop.f32.mrb[16].mxu1  ;;  %v5648_v38 = vpop.f32.mrb[11].mxu0  ;;  %v1144_v39 = vsel %vm926_vm11, %v1089_v32, -inf }
 0x722   :  { %1145 = vmax.xlane.f32.xlu0 %v1144_v39  ;;  %v5635_v40 = vpop.f32.mrb[17].mxu1 }
 0x723   :  { %v995_v41 = vpop.f32.mrb[18].mxu1 }
 0x724   :  { %v5636_v44 = vpop.f32.mrb[19].mxu1 }
 0x729   :  { %v7050_v45 = vpop.f32.mrb[20].mxu1 }
 0x72a   :  { %v5641_v46 = vpop.f32.mrb[21].mxu1 }
 0x72b   :  { %v1041_v47 = vpop.f32.mrb[22].mxu1 }
 0x72c   :  { %v5642_v48 = vpop.f32.mrb[23].mxu1 }
 0x732   :  { %v1138_v49 = vpop.f32.mrb[24].mxu1 }
 0x733   :  { %v1139_v50 = vadd.f32 %v1138_v49, %v7009_v52  ;;  %v5653_v51 = vpop.f32.mrb[25].mxu1 }
 0x734   :  { %v1141_v53 = vpop.f32.mrb[26].mxu1 }
 0x735   :  { %v5654_v54 = vpop.f32.mrb[27].mxu1  ;;  %v1147_v55 = vsel %vm926_vm11, %v1139_v50, -inf }
 0x736   :  { %1148 = vmax.xlane.f32.xlu1 %v1147_v55 }
 0x747   :  { %1168 = vrot.lane.b32.xlu1 %v6986_v35, %s6633_s14 }
 0x74b   :  { %1266 = vrot.lane.b32.xlu1 %v6970_v25, %s6620_s27 }
 0x74f   :  { %1316 = vrot.lane.b32.xlu1 %v6975_v29, %s6620_s27 }
 0x753   :  { %1314 = vrot.lane.b32.xlu1 %v6988_v36, %s6620_s27 }
 0x7af   :  { %v1146_v56 = vpop.xlane.xlu0 %1145 }
 0x7b0   :  { %v1150_v57 = vsub.f32 %v1089_v32, %v1146_v56 }
 0x7b2   :  { %v1152_v58 = vmul.f32 1.442695, %v1150_v57 }
 0x7b4   :  { %6298 = vpow2.f32 %v1152_v58 }
 0x7be   :  { %v6299_v59 = vpop.eup %6298 }
 0x7bf   :  { %v1156_v60 = vsel %vm926_vm11, %v6299_v59, 0.0 }
 0x7c0   :  { %1157 = vadd.xlane.f32.xlu0 %v1156_v60 }
 0x7c3   :  { %v1149_v61 = vpop.xlane.xlu1 %1148 }
 0x7c4   :  { %v1151_v62 = vsub.f32 %v1139_v50, %v1149_v61 }
 0x7c6   :  { %v1154_v63 = vmul.f32 1.442695, %v1151_v62 }
 0x7c7   :  { %v1169_v1 = vpop.permute.xlu1 %1168 }
 0x7c8   :  { %6300 = vpow2.f32 %v1154_v63  ;;  %v1174_v2 = vsel %vm954_vm10, %v1169_v1, 0 }
 0x7c9   :  { %5656 = vmatpush3.bf16.msra.mxu0 %v1174_v2 }
 0x7ca   :  { %5667 = vmatprep.subr.bf16.mxu0 %v6631_v20 }
 0x7cb   :  { %v1267_v42 = vpop.permute.xlu1 %1266 }
 0x7cc   :  { %v1272_v15 = vsel %vm833_vm9, %v1267_v42, 0 }
 0x7cf   :  { %v1317_v24 = vpop.permute.xlu1 %1316 }
 0x7d0   :  { %v1322_v27 = vsel %vm833_vm9, %v1317_v24, 0 }
 0x7d2   :  { %v6301_v5 = vpop.eup %6300 }
 0x7d3   :  { %v1159_v8 = vsel %vm926_vm11, %v6301_v5, 0.0  ;;  %v1315_v28 = vpop.permute.xlu1 %1314 }
 0x7d4   :  { %1160 = vadd.xlane.f32.xlu0 %v1159_v8 }
 0x7ea   :  { %1216 = vrot.lane.b32.xlu0 %v7027_v16, %s6633_s14 }
 0x7ee   :  { %1264 = vrot.lane.b32.xlu0 %v6977_v30, %s6620_s27 }
 0x84d   :  { %v1158_v11 = vpop.xlane.xlu0 %1157 }
 0x84e   :  { %6302 = vrcp.f32 %v1158_v11 }
 0x858   :  { %v6303_v12 = vpop.eup %6302 }
 0x859   :  { %v1164_v13 = vmul.f32 %v6303_v12, %v6299_v59 }
 0x85b   :  { %v1166_v14 = vpack.c.bf16 %v1164_v13, %v1164_v13 }
 0x85d   :  { %5658 = vmatmul.mubr.msk.bf16.vlgmr.msra.gmra.mrb[12].mxu0 %vm926_vm11, %v1166_v14 }
 0x85e   :  { %5668 = vmatpush3.bf16.xpose.msra.mxu0 %v1272_v15  ;;  %5669 = vmatprep.mubr.msk.bf16.mxu0 %vm6632_vm8, %v6631_v20 }
 0x85f   :  { %5679 = vmatprep.subr.bf16.mxu0 %v6631_v20 }
 0x861   :  { %v1161_v17 = vpop.xlane.xlu0 %1160 }
 0x862   :  { %6304 = vrcp.f32 %v1161_v17 }
 0x865   :  { %v1217_v18 = vpop.permute.xlu0 %1216 }
 0x866   :  { %v1222_v19 = vsel %vm954_vm10, %v1217_v18, 0 }
 0x867   :  { %5662 = vmatpush3.bf16.msra.mxu1 %v1222_v19 }
 0x868   :  { %5673 = vmatprep.subr.bf16.mxu1 %v6631_v20 }
 0x869   :  { %v1265_v22 = vpop.permute.xlu0 %1264 }
 0x86a   :  { %5670 = vmatmul.mubr.msk.bf16.vlgmr.msra.gmra.mrb[16].mxu0 %vm833_vm9, %v1265_v22 }
 0x86b   :  { %5681 = vmatprep.mubr.msk.bf16.mxu0 %vm6632_vm8, %v6631_v20 }
 0x86c   :  { %v6305_v21 = vpop.eup %6304 }
 0x86d   :  { %v1165_v23 = vmul.f32 %v6305_v21, %v6301_v5 }
 0x86f   :  { %v1167_v26 = vpack.c.bf16 %v1165_v23, %v1165_v23 }
 0x871   :  { %5664 = vmatmul.mubr.msk.bf16.vlgmr.msra.gmra.mrb[28].mxu1 %vm926_vm11, %v1167_v26 }
 0x872   :  { %5674 = vmatpush3.bf16.xpose.msra.mxu1 %v1322_v27  ;;  %5675 = vmatprep.mubr.msk.bf16.mxu1 %vm6632_vm8, %v6631_v20 }
 0x873   :  { %5685 = vmatprep.subr.bf16.mxu1 %v6631_v20 }
 0x879   :  { %5676 = vmatmul.mubr.msk.bf16.vlgmr.msra.gmra.mrb[32].mxu1 %vm833_vm9, %v1315_v28 }
 0x87a   :  { %5687 = vmatprep.mubr.msk.bf16.mxu1 %vm6632_vm8, %v6631_v20 }
 0x930   :  { %v7088_v31 = vpop.f32.mrb[12].mxu0 }
 0x931   :  { %v5659_v32 = vpop.f32.mrb[13].mxu0 }
 0x932   :  { %v1213_v33 = vpop.f32.mrb[14].mxu0 }
 0x933   :  { %v5660_v34 = vpop.f32.mrb[15].mxu0 }
 0x93d   :  { %v1308_v38 = vpop.f32.mrb[16].mxu0 }
 0x93e   :  { %v1309_v39 = vadd.f32 %v1308_v38, %v7004_v43  ;;  %v5671_v40 = vpop.f32.mrb[17].mxu0 }
 0x93f   :  { %v1311_v41 = vpop.f32.mrb[18].mxu0 }
 0x940   :  { %v5672_v44 = vpop.f32.mrb[19].mxu0  ;;  %v1364_v46 = vsel %vm926_vm11, %v1309_v39, -inf }
 0x941   :  { %1365 = vmax.xlane.f32.xlu0 %v1364_v46 }
 0x944   :  { %v7092_v47 = vpop.f32.mrb[28].mxu1 }
 0x945   :  { %v6000_v48 = vpack.i.bf16 %v7092_v47, %v7088_v31  ;;  %v5665_v49 = vpop.f32.mrb[29].mxu1 }
 0x946   :  { %v1261_v50 = vpop.f32.mrb[30].mxu1 }
 0x947   :  { %v5666_v51 = vpop.f32.mrb[31].mxu1 }
 0x94c   :  { %v1358_v53 = vpop.f32.mrb[32].mxu1 }
 0x94d   :  { %v1359_v54 = vadd.f32 %v1358_v53, %v7009_v52  ;;  %v5677_v55 = vpop.f32.mrb[33].mxu1 }
 0x94e   :  { %v1361_v56 = vpop.f32.mrb[34].mxu1 }
 0x94f   :  { %v5678_v57 = vpop.f32.mrb[35].mxu1  ;;  %v1367_v58 = vsel %vm926_vm11, %v1359_v54, -inf }
 0x950   :  { %1368 = vmax.xlane.f32.xlu1 %v1367_v58 }
 0x961   :  { %1388 = vrot.lane.b32.xlu1 %v6986_v35, %s6620_s27 }
 0x965   :  { %1486 = vrot.lane.b32.xlu1 %v6970_v25, %s6634_s30 }
 0x969   :  { %1536 = vrot.lane.b32.xlu1 %v6975_v29, %s6634_s30 }
 0x96d   :  { %1534 = vrot.lane.b32.xlu1 %v6988_v36, %s6634_s30 }
 0x9ce   :  { %v1366_v59 = vpop.xlane.xlu0 %1365 }
 0x9cf   :  { %v1370_v60 = vsub.f32 %v1309_v39, %v1366_v59 }
 0x9d1   :  { %v1372_v61 = vmul.f32 1.442695, %v1370_v60 }
 0x9d3   :  { %6306 = vpow2.f32 %v1372_v61 }
 0x9dd   :  { %v6307_v62 = vpop.eup %6306  ;;  %v1369_v63 = vpop.xlane.xlu1 %1368 }
 0x9de   :  { %v1371_v1 = vsub.f32 %v1359_v54, %v1369_v63  ;;  %v1376_v2 = vsel %vm926_vm11, %v6307_v62, 0.0 }
 0x9df   :  { %1377 = vadd.xlane.f32.xlu0 %v1376_v2 }
 0x9e0   :  { %v1374_v5 = vmul.f32 1.442695, %v1371_v1 }
 0x9e1   :  { %v1389_v8 = vpop.permute.xlu1 %1388 }
 0x9e2   :  { %6308 = vpow2.f32 %v1374_v5  ;;  %v1394_v25 = vsel %vm954_vm10, %v1389_v8, 0 }
 0x9e3   :  { %5680 = vmatpush3.bf16.msra.mxu0 %v1394_v25 }
 0x9e4   :  { %5691 = vmatprep.subr.bf16.mxu0 %v6631_v20 }
 0x9e5   :  { %v1487_v42 = vpop.permute.xlu1 %1486 }
 0x9e6   :  { %v1492_v17 = vsel %vm833_vm9, %v1487_v42, 0 }
 0x9e9   :  { %v1537_v23 = vpop.permute.xlu1 %1536 }
 0x9ea   :  { %v1542_v26 = vsel %vm833_vm9, %v1537_v23, 0  ;;  %v6067_v23 = vld [vmem:[#allocation6 + $0x28] sm:$0xff]  }
 0x9ec   :  { %v6309_v29 = vpop.eup %6308 }
 0x9ed   :  { %v1379_v36 = vsel %vm926_vm11, %v6309_v29, 0.0  ;;  %v1535_v27 = vpop.permute.xlu1 %1534 }
 0x9ee   :  { %1380 = vadd.xlane.f32.xlu0 %v1379_v36 }
 0xa04   :  { %1436 = vrot.lane.b32.xlu0 %v7027_v16, %s6620_s27 }
 0xa08   :  { %1484 = vrot.lane.b32.xlu0 %v6977_v30, %s6634_s30 }
 0xa6c   :  { %v1378_v11 = vpop.xlane.xlu0 %1377 }
 0xa6d   :  { %6310 = vrcp.f32 %v1378_v11 }
 0xa77   :  { %v6311_v12 = vpop.eup %6310 }
 0xa78   :  { %v1384_v13 = vmul.f32 %v6311_v12, %v6307_v62 }
 0xa7a   :  { %v1386_v14 = vpack.c.bf16 %v1384_v13, %v1384_v13 }
 0xa7b   :  { %v1381_v15 = vpop.xlane.xlu0 %1380 }
 0xa7c   :  { %6312 = vrcp.f32 %v1381_v15  ;;  %5682 = vmatmul.mubr.msk.bf16.vlgmr.msra.gmra.mrb[20].mxu0 %vm926_vm11, %v1386_v14 }
 0xa7d   :  { %5692 = vmatpush3.bf16.xpose.msra.mxu0 %v1492_v17  ;;  %5693 = vmatprep.mubr.msk.bf16.mxu0 %vm6632_vm8, %v6631_v20 }
 0xa7e   :  { %5703 = vmatprep.subr.bf16.mxu0 %v6631_v20 }
 0xa7f   :  { %v1437_v18 = vpop.permute.xlu0 %1436 }
 0xa80   :  { %v1442_v30 = vsel %vm954_vm10, %v1437_v18, 0 }
 0xa81   :  { %5686 = vmatpush3.bf16.msra.mxu1 %v1442_v30  ;;  %v6063_v30 = vld [vmem:[#allocation6 + $0x8] sm:$0xff]  }
 0xa82   :  { %5697 = vmatprep.subr.bf16.mxu1 %v6631_v20 }
 0xa83   :  { %v1485_v19 = vpop.permute.xlu0 %1484 }
 0xa84   :  { %5694 = vmatmul.mubr.msk.bf16.vlgmr.msra.gmra.mrb[24].mxu0 %vm833_vm9, %v1485_v19  ;;  %v6064_v19 = vld [vmem:[#allocation6 + $0x10] sm:$0xff]  }
 0xa85   :  { %5705 = vmatprep.mubr.msk.bf16.mxu0 %vm6632_vm8, %v6631_v20 }
 0xa86   :  { %v6313_v22 = vpop.eup %6312 }
 0xa87   :  { %v1385_v21 = vmul.f32 %v6313_v22, %v6309_v29  ;;  %v6065_v22 = vld [vmem:[#allocation6 + $0x18] sm:$0xff]  }
 0xa89   :  { %v1387_v24 = vpack.c.bf16 %v1385_v21, %v1385_v21  ;;  %v6066_v21 = vld [vmem:[#allocation6 + $0x20] sm:$0xff]  }
 0xa8b   :  { %5688 = vmatmul.mubr.msk.bf16.vlgmr.msra.gmra.mrb[36].mxu1 %vm926_vm11, %v1387_v24  ;;  %v6068_v24 = vld [vmem:[#allocation6 + $0x30] sm:$0xff]  }
 0xa8c   :  { %5698 = vmatpush3.bf16.xpose.msra.mxu1 %v1542_v26  ;;  %5699 = vmatprep.mubr.msk.bf16.mxu1 %vm6632_vm8, %v6631_v20 }
 0xa8d   :  { %5709 = vmatprep.subr.bf16.mxu1 %v6631_v20 }
 0xa93   :  { %5700 = vmatmul.mubr.msk.bf16.vlgmr.msra.gmra.mrb[40].mxu1 %vm833_vm9, %v1535_v27 }
 0xa94   :  { %5711 = vmatprep.mubr.msk.bf16.mxu1 %vm6632_vm8, %v6631_v20 }
 0xb4f   :  { %v1430_v28 = vpop.f32.mrb[20].mxu0 }
 0xb50   :  { %v5683_v32 = vpop.f32.mrb[21].mxu0 }
 0xb51   :  { %v1433_v33 = vpop.f32.mrb[22].mxu0 }
 0xb52   :  { %v5684_v34 = vpop.f32.mrb[23].mxu0  ;;  %v6069_v33 = vld [vmem:[#allocation6 + $0x38] sm:$0xff]  }
 0xb57   :  { %v1528_v38 = vpop.f32.mrb[24].mxu0 }
 0xb58   :  { %v1529_v39 = vadd.f32 %v1528_v38, %v7004_v43  ;;  %v5695_v40 = vpop.f32.mrb[25].mxu0 }
 0xb59   :  { %v1531_v41 = vpop.f32.mrb[26].mxu0 }
 0xb5a   :  { %v5696_v44 = vpop.f32.mrb[27].mxu0  ;;  %v1584_v46 = vsel %vm926_vm11, %v1529_v39, -inf }
 0xb5b   :  { %1585 = vmax.xlane.f32.xlu0 %v1584_v46 }
 0xb5e   :  { %v1478_v49 = vpop.f32.mrb[36].mxu1 }
 0xb5f   :  { %v6005_v50 = vpack.i.bf16 %v1478_v49, %v1430_v28  ;;  %v5689_v51 = vpop.f32.mrb[37].mxu1 }
 0xb60   :  { %v1481_v53 = vpop.f32.mrb[38].mxu1 }
 0xb61   :  { %v5690_v54 = vpop.f32.mrb[39].mxu1 }
 0xb66   :  { %v1578_v55 = vpop.f32.mrb[40].mxu1 }
 0xb67   :  { %v1579_v56 = vadd.f32 %v1578_v55, %v7009_v52  ;;  %v5701_v57 = vpop.f32.mrb[41].mxu1 }
 0xb68   :  { %v1581_v58 = vpop.f32.mrb[42].mxu1 }
 0xb69   :  { %v5702_v59 = vpop.f32.mrb[43].mxu1  ;;  %v1587_v60 = vsel %vm926_vm11, %v1579_v56, -inf }
 0xb6a   :  { %1588 = vmax.xlane.f32.xlu1 %v1587_v60 }
 0xb7b   :  { %1608 = vrot.lane.b32.xlu1 %v6986_v35, %s6634_s30 }
 0xb7f   :  { %6001 = vrot.lane.b32.xlu1 %v6000_v48, %s6634_s30 }
 0xb83   :  { %6006 = vrot.lane.b32.xlu1 %v6005_v50, %s6620_s27 }
 0xbe8   :  { %v1586_v61 = vpop.xlane.xlu0 %1585 }
 0xbe9   :  { %v1590_v62 = vsub.f32 %v1529_v39, %v1586_v61 }
 0xbeb   :  { %v1592_v63 = vmul.f32 1.442695, %v1590_v62 }
 0xbed   :  { %6314 = vpow2.f32 %v1592_v63 }
 0xbf7   :  { %v6315_v1 = vpop.eup %6314  ;;  %v1589_v2 = vpop.xlane.xlu1 %1588 }
 0xbf8   :  { %v1591_v5 = vsub.f32 %v1579_v56, %v1589_v2  ;;  %v1596_v8 = vsel %vm926_vm11, %v6315_v1, 0.0 }
 0xbf9   :  { %1597 = vadd.xlane.f32.xlu0 %v1596_v8 }
 0xbfa   :  { %v1594_v25 = vmul.f32 1.442695, %v1591_v5 }
 0xbfb   :  { %v1609_v29 = vpop.permute.xlu1 %1608 }
 0xbfc   :  { %6316 = vpow2.f32 %v1594_v25  ;;  %v1614_v35 = vsel %vm954_vm10, %v1609_v29, 0 }
 0xbfd   :  { %5704 = vmatpush3.bf16.msra.mxu0 %v1614_v35 }
 0xbfe   :  { %5715 = vmatprep.subr.bf16.mxu0 %v6631_v20 }
 0xbff   :  { %v6002_v44 = vpop.permute.xlu1 %6001 }
 0xc00   :  { %v6004_v49 = vunpack.i.h.bf16 %v6002_v44  ;;  %v6003_v50 = vunpack.i.l.bf16 %v6002_v44  ;;  %v6103_v44 = vld [vmem:[#allocation7 + $0xa8] ss:$16 sps:$4 sm:$0xff]  }
 0xc02   :  { %v1729_v55 = vsel %vm833_vm9, %v7050_v45, %v6004_v49  ;;  %v1728_v56 = vsel %vm833_vm9, %v7047_v37, %v6003_v50  ;;  %v5077_v45 = vld [vmem:[%s7632_s11] ss:$0 sm:$0xff]  ;;  %v6111_v49 = vld [vmem:[#allocation7 + $0xcc] ss:$16 sps:$4 sm:$0xff]  }
 0xc03   :  { %v6007_v46 = vpop.permute.xlu1 %6006  ;;  %v6106_v50 = vld [vmem:[#allocation7 + $0xc0] ss:$16 sps:$4 sm:$0xff]  }
 0xc04   :  { %v6009_v51 = vunpack.i.h.bf16 %v6007_v46  ;;  %v6008_v53 = vunpack.i.l.bf16 %v6007_v46  ;;  %v6108_v46 = vld [vmem:[#allocation7 + $0xc4] ss:$16 sps:$4 sm:$0xff]  }
 0xc06   :  { %v6317_v31 = vpop.eup %6316  ;;  %v1731_v59 = vsel %vm1730_vm12, %v1728_v56, %v6008_v53  ;;  %v1732_v60 = vsel %vm1730_vm12, %v1729_v55, %v6009_v51  ;;  %v6109_v51 = vld [vmem:[#allocation7 + $0xc8] ss:$16 sps:$4 sm:$0xff]   ;;  %v6114_v53 = vld [vmem:[#allocation7 + $0xe4] ss:$16 sps:$4 sm:$0xff]   ;;  %v6112_v55 = vld [vmem:[#allocation7 + $0xe0] ss:$16 sps:$4 sm:$0xff]  }
 0xc07   :  { %v1599_v47 = vsel %vm926_vm11, %v6317_v31, 0.0  ;;  %v6115_v56 = vld [vmem:[#allocation7 + $0xe8] ss:$16 sps:$4 sm:$0xff]  }
 0xc08   :  { %1600 = vadd.xlane.f32.xlu0 %v1599_v47  ;;  %v6072_v47 = vld [vmem:[#allocation7 + $0x4] ss:$16 sps:$4 sm:$0xff]  }
 0xc1e   :  { %1656 = vrot.lane.b32.xlu0 %v7027_v16, %s6634_s30  ;;  %v6062_v16 = vld [vmem:[#allocation6] sm:$0xff]  }
 0xc86   :  { %v1598_v48 = vpop.xlane.xlu0 %1597 }
 0xc87   :  { %6318 = vrcp.f32 %v1598_v48  ;;  %v6073_v48 = vld [vmem:[#allocation7 + $0x8] ss:$16 sps:$4 sm:$0xff]  }
 0xc91   :  { %v6319_v36 = vpop.eup %6318 }
 0xc92   :  { %v1604_v11 = vmul.f32 %v6319_v36, %v6315_v1  ;;  %v6075_v36 = vld [vmem:[#allocation7 + $0xc] ss:$16 sps:$4 sm:$0xff]  }
 0xc94   :  { %v1606_v12 = vpack.c.bf16 %v1604_v11, %v1604_v11  ;;  %v6078_v11 = vld [vmem:[#allocation7 + $0x24] ss:$16 sps:$4 sm:$0xff]  }
 0xc95   :  { %v1601_v13 = vpop.xlane.xlu0 %1600 }
 0xc96   :  { %6320 = vrcp.f32 %v1601_v13  ;;  %5706 = vmatmul.mubr.msk.bf16.vlgmr.msra.gmra.mrb[28].mxu0 %vm926_vm11, %v1606_v12  ;;  %v6081_v12 = vld [vmem:[#allocation7 + $0x2c] ss:$16 sps:$4 sm:$0xff]   ;;  %v6076_v13 = vld [vmem:[#allocation7 + $0x20] ss:$16 sps:$4 sm:$0xff]  }
 0xc97   :  { %5731 = vmatprep.mubr.msk.bf16.mxu0 %vm6632_vm8, %v6631_v20  ;;  %5716 = vmatpush3.bf16.msra.mxu0 %v6062_v16 }
 0xc98   :  { %5717 = vmatprep.subr.bf16.mxu0 %v6631_v20 }
 0xc99   :  { %v1657_v42 = vpop.permute.xlu0 %1656 }
 0xc9a   :  { %v1662_v14 = vsel %vm954_vm10, %v1657_v42, 0  ;;  %v6079_v42 = vld [vmem:[#allocation7 + $0x28] ss:$16 sps:$4 sm:$0xff]  }
 0xc9b   :  { %5710 = vmatpush3.bf16.msra.mxu1 %v1662_v14  ;;  %5718 = vmatpush3.bf16.msra.mxu0 %v6063_v30 }
 0xc9c   :  { %5719 = vmatprep.subr.bf16.mxu0 %v6631_v20  ;;  %2106 = vmatprep.subr.bf16.mxu1 %v6072_v47  ;;  %v6118_v47 = vld [vmem:[#allocation9 + $0x40] sm:$0xff]  }
 0xc9f   :  { %5720 = vmatpush3.bf16.msra.mxu0 %v6064_v19  ;;  %v6084_v19 = vld [vmem:[#allocation7 + $0x44] ss:$16 sps:$4 sm:$0xff]  }
 0xca0   :  { %v6321_v15 = vpop.eup %6320  ;;  %5721 = vmatprep.subr.bf16.mxu0 %v6631_v20 }
 0xca1   :  { %v1605_v17 = vmul.f32 %v6321_v15, %v6317_v31  ;;  %v6070_v31 = vld [vmem:[#allocation7] ss:$16 sps:$4 sm:$0xff]  }
 0xca3   :  { %v1607_v18 = vpack.c.bf16 %v1605_v17, %v1605_v17  ;;  %5722 = vmatpush3.bf16.msra.mxu0 %v6065_v22  ;;  %v6087_v22 = vld [vmem:[#allocation7 + $0x4c] ss:$16 sps:$4 sm:$0xff]  }
 0xca4   :  { %5723 = vmatprep.subr.bf16.mxu0 %v6631_v20 }
 0xca5   :  { %5712 = vmatmul.mubr.msk.bf16.vlgmr.msra.gmra.mrb[44].mxu1 %vm926_vm11, %v1607_v18 }
 0xca6   :  { %2138 = vmatprep.mubr.bf16.mxu1 %v6629_v0  ;;  %2107 = vmatpush1.bf16.msra.mxu1 %v6070_v31 }
 0xca7   :  { %5724 = vmatpush3.bf16.msra.mxu0 %v6066_v21  ;;  %2108 = vmatprep.subr.bf16.mxu1 %v6078_v11  ;;  %v6082_v21 = vld [vmem:[#allocation7 + $0x40] ss:$16 sps:$4 sm:$0xff]  }
 0xca8   :  { %5725 = vmatprep.subr.bf16.mxu0 %v6631_v20  ;;  %v6121_v11 = vld [vmem:[#allocation9 + $0x80] sm:$0xff]  }
 0xcaa   :  { %2109 = vmatpush1.bf16.msra.mxu1 %v6076_v13  ;;  %v6123_v13 = vld [vmem:[#allocation9 + $0xc8] sm:$0xff]  }
 0xcab   :  { %5726 = vmatpush3.bf16.msra.mxu0 %v6067_v23  ;;  %v6085_v23 = vld [vmem:[#allocation7 + $0x48] ss:$16 sps:$4 sm:$0xff]   ;;  %2110 = vmatprep.subr.bf16.mxu1 %v6084_v19 }
 0xcac   :  { %5727 = vmatprep.subr.bf16.mxu0 %v6631_v20  ;;  %v6133_v19 = vld [vmem:[#allocation9 + $0x98] sm:$0xff]  }
 0xcae   :  { %2111 = vmatpush1.bf16.msra.mxu1 %v6082_v21  ;;  %v6135_v21 = vld [vmem:[#allocation9 + $0xe0] sm:$0xff]  }
 0xcaf   :  { %5728 = vmatpush3.bf16.msra.mxu0 %v6068_v24  ;;  %v6090_v24 = vld [vmem:[#allocation7 + $0x64] ss:$16 sps:$4 sm:$0xff]  }
 0xcb0   :  { %5729 = vmatprep.subr.bf16.mxu0 %v6631_v20  ;;  %2112 = vmatprep.subr.bf16.mxu1 %v6090_v24  ;;  %v6137_v24 = vld [vmem:[#allocation9 + $0xa0] sm:$0xff]  }
 0xcb3   :  { %5730 = vmatpush3.bf16.msra.mxu0 %v6069_v33  ;;  %v6099_v33 = vld [vmem:[#allocation7 + $0x8c] ss:$16 sps:$4 sm:$0xff]  }
 0xcb4   :  { %2149 = vmatprep.subr.bf16.mxu0 %v6075_v36  ;;  %v6120_v36 = vld [vmem:[#allocation9] sm:$0xff]  }
 0xd69   :  { %v1650_v26 = vpop.f32.mrb[28].mxu0 }
 0xd6a   :  { %v5707_v27 = vpop.f32.mrb[29].mxu0 }
 0xd6b   :  { %v1653_v28 = vpop.f32.mrb[30].mxu0  ;;  %v6088_v27 = vld [vmem:[#allocation7 + $0x60] ss:$16 sps:$4 sm:$0xff]  }
 0xd6c   :  { %v5708_v32 = vpop.f32.mrb[31].mxu0  ;;  %v6091_v28 = vld [vmem:[#allocation7 + $0x68] ss:$16 sps:$4 sm:$0xff]   ;;  %2113 = vmatpush1.bf16.msra.mxu1 %v6088_v27 }
 0xd6d   :  { %v6096_v32 = vld [vmem:[#allocation7 + $0x84] ss:$16 sps:$4 sm:$0xff]   ;;  %v6139_v27 = vld [vmem:[#allocation9 + $0xe8] sm:$0xff]  }
 0xd6e   :  { %2114 = vmatprep.subr.bf16.mxu1 %v6096_v32  ;;  %v6141_v32 = vld [vmem:[#allocation9 + $0xa8] sm:$0xff]  }
 0xd78   :  { %v1698_v34 = vpop.f32.mrb[44].mxu1 }
 0xd79   :  { %v6010_v38 = vpack.i.bf16 %v1698_v34, %v1650_v26  ;;  %v5713_v39 = vpop.f32.mrb[45].mxu1  ;;  %v6093_v26 = vld [vmem:[#allocation7 + $0x6c] ss:$16 sps:$4 sm:$0xff]   ;;  %v6094_v34 = vld [vmem:[#allocation7 + $0x80] ss:$16 sps:$4 sm:$0xff]  }
 0xd7a   :  { %v1701_v40 = vpop.f32.mrb[46].mxu1  ;;  %2115 = vmatpush1.bf16.msra.mxu1 %v6094_v34  ;;  %v6102_v39 = vld [vmem:[#allocation7 + $0xa4] ss:$16 sps:$4 sm:$0xff]  }
 0xd7b   :  { %6011 = vrot.lane.b32.xlu0 %v6010_v38, %s6633_s14  ;;  %v5714_v41 = vpop.f32.mrb[47].mxu1  ;;  %v6097_v38 = vld [vmem:[#allocation7 + $0x88] ss:$16 sps:$4 sm:$0xff]   ;;  %v6105_v40 = vld [vmem:[#allocation7 + $0xac] ss:$16 sps:$4 sm:$0xff]   ;;  %2116 = vmatprep.subr.bf16.mxu1 %v6102_v39  ;;  %v6143_v34 = vld [vmem:[#allocation9 + $0xf0] sm:$0xff]  }
 0xd7c   :  { %v6100_v41 = vld [vmem:[#allocation7 + $0xa0] ss:$16 sps:$4 sm:$0xff]  }
 0xd7d   :  { %v6145_v39 = vld [vmem:[#allocation9 + $0xb0] sm:$0xff]  }
 0xd7e   :  { %2117 = vmatpush1.bf16.msra.mxu1 %v6100_v41  ;;  %v6147_v41 = vld [vmem:[#allocation9 + $0xf8] sm:$0xff]  }
 0xd7f   :  { %2118 = vmatprep.subr.bf16.mxu1 %v6108_v46  ;;  %v6149_v46 = vld [vmem:[#allocation9 + $0xb8] sm:$0xff]  }
 0xd82   :  { %2119 = vmatpush1.bf16.msra.mxu1 %v6106_v50  ;;  %v1940_v50 = vsub.s32 3, %v6951_v6 }
 0xd83   :  { %2120 = vmatprep.subr.bf16.mxu1 %v6114_v53 }
 0xd86   :  { %2121 = vmatpush1.bf16.msra.mxu1 %v6112_v55 }
 0xd87   :  { %5443 = vmatprep.subr.bf16.mxu1 %v6118_v47 }
 0xded   :  { %v6012_v54 = vpop.permute.xlu0 %6011 }
 0xdee   :  { %v6014_v57 = vunpack.i.h.bf16 %v6012_v54  ;;  %v6013_v58 = vunpack.i.l.bf16 %v6012_v54  ;;  %v6117_v54 = vld [vmem:[#allocation7 + $0xec] ss:$16 sps:$4 sm:$0xff]  }
 0xdf0   :  { %v1735_v61 = vsel %vm1733_vm13, %v1732_v60, %v6014_v57  ;;  %v1734_v62 = vsel %vm1733_vm13, %v1731_v59, %v6013_v58 }
 0xdf1   :  { %v1736_v63 = vpack.c.bf16 %v1735_v61, %v1734_v62 }
 0xdf3   :  { %5732 = vmatmul.mubr.bf16.vlgmr.msra.gmra.mrb[32].mxu0 %v1736_v63 }
 0xdf4   :  { %2181 = vmatprep.mubr.bf16.mxu0 %v6629_v0  ;;  %2150 = vmatpush1.bf16.msra.mxu0 %v6073_v48  ;;  %v6119_v48 = vld [vmem:[#allocation9 + $0xc0] sm:$0xff]  }
 0xdf5   :  { %2151 = vmatprep.subr.bf16.mxu0 %v6081_v12  ;;  %v6122_v12 = vld [vmem:[#allocation9 + $0x48] sm:$0xff]  }
 0xdf8   :  { %2152 = vmatpush1.bf16.msra.mxu0 %v6079_v42  ;;  %v6124_v42 = vld [vmem:[#allocation9 + $0x8] sm:$0xff]  }
 0xdf9   :  { %2153 = vmatprep.subr.bf16.mxu0 %v6087_v22  ;;  %v6134_v22 = vld [vmem:[#allocation9 + $0x60] sm:$0xff]  }
 0xdfc   :  { %2154 = vmatpush1.bf16.msra.mxu0 %v6085_v23  ;;  %v6136_v23 = vld [vmem:[#allocation9 + $0x20] sm:$0xff]  }
 0xdfd   :  { %2155 = vmatprep.subr.bf16.mxu0 %v6093_v26  ;;  %v6138_v26 = vld [vmem:[#allocation9 + $0x68] sm:$0xff]  }
 0xe00   :  { %2156 = vmatpush1.bf16.msra.mxu0 %v6091_v28  ;;  %v6140_v28 = vld [vmem:[#allocation9 + $0x28] sm:$0xff]  }
 0xe01   :  { %2157 = vmatprep.subr.bf16.mxu0 %v6099_v33  ;;  %v6142_v33 = vld [vmem:[#allocation9 + $0x70] sm:$0xff]  }
 0xe04   :  { %2158 = vmatpush1.bf16.msra.mxu0 %v6097_v38  ;;  %v6144_v38 = vld [vmem:[#allocation9 + $0x30] sm:$0xff]  }
 0xe05   :  { %2159 = vmatprep.subr.bf16.mxu0 %v6105_v40  ;;  %v6146_v40 = vld [vmem:[#allocation9 + $0x78] sm:$0xff]  }
 0xe08   :  { %2160 = vmatpush1.bf16.msra.mxu0 %v6103_v44  ;;  %v6148_v44 = vld [vmem:[#allocation9 + $0x38] sm:$0xff]  }
 0xe09   :  { %2161 = vmatprep.subr.bf16.mxu0 %v6111_v49  ;;  %v1924_v49 = vld [vmem:[%s7636_s15] sm:$0xf] }
 0xe0a   :  { %v1937_v53 = vrot.slane %v1924_v49, %v6963_v10  ;;  %v1941_v55 = vrot.slane %v1924_v49, %v1940_v50 }
 0xe0c   :  { %2162 = vmatpush1.bf16.msra.mxu0 %v6109_v51  ;;  %v1929_v51 = vrot.slane %v1924_v49, %v6960_v9 }
 0xe0d   :  { %2163 = vmatprep.subr.bf16.mxu0 %v6117_v54  ;;  %v1933_v54 = vrot.slane %v1924_v49, %v6954_v7 }
 0xe10   :  { %2164 = vmatpush1.bf16.msra.mxu0 %v6115_v56 }
 0xe11   :  { %5465 = vmatprep.subr.bf16.mxu0 %v6119_v48 }
 0xec6   :  { %v1842_v1 = vpop.f32.mrb[32].mxu0 }
 0xec7   :  { %v1843_v37 = vadd.f32 %v5077_v45, %v1842_v1  ;;  %v5733_v2 = vpop.f32.mrb[33].mxu0 }
 0xec8   :  { %v1845_v5 = vpop.f32.mrb[34].mxu0 }
 0xec9   :  { %v1846_v8 = vadd.f32 %v5077_v45, %v1845_v5  ;;  %v5734_v25 = vpop.f32.mrb[35].mxu0  ;;  %v1849_v29 = vadd.f32 %v1843_v37, %v6940_v3  ;;  %v5086_v45 = vld [vmem:[%s7633_s12] ss:$0 sm:$0xff] }
 0xecb   :  { %1853 = vadd.xlane.f32.xlu1 %v1849_v29  ;;  %v1850_v35 = vadd.f32 %v1846_v8, %v6942_v4  ;;  %v5087_v8 = vld [vmem:[%s7634_s13] ss:$0 sm:$0xff] }
 0xecd   :  { %1855 = vadd.xlane.f32.xlu0 %v1850_v35 }
 0xf58   :  { %v1854_v3 = vpop.xlane.xlu1 %1853 }
 0xf59   :  { %v1857_v14 = vmul.f32 0.0078125, %v1854_v3  ;;  %v6125_v3 = vld [vmem:[#allocation9 + $0x88] sm:$0xff]  }
 0xf5a   :  { %v1856_v4 = vpop.xlane.xlu0 %1855 }
 0xf5b   :  { %v7177_v15 = vsub.f32 %v1849_v29, %v1857_v14  ;;  %v1858_v17 = vmul.f32 0.0078125, %v1856_v4  ;;  %v6126_v14 = vld [vmem:[#allocation9 + $0x50] sm:$0xff]  }
 0xf5c   :  { %v6127_v4 = vld [vmem:[#allocation9 + $0xd0] sm:$0xff]  }
 0xf5d   :  { %v7179_v18 = vsub.f32 %v1850_v35, %v1858_v17  ;;  %v1861_v16 = vmul.f32 %v7177_v15, %v7177_v15  ;;  %v6129_v17 = vld [vmem:[#allocation9 + $0x90] sm:$0xff]  }
 0xf5f   :  { %1863 = vadd.xlane.f32.xlu0 %v1861_v16  ;;  %v1862_v30 = vmul.f32 %v7179_v18, %v7179_v18  ;;  %v6131_v16 = vld [vmem:[#allocation9 + $0xd8] sm:$0xff]  }
 0xf61   :  { %1865 = vadd.xlane.f32.xlu1 %v1862_v30  ;;  %v6132_v30 = vld [vmem:[#allocation9 + $0x18] sm:$0xff]  }
 0xfec   :  { %v1864_v57 = vpop.xlane.xlu0 %1863 }
 0xfed   :  { %v1867_v58 = vmul.f32 0.0078125, %v1864_v57 }
 0xfee   :  { %v1866_v59 = vpop.xlane.xlu1 %1865 }
 0xfef   :  { %v1869_v60 = vadd.f32 1e-12, %v1867_v58  ;;  %v1868_v61 = vmul.f32 0.0078125, %v1866_v59 }
 0xff1   :  { %6322 = vrsqrt.f32 %v1869_v60  ;;  %v1870_v62 = vadd.f32 1e-12, %v1868_v61 }
 0xff3   :  { %6324 = vrsqrt.f32 %v1870_v62 }
 0xffb   :  { %v6323_v63 = vpop.eup %6322 }
 0xffc   :  { %v1873_v1 = vmul.f32 %v6323_v63, %v7177_v15  ;;  %v6128_v15 = vld [vmem:[#allocation9 + $0x10] sm:$0xff]  }
 0xffd   :  { %v6325_v37 = vpop.eup %6324 }
 0xffe   :  { %v1874_v2 = vmul.f32 %v6325_v37, %v7179_v18  ;;  %v1881_v5 = vmul.f32 %v5086_v45, %v1873_v1  ;;  %v6130_v18 = vld [vmem:[#allocation9 + $0x58] sm:$0xff]  }
0x1000   :  { %v1882_v25 = vmul.f32 %v5086_v45, %v1874_v2  ;;  %v7193_v29 = vadd.f32 %v5087_v8, %v1881_v5 }
0x1002   :  { %v7195_v35 = vadd.f32 %v5087_v8, %v1882_v25 }
0x1004   :  { %v1891_v31 = vpack.c.bf16 %v7195_v35, %v7193_v29 }
0x1006   :  { %2139 = vmatmul.mubr.bf16.vlgmr.msra.gmra.mrb[48].mxu1 %v1891_v31  ;;  %2182 = vmatmul.mubr.bf16.vlgmr.msra.gmra.mrb[36].mxu0 %v1891_v31 }
0x1007   :  { %5444 = vmatpush3.bf16.msra.mxu1 %v6120_v36  ;;  %5466 = vmatpush3.bf16.msra.mxu0 %v6121_v11 }
0x1008   :  { %5445 = vmatprep.subr.bf16.mxu1 %v6122_v12  ;;  %5467 = vmatprep.subr.bf16.mxu0 %v6123_v13 }
0x100b   :  { %5446 = vmatpush3.bf16.msra.mxu1 %v6124_v42  ;;  %5468 = vmatpush3.bf16.msra.mxu0 %v6125_v3 }
0x100c   :  { %5447 = vmatprep.subr.bf16.mxu1 %v6126_v14  ;;  %5469 = vmatprep.subr.bf16.mxu0 %v6127_v4 }
0x100f   :  { %5448 = vmatpush3.bf16.msra.mxu1 %v6128_v15  ;;  %5470 = vmatpush3.bf16.msra.mxu0 %v6129_v17 }
0x1010   :  { %5449 = vmatprep.subr.bf16.mxu1 %v6130_v18  ;;  %5471 = vmatprep.subr.bf16.mxu0 %v6131_v16 }
0x1013   :  { %5450 = vmatpush3.bf16.msra.mxu1 %v6132_v30  ;;  %5472 = vmatpush3.bf16.msra.mxu0 %v6133_v19 }
0x1014   :  { %5451 = vmatprep.subr.bf16.mxu1 %v6134_v22  ;;  %5473 = vmatprep.subr.bf16.mxu0 %v6135_v21 }
0x1017   :  { %5452 = vmatpush3.bf16.msra.mxu1 %v6136_v23  ;;  %5474 = vmatpush3.bf16.msra.mxu0 %v6137_v24 }
0x1018   :  { %5453 = vmatprep.subr.bf16.mxu1 %v6138_v26  ;;  %5475 = vmatprep.subr.bf16.mxu0 %v6139_v27 }
0x101b   :  { %5454 = vmatpush3.bf16.msra.mxu1 %v6140_v28  ;;  %5476 = vmatpush3.bf16.msra.mxu0 %v6141_v32 }
0x101c   :  { %5455 = vmatprep.subr.bf16.mxu1 %v6142_v33  ;;  %5477 = vmatprep.subr.bf16.mxu0 %v6143_v34 }
0x101f   :  { %5456 = vmatpush3.bf16.msra.mxu1 %v6144_v38  ;;  %5478 = vmatpush3.bf16.msra.mxu0 %v6145_v39 }
0x1020   :  { %5457 = vmatprep.subr.bf16.mxu1 %v6146_v40  ;;  %5479 = vmatprep.subr.bf16.mxu0 %v6147_v41 }
0x1023   :  { %5458 = vmatpush3.bf16.msra.mxu1 %v6148_v44  ;;  %5480 = vmatpush3.bf16.msra.mxu0 %v6149_v46 }
0x1024   :  { %5735 = vmatprep.subr.bf16.mxu0 %v6631_v20 }
0x10d9   :  { %v2140_v56 = vpop.f32.mrb[48].mxu1  ;;  %v2183_v57 = vpop.f32.mrb[36].mxu0 }
0x10da   :  { %v7209_v58 = vadd.f32 %v2140_v56, %v1929_v51  ;;  %v7211_v59 = vadd.f32 %v2183_v57, %v1937_v53  ;;  %v2142_v60 = vpop.f32.mrb[49].mxu1  ;;  %v2185_v61 = vpop.f32.mrb[37].mxu0 }
0x10db   :  { %v7213_v62 = vadd.f32 %v2142_v60, %v1933_v54  ;;  %v7215_v63 = vadd.f32 %v2185_v61, %v1941_v55  ;;  %v2144_v45 = vpop.f32.mrb[50].mxu1  ;;  %v2187_v1 = vpop.f32.mrb[38].mxu0 }
0x10dc   :  { %v2192_v37 = vmul.f32 %v7209_v58, %v7209_v58  ;;  %v2194_v2 = vmul.f32 %v7211_v59, %v7211_v59  ;;  %v7221_v5 = vadd.f32 %v2144_v45, %v1929_v51  ;;  %v7223_v8 = vadd.f32 %v2187_v1, %v1937_v53  ;;  %v2146_v25 = vpop.f32.mrb[51].mxu1  ;;  %v2189_v31 = vpop.f32.mrb[39].mxu0 }
0x10dd   :  { %v2193_v47 = vmul.f32 %v7213_v62, %v7213_v62  ;;  %v2195_v48 = vmul.f32 %v7215_v63, %v7215_v63  ;;  %v7229_v36 = vadd.f32 %v2146_v25, %v1933_v54  ;;  %v7231_v11 = vadd.f32 %v2189_v31, %v1941_v55 }
0x10de   :  { %v2200_v12 = vmul.f32 %v2192_v37, %v7209_v58  ;;  %v2202_v13 = vmul.f32 %v2194_v2, %v7211_v59  ;;  %v2196_v42 = vmul.f32 %v7221_v5, %v7221_v5  ;;  %v2198_v3 = vmul.f32 %v7223_v8, %v7223_v8 }
0x10df   :  { %v2201_v14 = vmul.f32 %v2193_v47, %v7213_v62  ;;  %v2203_v4 = vmul.f32 %v2195_v48, %v7215_v63  ;;  %v2197_v15 = vmul.f32 %v7229_v36, %v7229_v36  ;;  %v2199_v17 = vmul.f32 %v7231_v11, %v7231_v11 }
0x10e0   :  { %v2208_v18 = vmul.f32 0.044715, %v2200_v12  ;;  %v2210_v16 = vmul.f32 0.044715, %v2202_v13  ;;  %v2204_v30 = vmul.f32 %v2196_v42, %v7221_v5  ;;  %v2206_v19 = vmul.f32 %v2198_v3, %v7223_v8 }
0x10e1   :  { %v2209_v22 = vmul.f32 0.044715, %v2201_v14  ;;  %v2211_v21 = vmul.f32 0.044715, %v2203_v4  ;;  %v2205_v23 = vmul.f32 %v2197_v15, %v7229_v36  ;;  %v2207_v24 = vmul.f32 %v2199_v17, %v7231_v11 }
0x10e2   :  { %v2216_v26 = vadd.f32 %v2208_v18, %v7209_v58  ;;  %v2218_v27 = vadd.f32 %v2210_v16, %v7211_v59  ;;  %v2212_v28 = vmul.f32 0.044715, %v2204_v30  ;;  %v2214_v32 = vmul.f32 0.044715, %v2206_v19 }
0x10e3   :  { %v2217_v33 = vadd.f32 %v2209_v22, %v7213_v62  ;;  %v2219_v34 = vadd.f32 %v2211_v21, %v7215_v63  ;;  %v2213_v38 = vmul.f32 0.044715, %v2205_v23  ;;  %v2215_v39 = vmul.f32 0.044715, %v2207_v24 }
0x10e4   :  { %v2224_v40 = vmul.f32 0.7978846, %v2216_v26  ;;  %v2226_v41 = vmul.f32 0.7978846, %v2218_v27  ;;  %v2220_v44 = vadd.f32 %v2212_v28, %v7221_v5  ;;  %v2222_v46 = vadd.f32 %v2214_v32, %v7223_v8 }
0x10e5   :  { %v2225_v49 = vmul.f32 0.7978846, %v2217_v33  ;;  %v2227_v51 = vmul.f32 0.7978846, %v2219_v34  ;;  %v2221_v53 = vadd.f32 %v2213_v38, %v7229_v36  ;;  %v2223_v54 = vadd.f32 %v2215_v39, %v7231_v11 }
0x10e6   :  { %6326 = vtanh.f32 %v2224_v40  ;;  %v2228_v55 = vmul.f32 0.7978846, %v2220_v44  ;;  %v2230_v56 = vmul.f32 0.7978846, %v2222_v46 }
0x10e7   :  { %6328 = vtanh.f32 %v2226_v41  ;;  %v2229_v57 = vmul.f32 0.7978846, %v2221_v53  ;;  %v2231_v60 = vmul.f32 0.7978846, %v2223_v54 }
0x10e8   :  { %6330 = vtanh.f32 %v2225_v49 }
0x10e9   :  { %6332 = vtanh.f32 %v2227_v51 }
0x10ea   :  { %6334 = vtanh.f32 %v2228_v55 }
0x10eb   :  { %6336 = vtanh.f32 %v2230_v56 }
0x10ec   :  { %6338 = vtanh.f32 %v2229_v57 }
0x10ed   :  { %6340 = vtanh.f32 %v2231_v60 }
0x10f0   :  { %v6327_v61 = vpop.eup %6326 }
0x10f1   :  { %v6329_v45 = vpop.eup %6328  ;;  %v2240_v1 = vadd.f32 1.0, %v6327_v61 }
0x10f2   :  { %v6331_v37 = vpop.eup %6330  ;;  %v2242_v2 = vadd.f32 1.0, %v6329_v45 }
0x10f3   :  { %v6333_v25 = vpop.eup %6332  ;;  %v2241_v31 = vadd.f32 1.0, %v6331_v37  ;;  %v2248_v13 = vmul.f32 0.5, %v2240_v1  ;;  %v6150_v1 = vld [vmem:[#allocation4 + $0xc0] ss:$12 sps:$4 sm:$0xff]   ;;  %v6152_v37 = vld [vmem:[#allocation4 + $0xc4] ss:$12 sps:$4 sm:$0xff]  }
0x10f4   :  { %v6335_v47 = vpop.eup %6334  ;;  %v2243_v48 = vadd.f32 1.0, %v6333_v25  ;;  %v2250_v14 = vmul.f32 0.5, %v2242_v2  ;;  %v6153_v2 = vld [vmem:[#allocation4 + $0xc8] ss:$12 sps:$4 sm:$0xff]   ;;  %2835 = vmatprep.subr.bf16.mxu1 %v6152_v37 }
0x10f5   :  { %v6337_v12 = vpop.eup %6336  ;;  %v2244_v42 = vadd.f32 1.0, %v6335_v47  ;;  %v2249_v16 = vmul.f32 0.5, %v2241_v31  ;;  %v2256_v21 = vmul.f32 %v2248_v13, %v7209_v58  ;;  %v6156_v25 = vld [vmem:[#allocation4 + $0xdc] ss:$12 sps:$4 sm:$0xff]   ;;  %v6157_v31 = vld [vmem:[#allocation4 + $0xe0] ss:$12 sps:$4 sm:$0xff]  }
0x10f6   :  { %v6339_v3 = vpop.eup %6338  ;;  %v2246_v4 = vadd.f32 1.0, %v6337_v12  ;;  %v2251_v22 = vmul.f32 0.5, %v2243_v48  ;;  %v2258_v26 = vmul.f32 %v2250_v14, %v7211_v59  ;;  %v6154_v47 = vld [vmem:[#allocation4 + $0xd8] ss:$12 sps:$4 sm:$0xff]  }
0x10f7   :  { %v6341_v15 = vpop.eup %6340  ;;  %v2252_v17 = vmul.f32 0.5, %v2244_v42  ;;  %v2245_v18 = vadd.f32 1.0, %v6339_v3  ;;  %v2257_v32 = vmul.f32 %v2249_v16, %v7213_v62  ;;  %v6162_v16 = vld [vmem:[#allocation4 + $0x108] ss:$12 sps:$4 sm:$0xff]  }
0x10f8   :  { %v2254_v30 = vmul.f32 0.5, %v2246_v4  ;;  %v2247_v19 = vadd.f32 1.0, %v6341_v15  ;;  %v2259_v38 = vmul.f32 %v2251_v22, %v7215_v63  ;;  %v5120_v63 = vld [vmem:[%s7638_s17] ss:$0 sm:$0xff]  ;;  %v6158_v15 = vld [vmem:[#allocation4 + $0xf0] ss:$12 sps:$4 sm:$0xff]  }
0x10f9   :  { %v2260_v23 = vmul.f32 %v2252_v17, %v7221_v5  ;;  %v2253_v24 = vmul.f32 0.5, %v2245_v18  ;;  %v6160_v4 = vld [vmem:[#allocation4 + $0xf4] ss:$12 sps:$4 sm:$0xff]   ;;  %v6161_v17 = vld [vmem:[#allocation4 + $0xf8] ss:$12 sps:$4 sm:$0xff]  }
0x10fa   :  { %v2262_v27 = vmul.f32 %v2254_v30, %v7223_v8  ;;  %v2255_v28 = vmul.f32 0.5, %v2247_v19  ;;  %v6164_v18 = vld [vmem:[#allocation4 + $0x10c] ss:$12 sps:$4 sm:$0xff]   ;;  %v6165_v30 = vld [vmem:[#allocation4 + $0x110] ss:$12 sps:$4 sm:$0xff]  }
0x10fb   :  { %v2261_v33 = vmul.f32 %v2253_v24, %v7229_v36  ;;  %v2264_v34 = vpack.c.bf16 %v2260_v23, %v2256_v21  ;;  %v6168_v19 = vld [vmem:[#allocation4 + $0x124] ss:$12 sps:$4 sm:$0xff]   ;;  %v6166_v22 = vld [vmem:[#allocation4 + $0x120] ss:$12 sps:$4 sm:$0xff]   ;;  %v6169_v21 = vld [vmem:[#allocation4 + $0x128] ss:$12 sps:$4 sm:$0xff]  }
0x10fc   :  { %v2263_v39 = vmul.f32 %v2255_v28, %v7231_v11  ;;  %v2266_v40 = vpack.c.bf16 %v2262_v27, %v2258_v26  ;;  %v6172_v23 = vld [vmem:[#allocation4 + $0x13c] ss:$12 sps:$4 sm:$0xff]   ;;  %v6170_v24 = vld [vmem:[#allocation4 + $0x138] ss:$12 sps:$4 sm:$0xff]   ;;  %v6173_v26 = vld [vmem:[#allocation4 + $0x140] ss:$12 sps:$4 sm:$0xff]  }
0x10fd   :  { %v2265_v41 = vpack.c.bf16 %v2261_v33, %v2257_v32  ;;  %v6176_v27 = vld [vmem:[#allocation4 + $0x154] ss:$12 sps:$4 sm:$0xff]   ;;  %v6174_v28 = vld [vmem:[#allocation4 + $0x150] ss:$12 sps:$4 sm:$0xff]   ;;  %v6177_v32 = vld [vmem:[#allocation4 + $0x158] ss:$12 sps:$4 sm:$0xff]  }
0x10fe   :  { %v2267_v58 = vpack.c.bf16 %v2263_v39, %v2259_v38  ;;  %v6180_v33 = vld [vmem:[#allocation4 + $0x16c] ss:$12 sps:$4 sm:$0xff]   ;;  %v6181_v38 = vld [vmem:[#allocation4 + $0x170] ss:$12 sps:$4 sm:$0xff]  }
0x10ff   :  { %2563 = vmatprep.mubr.bf16.mxu1 %v2265_v41 }
0x1100   :  { %2604 = vmatprep.mubr.bf16.mxu0 %v2267_v58  ;;  %2564 = vmatmul.mubr.bf16.vlgmr.msra.gmra.mrb[52].mxu1 %v2264_v34  ;;  %v6178_v34 = vld [vmem:[#allocation4 + $0x168] ss:$12 sps:$4 sm:$0xff]  }
0x1101   :  { %2605 = vmatmul.mubr.bf16.vlgmr.msra.gmra.mrb[40].mxu0 %v2266_v40  ;;  %2867 = vmatprep.mubr.bf16.mxu1 %v6629_v0 }
0x1102   :  { %5751 = vmatprep.mubr.msk.bf16.mxu0 %vm6632_vm8, %v6631_v20  ;;  %5736 = vmatpush3.bf16.msra.mxu0 %v6153_v2 }
0x1103   :  { %2836 = vmatpush1.bf16.msra.mxu1 %v6150_v1  ;;  %5737 = vmatprep.subr.bf16.mxu0 %v6631_v20 }
0x1104   :  { %2837 = vmatprep.subr.bf16.mxu1 %v6156_v25 }
0x1106   :  { %5738 = vmatpush3.bf16.msra.mxu0 %v6157_v31 }
0x1107   :  { %2838 = vmatpush1.bf16.msra.mxu1 %v6154_v47  ;;  %5739 = vmatprep.subr.bf16.mxu0 %v6631_v20 }
0x1108   :  { %2839 = vmatprep.subr.bf16.mxu1 %v6160_v4 }
0x110a   :  { %5740 = vmatpush3.bf16.msra.mxu0 %v6161_v17 }
0x110b   :  { %2840 = vmatpush1.bf16.msra.mxu1 %v6158_v15  ;;  %5741 = vmatprep.subr.bf16.mxu0 %v6631_v20 }
0x110c   :  { %2841 = vmatprep.subr.bf16.mxu1 %v6164_v18 }
0x110e   :  { %5742 = vmatpush3.bf16.msra.mxu0 %v6165_v30 }
0x110f   :  { %2842 = vmatpush1.bf16.msra.mxu1 %v6162_v16  ;;  %5743 = vmatprep.subr.bf16.mxu0 %v6631_v20 }
0x1110   :  { %2843 = vmatprep.subr.bf16.mxu1 %v6168_v19 }
0x1112   :  { %5744 = vmatpush3.bf16.msra.mxu0 %v6169_v21 }
0x1113   :  { %2844 = vmatpush1.bf16.msra.mxu1 %v6166_v22  ;;  %5745 = vmatprep.subr.bf16.mxu0 %v6631_v20 }
0x1114   :  { %2845 = vmatprep.subr.bf16.mxu1 %v6172_v23 }
0x1116   :  { %5746 = vmatpush3.bf16.msra.mxu0 %v6173_v26 }
0x1117   :  { %2846 = vmatpush1.bf16.msra.mxu1 %v6170_v24  ;;  %5747 = vmatprep.subr.bf16.mxu0 %v6631_v20 }
0x1118   :  { %2847 = vmatprep.subr.bf16.mxu1 %v6176_v27 }
0x111a   :  { %5748 = vmatpush3.bf16.msra.mxu0 %v6177_v32 }
0x111b   :  { %2848 = vmatpush1.bf16.msra.mxu1 %v6174_v28  ;;  %5749 = vmatprep.subr.bf16.mxu0 %v6631_v20 }
0x111c   :  { %2849 = vmatprep.subr.bf16.mxu1 %v6180_v33 }
0x111e   :  { %5750 = vmatpush3.bf16.msra.mxu0 %v6181_v38 }
0x111f   :  { %2850 = vmatpush1.bf16.msra.mxu1 %v6178_v34  ;;  %5779 = vmatprep.subr.bf16.mxu0 %v6631_v20 }
0x1120   :  { %5755 = vmatprep.subr.bf16.mxu1 %v6631_v20 }
0x11d3   :  { %v5459_v59 = vpop.f32.mrb[52].mxu1 }
0x11d4   :  { %v5481_v62 = vpop.f32.mrb[40].mxu0  ;;  %v5460_v5 = vpop.f32.mrb[53].mxu1 }
0x11d5   :  { %v5461_v8 = vadd.f32 %v5460_v5, %v5459_v59  ;;  %v5482_v36 = vpop.f32.mrb[41].mxu0  ;;  %v5462_v11 = vpop.f32.mrb[54].mxu1  ;;  %v5153_v5 = vld [vmem:[%s7639_s18] ss:$0 sm:$0xff] }
0x11d6   :  { %v5483_v44 = vadd.f32 %v5482_v36, %v5481_v62  ;;  %v5484_v46 = vpop.f32.mrb[42].mxu0  ;;  %v5463_v49 = vpop.f32.mrb[55].mxu1 }
0x11d7   :  { %v2566_v51 = vadd.f32 %v5461_v8, %v5120_v63  ;;  %v5464_v53 = vadd.f32 %v5463_v49, %v5462_v11  ;;  %v5485_v54 = vpop.f32.mrb[43].mxu0 }
0x11d8   :  { %v5486_v55 = vadd.f32 %v5485_v54, %v5484_v46  ;;  %v5154_v46 = vld [vmem:[%s7640_s19] ss:$0 sm:$0xff] }
0x11d9   :  { %v2607_v56 = vadd.f32 %v5483_v44, %v2566_v51  ;;  %v2569_v57 = vadd.f32 %v5464_v53, %v5120_v63 }
0x11db   :  { %v2610_v60 = vadd.f32 %v5486_v55, %v2569_v57  ;;  %v2613_v61 = vadd.f32 %v2607_v56, %v7193_v29  ;;  %v5155_v55 = vld [vmem:[%s7630_s9 + $0x3] sm:$0x7] }
0x11dc   :  { %v2699_v56 = vrot.slane %v5155_v55, %v6954_v7  ;;  %v2695_v57 = vrot.slane %v5155_v55, %v6960_v9 }
0x11dd   :  { %2617 = vadd.xlane.f32.xlu0 %v2613_v61  ;;  %v2614_v45 = vadd.f32 %v2610_v60, %v7195_v35 }
0x11df   :  { %2619 = vadd.xlane.f32.xlu1 %v2614_v45 }
0x126a   :  { %v2618_v29 = vpop.xlane.xlu0 %2617 }
0x126b   :  { %v2621_v48 = vmul.f32 0.0078125, %v2618_v29 }
0x126c   :  { %v2620_v35 = vpop.xlane.xlu1 %2619 }
0x126d   :  { %v2623_v12 = vsub.f32 %v2613_v61, %v2621_v48  ;;  %v2622_v13 = vmul.f32 0.0078125, %v2620_v35 }
0x126f   :  { %v2624_v42 = vsub.f32 %v2614_v45, %v2622_v13  ;;  %v2625_v3 = vmul.f32 %v2623_v12, %v2623_v12  ;;  %v2703_v45 = vrot.slane %v5155_v55, %v6963_v10 }
0x1271   :  { %2627 = vadd.xlane.f32.xlu0 %v2625_v3  ;;  %v2626_v14 = vmul.f32 %v2624_v42, %v2624_v42 }
0x1273   :  { %2629 = vadd.xlane.f32.xlu1 %v2626_v14 }
0x12fe   :  { %v2628_v39 = vpop.xlane.xlu0 %2627 }
0x12ff   :  { %v2631_v40 = vmul.f32 0.0078125, %v2628_v39 }
0x1300   :  { %v2630_v41 = vpop.xlane.xlu1 %2629 }
0x1301   :  { %v2633_v58 = vadd.f32 1e-12, %v2631_v40  ;;  %v2632_v59 = vmul.f32 0.0078125, %v2630_v41 }
0x1303   :  { %6342 = vrsqrt.f32 %v2633_v58  ;;  %v2634_v62 = vadd.f32 1e-12, %v2632_v59 }
0x1305   :  { %6344 = vrsqrt.f32 %v2634_v62 }
0x130d   :  { %v6343_v63 = vpop.eup %6342 }
0x130e   :  { %v2637_v8 = vmul.f32 %v6343_v63, %v2623_v12 }
0x130f   :  { %v6345_v36 = vpop.eup %6344 }
0x1310   :  { %v2638_v11 = vmul.f32 %v6345_v36, %v2624_v42  ;;  %v2645_v44 = vmul.f32 %v5153_v5, %v2637_v8 }
0x1312   :  { %v2646_v49 = vmul.f32 %v5153_v5, %v2638_v11  ;;  %v7288_v51 = vadd.f32 %v5154_v46, %v2645_v44 }
0x1314   :  { %v7290_v53 = vadd.f32 %v5154_v46, %v2646_v49 }
0x1316   :  { %v2655_v54 = vpack.c.bf16 %v7290_v53, %v7288_v51 }
0x1318   :  { %2868 = vmatmul.mubr.bf16.vlgmr.msra.gmra.mrb[56].mxu1 %v2655_v54  ;;  %5752 = vmatmul.mubr.bf16.vlgmr.msra.gmra.mrb[44].mxu0 %v2655_v54 }
0x1319   :  { %5757 = vmatprep.mubr.msk.bf16.mxu1 %vm6632_vm8, %v6631_v20  ;;  %5781 = vmatprep.mubr.msk.bf16.mxu0 %vm6632_vm8, %v6631_v20 }
0x13eb   :  { %v2869_v60 = vpop.f32.mrb[56].mxu1  ;;  %v2912_v61 = vpop.f32.mrb[44].mxu0 }
0x13ec   :  { %v2871_v1 = vpop.f32.mrb[57].mxu1  ;;  %v5753_v37 = vpop.f32.mrb[45].mxu0  ;;  %v2870_v35 = vadd.f32 %v2869_v60, %v2695_v57  ;;  %v2913_v17 = vadd.f32 %v2912_v61, %v2703_v45 }
0x13ed   :  { %v2872_v2 = vadd.f32 %v2871_v1, %v2699_v56  ;;  %v2873_v25 = vpop.f32.mrb[58].mxu1  ;;  %v2915_v31 = vpop.f32.mrb[46].mxu0 }
0x13ee   :  { %v7304_v47 = vadd.f32 %v2915_v31, %v2703_v45  ;;  %v2875_v29 = vpop.f32.mrb[59].mxu1  ;;  %v5754_v48 = vpop.f32.mrb[47].mxu0  ;;  %v2919_v3 = vmul.f32 0.17677669, %v2870_v35  ;;  %v2874_v15 = vadd.f32 %v2873_v25, %v2695_v57  ;;  %v7322_v30 = vpack.c.bf16 %v2913_v17, %v2913_v17 }
0x13ef   :  { %v7306_v12 = vpack.c.bf16 %v2872_v2, %v2872_v2  ;;  %v2876_v13 = vadd.f32 %v2875_v29, %v2699_v56 }
0x13f0   :  { %v7313_v4 = vpack.c.bf16 %v2919_v3, %v2919_v3  ;;  %v2920_v16 = vmul.f32 0.17677669, %v2874_v15  ;;  %v3059_v22 = vsel %vm954_vm10, %v7322_v30, 0  ;;  %v7351_v57 = vpack.c.bf16 %v7304_v47, %v7304_v47 }
0x13f1   :  { %v2943_v42 = vsel %vm833_vm9, %v7306_v12, 0  ;;  %v7311_v14 = vpack.c.bf16 %v2876_v13, %v2876_v13 }
0x13f2   :  { %5756 = vmatpush3.bf16.xpose.msra.mxu1 %v2943_v42  ;;  %v7324_v19 = vpack.c.bf16 %v2920_v16, %v2920_v16  ;;  %v3105_v1 = vsel %vm954_vm10, %v7351_v57, 0 }
0x13f3   :  { %5761 = vmatprep.subr.bf16.mxu1 %v6631_v20  ;;  %v2989_v18 = vsel %vm833_vm9, %v7311_v14, 0 }
0x13f9   :  { %5758 = vmatmul.mubr.msk.bf16.vlgmr.msra.gmra.mrb[60].mxu1 %vm833_vm9, %v7313_v4 }
0x13fa   :  { %5762 = vmatpush3.bf16.xpose.msra.mxu1 %v2989_v18  ;;  %5763 = vmatprep.mubr.msk.bf16.mxu1 %vm6632_vm8, %v6631_v20 }
0x13fb   :  { %5767 = vmatprep.subr.bf16.mxu1 %v6631_v20 }
0x1401   :  { %5764 = vmatmul.mubr.msk.bf16.vlgmr.msra.gmra.mrb[64].mxu1 %vm833_vm9, %v7324_v19 }
0x1402   :  { %5768 = vmatpush3.bf16.msra.mxu1 %v3059_v22  ;;  %5769 = vmatprep.mubr.msk.bf16.mxu1 %vm6632_vm8, %v6631_v20 }
0x1403   :  { %5773 = vmatprep.subr.bf16.mxu1 %v6631_v20 }
0x14cc   :  { %v2979_v21 = vpop.f32.mrb[60].mxu1 }
0x14cd   :  { %v2980_v23 = vadd.f32 %v2979_v21, %v7004_v43  ;;  %v5759_v24 = vpop.f32.mrb[61].mxu1 }
0x14ce   :  { %v2982_v26 = vpop.f32.mrb[62].mxu1 }
0x14cf   :  { %v5760_v27 = vpop.f32.mrb[63].mxu1  ;;  %v3031_v28 = vsel %vm926_vm11, %v2980_v23, -inf }
0x14d0   :  { %3032 = vmax.xlane.f32.xlu0 %v3031_v28 }
0x14d4   :  { %v3025_v32 = vpop.f32.mrb[64].mxu1 }
0x14d5   :  { %v3026_v33 = vadd.f32 %v3025_v32, %v7009_v52  ;;  %v5765_v34 = vpop.f32.mrb[65].mxu1 }
0x14d6   :  { %v3028_v38 = vpop.f32.mrb[66].mxu1 }
0x14d7   :  { %v5766_v39 = vpop.f32.mrb[67].mxu1  ;;  %v3034_v40 = vsel %vm926_vm11, %v3026_v33, -inf }
0x14d8   :  { %3035 = vmax.xlane.f32.xlu1 %v3034_v40 }
0x155d   :  { %v3033_v41 = vpop.xlane.xlu0 %3032 }
0x155e   :  { %v3037_v58 = vsub.f32 %v2980_v23, %v3033_v41 }
0x1560   :  { %v3039_v59 = vmul.f32 1.442695, %v3037_v58 }
0x1562   :  { %6346 = vpow2.f32 %v3039_v59 }
0x1565   :  { %v3036_v62 = vpop.xlane.xlu1 %3035 }
0x1566   :  { %v3038_v63 = vsub.f32 %v3026_v33, %v3036_v62 }
0x1568   :  { %v3041_v5 = vmul.f32 1.442695, %v3038_v63 }
0x156a   :  { %6348 = vpow2.f32 %v3041_v5 }
0x156c   :  { %v6347_v8 = vpop.eup %6346 }
0x156d   :  { %v3043_v36 = vsel %vm926_vm11, %v6347_v8, 0.0 }
0x156e   :  { %3044 = vadd.xlane.f32.xlu0 %v3043_v36 }
0x1574   :  { %v6349_v11 = vpop.eup %6348 }
0x1575   :  { %v3046_v44 = vsel %vm926_vm11, %v6349_v11, 0.0 }
0x1576   :  { %3047 = vadd.xlane.f32.xlu1 %v3046_v44 }
0x1584   :  { %3149 = vrot.lane.b32.xlu0 %v7306_v12, %s6633_s14 }
0x1587   :  { %3199 = vrot.lane.b32.xlu1 %v7311_v14, %s6633_s14 }
0x1588   :  { %3197 = vrot.lane.b32.xlu0 %v7324_v19, %s6633_s14 }
0x158b   :  { %3147 = vrot.lane.b32.xlu1 %v7313_v4, %s6633_s14 }
0x15fb   :  { %v3045_v46 = vpop.xlane.xlu0 %3044 }
0x15fc   :  { %6350 = vrcp.f32 %v3045_v46 }
0x15ff   :  { %v3150_v49 = vpop.permute.xlu0 %3149 }
0x1600   :  { %v3155_v54 = vsel %vm833_vm9, %v3150_v49, 0 }
0x1601   :  { %5780 = vmatpush3.bf16.xpose.msra.mxu0 %v3155_v54 }
0x1602   :  { %5791 = vmatprep.subr.bf16.mxu0 %v6631_v20 }
0x1603   :  { %v3048_v55 = vpop.xlane.xlu1 %3047  ;;  %v3198_v29 = vpop.permute.xlu0 %3197 }
0x1604   :  { %6352 = vrcp.f32 %v3048_v55 }
0x1606   :  { %v6351_v56 = vpop.eup %6350 }
0x1607   :  { %v3051_v60 = vmul.f32 %v6351_v56, %v6347_v8  ;;  %v3200_v61 = vpop.permute.xlu1 %3199 }
0x1608   :  { %v3205_v47 = vsel %vm833_vm9, %v3200_v61, 0 }
0x1609   :  { %v3053_v45 = vpack.c.bf16 %v3051_v60, %v3051_v60 }
0x160b   :  { %5770 = vmatmul.mubr.msk.bf16.vlgmr.msra.gmra.mrb[68].mxu1 %vm926_vm11, %v3053_v45  ;;  %v3148_v37 = vpop.permute.xlu1 %3147 }
0x160c   :  { %5774 = vmatpush3.bf16.msra.mxu1 %v3105_v1  ;;  %5782 = vmatmul.mubr.msk.bf16.vlgmr.msra.gmra.mrb[48].mxu0 %vm833_vm9, %v3148_v37 }
0x160d   :  { %5775 = vmatprep.mubr.msk.bf16.mxu1 %vm6632_vm8, %v6631_v20  ;;  %5785 = vmatprep.subr.bf16.mxu1 %v6631_v20 }
0x160e   :  { %v6353_v2 = vpop.eup %6352  ;;  %5793 = vmatprep.mubr.msk.bf16.mxu0 %vm6632_vm8, %v6631_v20 }
0x160f   :  { %v3052_v25 = vmul.f32 %v6353_v2, %v6349_v11 }
0x1611   :  { %v3054_v31 = vpack.c.bf16 %v3052_v25, %v3052_v25 }
0x1613   :  { %5776 = vmatmul.mubr.msk.bf16.vlgmr.msra.gmra.mrb[72].mxu1 %vm926_vm11, %v3054_v31 }
0x1614   :  { %5787 = vmatprep.mubr.msk.bf16.mxu1 %vm6632_vm8, %v6631_v20 }
0x1615   :  { %5786 = vmatpush3.bf16.xpose.msra.mxu1 %v3205_v47 }
0x1616   :  { %5797 = vmatprep.subr.bf16.mxu1 %v6631_v20 }
0x161c   :  { %5788 = vmatmul.mubr.msk.bf16.vlgmr.msra.gmra.mrb[76].mxu1 %vm833_vm9, %v3198_v29 }
0x161d   :  { %5799 = vmatprep.mubr.msk.bf16.mxu1 %vm6632_vm8, %v6631_v20 }
0x16de   :  { %v7370_v48 = vpop.f32.mrb[68].mxu1 }
0x16df   :  { %v5771_v35 = vpop.f32.mrb[69].mxu1  ;;  %v3191_v13 = vpop.f32.mrb[48].mxu0 }
0x16e0   :  { %v3192_v42 = vadd.f32 %v3191_v13, %v7004_v43  ;;  %v3098_v3 = vpop.f32.mrb[70].mxu1  ;;  %v5783_v15 = vpop.f32.mrb[49].mxu0 }
0x16e1   :  { %v5772_v17 = vpop.f32.mrb[71].mxu1  ;;  %v3194_v18 = vpop.f32.mrb[50].mxu0 }
0x16e2   :  { %v5784_v16 = vpop.f32.mrb[51].mxu0  ;;  %v3247_v22 = vsel %vm926_vm11, %v3192_v42, -inf }
0x16e3   :  { %3248 = vmax.xlane.f32.xlu1 %v3247_v22 }
0x16e6   :  { %v7374_v21 = vpop.f32.mrb[72].mxu1 }
0x16e7   :  { %v5777_v23 = vpop.f32.mrb[73].mxu1 }
0x16e8   :  { %v3144_v24 = vpop.f32.mrb[74].mxu1 }
0x16e9   :  { %v5778_v26 = vpop.f32.mrb[75].mxu1 }
0x16ef   :  { %v3241_v27 = vpop.f32.mrb[76].mxu1 }
0x16f0   :  { %v3242_v28 = vadd.f32 %v3241_v27, %v7009_v52  ;;  %v5789_v32 = vpop.f32.mrb[77].mxu1 }
0x16f1   :  { %v3244_v33 = vpop.f32.mrb[78].mxu1 }
0x16f2   :  { %v5790_v34 = vpop.f32.mrb[79].mxu1  ;;  %v3250_v38 = vsel %vm926_vm11, %v3242_v28, -inf }
0x16f3   :  { %3251 = vmax.xlane.f32.xlu0 %v3250_v38 }
0x16f4   :  { %3319 = vrot.lane.b32.xlu1 %v7351_v57, %s6633_s14 }
0x1770   :  { %v3249_v39 = vpop.xlane.xlu1 %3248 }
0x1771   :  { %v3253_v40 = vsub.f32 %v3192_v42, %v3249_v39 }
0x1773   :  { %v3255_v41 = vmul.f32 1.442695, %v3253_v40 }
0x1774   :  { %v3320_v58 = vpop.permute.xlu1 %3319 }
0x1775   :  { %6354 = vpow2.f32 %v3255_v41  ;;  %v3325_v59 = vsel %vm954_vm10, %v3320_v58, 0 }
0x1776   :  { %5798 = vmatpush3.bf16.msra.mxu1 %v3325_v59 }
0x1777   :  { %5809 = vmatprep.subr.bf16.mxu1 %v6631_v20 }
0x177f   :  { %v6355_v62 = vpop.eup %6354 }
0x1780   :  { %v3252_v63 = vpop.xlane.xlu0 %3251  ;;  %v3259_v5 = vsel %vm926_vm11, %v6355_v62, 0.0 }
0x1781   :  { %v3254_v8 = vsub.f32 %v3242_v28, %v3252_v63  ;;  %3260 = vadd.xlane.f32.xlu0 %v3259_v5 }
0x1783   :  { %v3257_v36 = vmul.f32 1.442695, %v3254_v8 }
0x1785   :  { %6356 = vpow2.f32 %v3257_v36 }
0x178f   :  { %v6357_v11 = vpop.eup %6356 }
0x1790   :  { %v3262_v44 = vsel %vm926_vm11, %v6357_v11, 0.0 }
0x1791   :  { %3263 = vadd.xlane.f32.xlu1 %v3262_v44 }
0x1797   :  { %3271 = vrot.lane.b32.xlu0 %v7322_v30, %s6633_s14 }
0x179b   :  { %3419 = vrot.lane.b32.xlu0 %v7311_v14, %s6620_s27 }
0x179f   :  { %3417 = vrot.lane.b32.xlu0 %v7324_v19, %s6620_s27 }
0x17a2   :  { %3369 = vrot.lane.b32.xlu1 %v7306_v12, %s6620_s27 }
0x17a6   :  { %3367 = vrot.lane.b32.xlu1 %v7313_v4, %s6620_s27 }
0x180e   :  { %v3261_v46 = vpop.xlane.xlu0 %3260 }
0x180f   :  { %6358 = vrcp.f32 %v3261_v46 }
0x1812   :  { %v3272_v49 = vpop.permute.xlu0 %3271 }
0x1813   :  { %v3277_v54 = vsel %vm954_vm10, %v3272_v49, 0 }
0x1814   :  { %5792 = vmatpush3.bf16.msra.mxu0 %v3277_v54 }
0x1815   :  { %5803 = vmatprep.subr.bf16.mxu0 %v6631_v20 }
0x1816   :  { %v3420_v31 = vpop.permute.xlu0 %3419 }
0x1817   :  { %v3425_v29 = vsel %vm833_vm9, %v3420_v31, 0 }
0x1819   :  { %v6359_v55 = vpop.eup %6358 }
0x181a   :  { %v3267_v56 = vmul.f32 %v6359_v55, %v6355_v62  ;;  %v3418_v35 = vpop.permute.xlu0 %3417 }
0x181c   :  { %v3269_v60 = vpack.c.bf16 %v3267_v56, %v3267_v56 }
0x181e   :  { %v3264_v61 = vpop.xlane.xlu1 %3263  ;;  %5794 = vmatmul.mubr.msk.bf16.vlgmr.msra.gmra.mrb[52].mxu0 %vm926_vm11, %v3269_v60 }
0x181f   :  { %6360 = vrcp.f32 %v3264_v61  ;;  %5805 = vmatprep.mubr.msk.bf16.mxu0 %vm6632_vm8, %v6631_v20 }
0x1822   :  { %v3370_v45 = vpop.permute.xlu1 %3369 }
0x1823   :  { %v3375_v1 = vsel %vm833_vm9, %v3370_v45, 0 }
0x1824   :  { %5804 = vmatpush3.bf16.xpose.msra.mxu0 %v3375_v1 }
0x1825   :  { %5815 = vmatprep.subr.bf16.mxu0 %v6631_v20 }
0x1826   :  { %v3368_v25 = vpop.permute.xlu1 %3367 }
0x1829   :  { %v6361_v37 = vpop.eup %6360 }
0x182a   :  { %v3268_v2 = vmul.f32 %v6361_v37, %v6357_v11 }
0x182b   :  { %5806 = vmatmul.mubr.msk.bf16.vlgmr.msra.gmra.mrb[56].mxu0 %vm833_vm9, %v3368_v25 }
0x182c   :  { %v3270_v47 = vpack.c.bf16 %v3268_v2, %v3268_v2  ;;  %5817 = vmatprep.mubr.msk.bf16.mxu0 %vm6632_vm8, %v6631_v20 }
0x182e   :  { %5800 = vmatmul.mubr.msk.bf16.vlgmr.msra.gmra.mrb[80].mxu1 %vm926_vm11, %v3270_v47 }
0x182f   :  { %5810 = vmatpush3.bf16.xpose.msra.mxu1 %v3425_v29  ;;  %5811 = vmatprep.mubr.msk.bf16.mxu1 %vm6632_vm8, %v6631_v20 }
0x1830   :  { %5821 = vmatprep.subr.bf16.mxu1 %v6631_v20 }
0x1836   :  { %5812 = vmatmul.mubr.msk.bf16.vlgmr.msra.gmra.mrb[84].mxu1 %vm833_vm9, %v3418_v35 }
0x1837   :  { %5823 = vmatprep.mubr.msk.bf16.mxu1 %vm6632_vm8, %v6631_v20 }
0x18f1   :  { %v7412_v13 = vpop.f32.mrb[52].mxu0 }
0x18f2   :  { %v5795_v42 = vpop.f32.mrb[53].mxu0 }
0x18f3   :  { %v3316_v3 = vpop.f32.mrb[54].mxu0 }
0x18f4   :  { %v5796_v15 = vpop.f32.mrb[55].mxu0 }
0x18fe   :  { %v3411_v17 = vpop.f32.mrb[56].mxu0 }
0x18ff   :  { %v3412_v18 = vadd.f32 %v3411_v17, %v7004_v43  ;;  %v5807_v16 = vpop.f32.mrb[57].mxu0 }
0x1900   :  { %v3414_v22 = vpop.f32.mrb[58].mxu0 }
0x1901   :  { %v7415_v23 = vpop.f32.mrb[80].mxu1  ;;  %v5808_v24 = vpop.f32.mrb[59].mxu0  ;;  %v3467_v26 = vsel %vm926_vm11, %v3412_v18, -inf }
0x1902   :  { %v6015_v27 = vpack.i.bf16 %v7415_v23, %v7412_v13  ;;  %3468 = vmax.xlane.f32.xlu1 %v3467_v26  ;;  %v5801_v28 = vpop.f32.mrb[81].mxu1 }
0x1903   :  { %v3364_v32 = vpop.f32.mrb[82].mxu1 }
0x1904   :  { %v5802_v33 = vpop.f32.mrb[83].mxu1 }
0x1909   :  { %v3461_v34 = vpop.f32.mrb[84].mxu1 }
0x190a   :  { %v3462_v38 = vadd.f32 %v3461_v34, %v7009_v52  ;;  %v5813_v39 = vpop.f32.mrb[85].mxu1 }
0x190b   :  { %v3464_v40 = vpop.f32.mrb[86].mxu1 }
0x190c   :  { %v5814_v41 = vpop.f32.mrb[87].mxu1  ;;  %v3470_v58 = vsel %vm926_vm11, %v3462_v38, -inf }
0x190d   :  { %3471 = vmax.xlane.f32.xlu0 %v3470_v58 }
0x1913   :  { %3539 = vrot.lane.b32.xlu1 %v7351_v57, %s6620_s27 }
0x198f   :  { %v3469_v59 = vpop.xlane.xlu1 %3468 }
0x1990   :  { %v3473_v62 = vsub.f32 %v3412_v18, %v3469_v59 }
0x1992   :  { %v3475_v63 = vmul.f32 1.442695, %v3473_v62 }
0x1993   :  { %v3540_v5 = vpop.permute.xlu1 %3539 }
0x1994   :  { %6362 = vpow2.f32 %v3475_v63  ;;  %v3545_v8 = vsel %vm954_vm10, %v3540_v5, 0 }
0x1995   :  { %5822 = vmatpush3.bf16.msra.mxu1 %v3545_v8 }
0x1996   :  { %5833 = vmatprep.subr.bf16.mxu1 %v6631_v20 }
0x199a   :  { %v3472_v36 = vpop.xlane.xlu0 %3471 }
0x199b   :  { %v3474_v11 = vsub.f32 %v3462_v38, %v3472_v36 }
0x199d   :  { %v3477_v44 = vmul.f32 1.442695, %v3474_v11 }
0x199e   :  { %v6363_v46 = vpop.eup %6362 }
0x199f   :  { %6364 = vpow2.f32 %v3477_v44  ;;  %v3479_v49 = vsel %vm926_vm11, %v6363_v46, 0.0 }
0x19a0   :  { %3480 = vadd.xlane.f32.xlu0 %v3479_v49 }
0x19a9   :  { %v6365_v54 = vpop.eup %6364 }
0x19aa   :  { %v3482_v55 = vsel %vm926_vm11, %v6365_v54, 0.0 }
0x19ab   :  { %3483 = vadd.xlane.f32.xlu1 %v3482_v55 }
0x19b6   :  { %3491 = vrot.lane.b32.xlu0 %v7322_v30, %s6620_s27 }
0x19ba   :  { %3639 = vrot.lane.b32.xlu0 %v7311_v14, %s6634_s30 }
0x19bc   :  { %3589 = vrot.lane.b32.xlu1 %v7306_v12, %s6634_s30 }
0x19be   :  { %3637 = vrot.lane.b32.xlu0 %v7324_v19, %s6634_s30 }
0x19c0   :  { %3587 = vrot.lane.b32.xlu1 %v7313_v4, %s6634_s30 }
0x1a2d   :  { %v3481_v56 = vpop.xlane.xlu0 %3480 }
0x1a2e   :  { %6366 = vrcp.f32 %v3481_v56 }
0x1a31   :  { %v3492_v60 = vpop.permute.xlu0 %3491 }
0x1a32   :  { %v3497_v61 = vsel %vm954_vm10, %v3492_v60, 0 }
0x1a33   :  { %5816 = vmatpush3.bf16.msra.mxu0 %v3497_v61 }
0x1a34   :  { %5827 = vmatprep.subr.bf16.mxu0 %v6631_v20 }
0x1a35   :  { %v3640_v31 = vpop.permute.xlu0 %3639 }
0x1a36   :  { %v3645_v29 = vsel %vm833_vm9, %v3640_v31, 0  ;;  %v6188_v31 = vld [vmem:[#allocation6 + $0x70] sm:$0xff]  }
0x1a38   :  { %v6367_v45 = vpop.eup %6366  ;;  %v3484_v1 = vpop.xlane.xlu1 %3483 }
0x1a39   :  { %v3487_v14 = vmul.f32 %v6367_v45, %v6363_v46  ;;  %6368 = vrcp.f32 %v3484_v1  ;;  %v3638_v35 = vpop.permute.xlu0 %3637 }
0x1a3b   :  { %v3489_v37 = vpack.c.bf16 %v3487_v14, %v3487_v14 }
0x1a3c   :  { %v3590_v12 = vpop.permute.xlu1 %3589 }
0x1a3d   :  { %v3595_v2 = vsel %vm833_vm9, %v3590_v12, 0  ;;  %5818 = vmatmul.mubr.msk.bf16.vlgmr.msra.gmra.mrb[60].mxu0 %vm926_vm11, %v3489_v37  ;;  %v6182_v37 = vld [vmem:[#allocation6 + $0x40] sm:$0xff]   ;;  %v6183_v12 = vld [vmem:[#allocation6 + $0x48] sm:$0xff]  }
0x1a3e   :  { %5828 = vmatpush3.bf16.xpose.msra.mxu0 %v3595_v2  ;;  %5829 = vmatprep.mubr.msk.bf16.mxu0 %vm6632_vm8, %v6631_v20  ;;  %v6184_v2 = vld [vmem:[#allocation6 + $0x50] sm:$0xff]  }
0x1a3f   :  { %5839 = vmatprep.subr.bf16.mxu0 %v6631_v20 }
0x1a40   :  { %v3588_v25 = vpop.permute.xlu1 %3587 }
0x1a43   :  { %v6369_v4 = vpop.eup %6368 }
0x1a44   :  { %v3488_v19 = vmul.f32 %v6369_v4, %v6365_v54  ;;  %v6185_v4 = vld [vmem:[#allocation6 + $0x58] sm:$0xff]  }
0x1a45   :  { %5830 = vmatmul.mubr.msk.bf16.vlgmr.msra.gmra.mrb[64].mxu0 %vm833_vm9, %v3588_v25  ;;  %v6187_v25 = vld [vmem:[#allocation6 + $0x68] sm:$0xff]  }
0x1a46   :  { %v3490_v47 = vpack.c.bf16 %v3488_v19, %v3488_v19  ;;  %5841 = vmatprep.mubr.msk.bf16.mxu0 %vm6632_vm8, %v6631_v20  ;;  %v6186_v19 = vld [vmem:[#allocation6 + $0x60] sm:$0xff]  }
0x1a48   :  { %5824 = vmatmul.mubr.msk.bf16.vlgmr.msra.gmra.mrb[88].mxu1 %vm926_vm11, %v3490_v47 }
0x1a49   :  { %5834 = vmatpush3.bf16.xpose.msra.mxu1 %v3645_v29  ;;  %5835 = vmatprep.mubr.msk.bf16.mxu1 %vm6632_vm8, %v6631_v20 }
0x1a4a   :  { %5845 = vmatprep.subr.bf16.mxu1 %v6631_v20 }
0x1a50   :  { %5836 = vmatmul.mubr.msk.bf16.vlgmr.msra.gmra.mrb[92].mxu1 %vm833_vm9, %v3638_v35 }
0x1a51   :  { %5847 = vmatprep.mubr.msk.bf16.mxu1 %vm6632_vm8, %v6631_v20 }
0x1b10   :  { %v3533_v42 = vpop.f32.mrb[60].mxu0 }
0x1b11   :  { %v5819_v3 = vpop.f32.mrb[61].mxu0 }
0x1b12   :  { %v3536_v15 = vpop.f32.mrb[62].mxu0 }
0x1b13   :  { %v5820_v17 = vpop.f32.mrb[63].mxu0 }
0x1b18   :  { %v3631_v18 = vpop.f32.mrb[64].mxu0 }
0x1b19   :  { %v3632_v16 = vadd.f32 %v3631_v18, %v7004_v43  ;;  %v5831_v22 = vpop.f32.mrb[65].mxu0 }
0x1b1a   :  { %v3634_v24 = vpop.f32.mrb[66].mxu0 }
0x1b1b   :  { %v3581_v26 = vpop.f32.mrb[88].mxu1  ;;  %v5832_v28 = vpop.f32.mrb[67].mxu0  ;;  %v3687_v32 = vsel %vm926_vm11, %v3632_v16, -inf }
0x1b1c   :  { %v6020_v33 = vpack.i.bf16 %v3581_v26, %v3533_v42  ;;  %3688 = vmax.xlane.f32.xlu1 %v3687_v32  ;;  %v5825_v34 = vpop.f32.mrb[89].mxu1  ;;  %v6189_v42 = vld [vmem:[#allocation6 + $0x78] sm:$0xff]  }
0x1b1d   :  { %v3584_v38 = vpop.f32.mrb[90].mxu1 }
0x1b1e   :  { %v5826_v39 = vpop.f32.mrb[91].mxu1 }
0x1b23   :  { %v3681_v40 = vpop.f32.mrb[92].mxu1 }
0x1b24   :  { %v3682_v41 = vadd.f32 %v3681_v40, %v7009_v52  ;;  %v5837_v58 = vpop.f32.mrb[93].mxu1 }
0x1b25   :  { %v3684_v59 = vpop.f32.mrb[94].mxu1 }
0x1b26   :  { %v5838_v62 = vpop.f32.mrb[95].mxu1  ;;  %v3690_v63 = vsel %vm926_vm11, %v3682_v41, -inf }
0x1b27   :  { %3691 = vmax.xlane.f32.xlu0 %v3690_v63 }
0x1ba9   :  { %v3689_v43 = vpop.xlane.xlu1 %3688 }
0x1baa   :  { %v3693_v5 = vsub.f32 %v3632_v16, %v3689_v43 }
0x1bac   :  { %v3695_v8 = vmul.f32 1.442695, %v3693_v5 }
0x1bae   :  { %6370 = vpow2.f32 %v3695_v8 }
0x1bb4   :  { %v3692_v36 = vpop.xlane.xlu0 %3691 }
0x1bb5   :  { %v3694_v11 = vsub.f32 %v3682_v41, %v3692_v36 }
0x1bb7   :  { %v3697_v44 = vmul.f32 1.442695, %v3694_v11 }
0x1bb8   :  { %v6371_v46 = vpop.eup %6370 }
0x1bb9   :  { %6372 = vpow2.f32 %v3697_v44  ;;  %v3699_v49 = vsel %vm926_vm11, %v6371_v46, 0.0 }
0x1bba   :  { %3700 = vadd.xlane.f32.xlu0 %v3699_v49 }
0x1bc3   :  { %v6373_v54 = vpop.eup %6372 }
0x1bc4   :  { %v3702_v52 = vsel %vm926_vm11, %v6373_v54, 0.0 }
0x1bc5   :  { %3703 = vadd.xlane.f32.xlu1 %v3702_v52  ;;  %v6190_v52 = vld [vmem:[#allocation7 + $0x100] ss:$16 sps:$4 sm:$0xff]  }
0x1bd0   :  { %3711 = vrot.lane.b32.xlu0 %v7322_v30, %s6634_s30 }
0x1bd4   :  { %6021 = vrot.lane.b32.xlu0 %v6020_v33, %s6620_s27 }
0x1bd6   :  { %3759 = vrot.lane.b32.xlu1 %v7351_v57, %s6634_s30 }
0x1bda   :  { %6016 = vrot.lane.b32.xlu1 %v6015_v27, %s6634_s30 }
0x1c47   :  { %v3701_v55 = vpop.xlane.xlu0 %3700 }
0x1c48   :  { %6374 = vrcp.f32 %v3701_v55  ;;  %v6192_v55 = vld [vmem:[#allocation7 + $0x104] ss:$16 sps:$4 sm:$0xff]  }
0x1c4b   :  { %v3712_v56 = vpop.permute.xlu0 %3711 }
0x1c4c   :  { %v3717_v60 = vsel %vm954_vm10, %v3712_v56, 0  ;;  %v6193_v56 = vld [vmem:[#allocation7 + $0x108] ss:$16 sps:$4 sm:$0xff]  }
0x1c4d   :  { %5840 = vmatpush3.bf16.msra.mxu0 %v3717_v60  ;;  %v6198_v60 = vld [vmem:[#allocation7 + $0x124] ss:$16 sps:$4 sm:$0xff]  }
0x1c4e   :  { %5851 = vmatprep.subr.bf16.mxu0 %v6631_v20 }
0x1c4f   :  { %v6022_v32 = vpop.permute.xlu0 %6021 }
0x1c50   :  { %v6024_v38 = vunpack.i.h.bf16 %v6022_v32  ;;  %v6023_v39 = vunpack.i.l.bf16 %v6022_v32  ;;  %v6234_v32 = vld [vmem:[#allocation7 + $0x1e4] ss:$16 sps:$4 sm:$0xff]  }
0x1c52   :  { %v6375_v61 = vpop.eup %6374  ;;  %v3704_v30 = vpop.xlane.xlu1 %3703 }
0x1c53   :  { %v3707_v45 = vmul.f32 %v6375_v61, %v6371_v46  ;;  %6376 = vrcp.f32 %v3704_v30  ;;  %v6201_v61 = vld [vmem:[#allocation7 + $0x12c] ss:$16 sps:$4 sm:$0xff]   ;;  %v6196_v30 = vld [vmem:[#allocation7 + $0x120] ss:$16 sps:$4 sm:$0xff]  }
0x1c55   :  { %v3709_v1 = vpack.c.bf16 %v3707_v45, %v3707_v45  ;;  %v6199_v45 = vld [vmem:[#allocation7 + $0x128] ss:$16 sps:$4 sm:$0xff]  }
0x1c56   :  { %v3760_v14 = vpop.permute.xlu1 %3759 }
0x1c57   :  { %v3765_v57 = vsel %vm954_vm10, %v3760_v14, 0  ;;  %5842 = vmatmul.mubr.msk.bf16.vlgmr.msra.gmra.mrb[68].mxu0 %vm926_vm11, %v3709_v1 }
0x1c58   :  { %5846 = vmatpush3.bf16.msra.mxu1 %v3765_v57  ;;  %5867 = vmatprep.mubr.msk.bf16.mxu0 %vm6632_vm8, %v6631_v20 }
0x1c59   :  { %5852 = vmatpush3.bf16.msra.mxu0 %v6182_v37  ;;  %4213 = vmatprep.subr.bf16.mxu1 %v6192_v55  ;;  %v6204_v37 = vld [vmem:[#allocation7 + $0x144] ss:$16 sps:$4 sm:$0xff]  }
0x1c5a   :  { %5853 = vmatprep.subr.bf16.mxu0 %v6631_v20  ;;  %v6017_v24 = vpop.permute.xlu1 %6016  ;;  %v6240_v55 = vld [vmem:[#allocation9 + $0x100] sm:$0xff]  }
0x1c5b   :  { %v6019_v26 = vunpack.i.h.bf16 %v6017_v24  ;;  %v6018_v28 = vunpack.i.l.bf16 %v6017_v24  ;;  %v6231_v24 = vld [vmem:[#allocation7 + $0x1cc] ss:$16 sps:$4 sm:$0xff]  }
0x1c5d   :  { %v6377_v13 = vpop.eup %6376  ;;  %5854 = vmatpush3.bf16.msra.mxu0 %v6183_v12  ;;  %v3832_v33 = vsel %vm833_vm9, %v7374_v21, %v6019_v26  ;;  %v3831_v34 = vsel %vm833_vm9, %v7370_v48, %v6018_v28  ;;  %v5203_v48 = vld [vmem:[%s7632_s11 + $0x1] ss:$0 sm:$0xff]  ;;  %v6207_v12 = vld [vmem:[#allocation7 + $0x14c] ss:$16 sps:$4 sm:$0xff]   ;;  %v6229_v28 = vld [vmem:[#allocation7 + $0x1c8] ss:$16 sps:$4 sm:$0xff]  }
0x1c5e   :  { %v3708_v23 = vmul.f32 %v6377_v13, %v6373_v54  ;;  %5855 = vmatprep.subr.bf16.mxu0 %v6631_v20  ;;  %v3833_v59 = vsel %vm1730_vm12, %v3831_v34, %v6023_v39  ;;  %v3834_v62 = vsel %vm1730_vm12, %v3832_v33, %v6024_v38  ;;  %v6226_v26 = vld [vmem:[#allocation7 + $0x1c0] ss:$16 sps:$4 sm:$0xff]   ;;  %v6237_v33 = vld [vmem:[#allocation7 + $0x1ec] ss:$16 sps:$4 sm:$0xff]   ;;  %v6235_v38 = vld [vmem:[#allocation7 + $0x1e8] ss:$16 sps:$4 sm:$0xff]  }
0x1c5f   :  { %v6232_v34 = vld [vmem:[#allocation7 + $0x1e0] ss:$16 sps:$4 sm:$0xff]  }
0x1c60   :  { %v3710_v27 = vpack.c.bf16 %v3708_v23, %v3708_v23 }
0x1c61   :  { %5856 = vmatpush3.bf16.msra.mxu0 %v6184_v2  ;;  %v6202_v2 = vld [vmem:[#allocation7 + $0x140] ss:$16 sps:$4 sm:$0xff]  }
0x1c62   :  { %5848 = vmatmul.mubr.msk.bf16.vlgmr.msra.gmra.mrb[96].mxu1 %vm926_vm11, %v3710_v27  ;;  %5857 = vmatprep.subr.bf16.mxu0 %v6631_v20 }
0x1c63   :  { %4245 = vmatprep.mubr.bf16.mxu1 %v6629_v0  ;;  %4214 = vmatpush1.bf16.msra.mxu1 %v6190_v52  ;;  %v6239_v52 = vld [vmem:[#allocation9 + $0x1c0] sm:$0xff]  }
0x1c64   :  { %4215 = vmatprep.subr.bf16.mxu1 %v6198_v60  ;;  %v6243_v60 = vld [vmem:[#allocation9 + $0x1c8] sm:$0xff]  }
0x1c65   :  { %5858 = vmatpush3.bf16.msra.mxu0 %v6185_v4  ;;  %v6205_v4 = vld [vmem:[#allocation7 + $0x148] ss:$16 sps:$4 sm:$0xff]  }
0x1c66   :  { %5859 = vmatprep.subr.bf16.mxu0 %v6631_v20 }
0x1c67   :  { %4216 = vmatpush1.bf16.msra.mxu1 %v6196_v30  ;;  %v6245_v30 = vld [vmem:[#allocation9 + $0x188] sm:$0xff]  }
0x1c68   :  { %4217 = vmatprep.subr.bf16.mxu1 %v6204_v37  ;;  %v6255_v37 = vld [vmem:[#allocation9 + $0x1e0] sm:$0xff]  }
0x1c69   :  { %5860 = vmatpush3.bf16.msra.mxu0 %v6186_v19  ;;  %v6210_v19 = vld [vmem:[#allocation7 + $0x164] ss:$16 sps:$4 sm:$0xff]  }
0x1c6a   :  { %5861 = vmatprep.subr.bf16.mxu0 %v6631_v20 }
0x1c6b   :  { %4218 = vmatpush1.bf16.msra.mxu1 %v6202_v2  ;;  %v6257_v2 = vld [vmem:[#allocation9 + $0x1a0] sm:$0xff]  }
0x1c6c   :  { %4219 = vmatprep.subr.bf16.mxu1 %v6210_v19  ;;  %v6259_v19 = vld [vmem:[#allocation9 + $0x1e8] sm:$0xff]  }
0x1c6d   :  { %5862 = vmatpush3.bf16.msra.mxu0 %v6187_v25  ;;  %v6213_v25 = vld [vmem:[#allocation7 + $0x16c] ss:$16 sps:$4 sm:$0xff]  }
0x1c6e   :  { %5863 = vmatprep.subr.bf16.mxu0 %v6631_v20 }
0x1c71   :  { %5864 = vmatpush3.bf16.msra.mxu0 %v6188_v31  ;;  %v6208_v31 = vld [vmem:[#allocation7 + $0x160] ss:$16 sps:$4 sm:$0xff]  }
0x1c72   :  { %5865 = vmatprep.subr.bf16.mxu0 %v6631_v20  ;;  %4220 = vmatpush1.bf16.msra.mxu1 %v6208_v31  ;;  %v6261_v31 = vld [vmem:[#allocation9 + $0x1a8] sm:$0xff]  }
0x1c75   :  { %5866 = vmatpush3.bf16.msra.mxu0 %v6189_v42  ;;  %v6214_v42 = vld [vmem:[#allocation7 + $0x180] ss:$16 sps:$4 sm:$0xff]  }
0x1d2a   :  { %v3753_v47 = vpop.f32.mrb[68].mxu0 }
0x1d2b   :  { %v5843_v29 = vpop.f32.mrb[69].mxu0 }
0x1d2c   :  { %v3756_v35 = vpop.f32.mrb[70].mxu0  ;;  %v6216_v29 = vld [vmem:[#allocation7 + $0x184] ss:$16 sps:$4 sm:$0xff]  }
0x1d2d   :  { %v5844_v3 = vpop.f32.mrb[71].mxu0  ;;  %v6219_v35 = vld [vmem:[#allocation7 + $0x18c] ss:$16 sps:$4 sm:$0xff]   ;;  %4221 = vmatprep.subr.bf16.mxu1 %v6216_v29  ;;  %v6263_v29 = vld [vmem:[#allocation9 + $0x1f0] sm:$0xff]  }
0x1d2e   :  { %v6217_v3 = vld [vmem:[#allocation7 + $0x188] ss:$16 sps:$4 sm:$0xff]   ;;  %4222 = vmatpush1.bf16.msra.mxu1 %v6214_v42  ;;  %v6265_v42 = vld [vmem:[#allocation9 + $0x1b0] sm:$0xff]  }
0x1d35   :  { %v3801_v15 = vpop.f32.mrb[96].mxu1 }
0x1d36   :  { %v6025_v17 = vpack.i.bf16 %v3801_v15, %v3753_v47  ;;  %v5849_v18 = vpop.f32.mrb[97].mxu1  ;;  %v6211_v47 = vld [vmem:[#allocation7 + $0x168] ss:$16 sps:$4 sm:$0xff]   ;;  %v6222_v15 = vld [vmem:[#allocation7 + $0x1a4] ss:$16 sps:$4 sm:$0xff]  }
0x1d37   :  { %v3804_v16 = vpop.f32.mrb[98].mxu1  ;;  %v6220_v18 = vld [vmem:[#allocation7 + $0x1a0] ss:$16 sps:$4 sm:$0xff]   ;;  %4223 = vmatprep.subr.bf16.mxu1 %v6222_v15  ;;  %v6267_v15 = vld [vmem:[#allocation9 + $0x1f8] sm:$0xff]  }
0x1d38   :  { %6026 = vrot.lane.b32.xlu1 %v6025_v17, %s6633_s14  ;;  %v5850_v22 = vpop.f32.mrb[99].mxu1  ;;  %v6225_v17 = vld [vmem:[#allocation7 + $0x1ac] ss:$16 sps:$4 sm:$0xff]   ;;  %v6223_v16 = vld [vmem:[#allocation7 + $0x1a8] ss:$16 sps:$4 sm:$0xff]   ;;  %4224 = vmatpush1.bf16.msra.mxu1 %v6220_v18 }
0x1d39   :  { %v6228_v22 = vld [vmem:[#allocation7 + $0x1c4] ss:$16 sps:$4 sm:$0xff]   ;;  %v6269_v18 = vld [vmem:[#allocation9 + $0x1b8] sm:$0xff]  }
0x1d3a   :  { %4225 = vmatprep.subr.bf16.mxu1 %v6228_v22 }
0x1d3c   :  { %4226 = vmatpush1.bf16.msra.mxu1 %v6226_v26 }
0x1d3d   :  { %4227 = vmatprep.subr.bf16.mxu1 %v6234_v32 }
0x1d40   :  { %4228 = vmatpush1.bf16.msra.mxu1 %v6232_v34 }
0x1daa   :  { %v6027_v40 = vpop.permute.xlu1 %6026 }
0x1dab   :  { %v6029_v41 = vunpack.i.h.bf16 %v6027_v40  ;;  %v6028_v58 = vunpack.i.l.bf16 %v6027_v40 }
0x1dad   :  { %v3836_v63 = vsel %vm1733_vm13, %v3834_v62, %v6029_v41  ;;  %v3835_v43 = vsel %vm1733_vm13, %v3833_v59, %v6028_v58 }
0x1dae   :  { %v3837_v5 = vpack.c.bf16 %v3836_v63, %v3835_v43 }
0x1db0   :  { %5868 = vmatmul.mubr.bf16.vlgmr.msra.gmra.mrb[72].mxu0 %v3837_v5  ;;  %v5214_v5 = vld [vmem:[%s7633_s12 + $0x1] ss:$0 sm:$0xff] }
0x1db1   :  { %4288 = vmatprep.mubr.bf16.mxu0 %v6629_v0  ;;  %v6195_v0 = vld [vmem:[#allocation7 + $0x10c] ss:$16 sps:$4 sm:$0xff]  }
0x1db2   :  { %4256 = vmatprep.subr.bf16.mxu0 %v6195_v0  ;;  %v6242_v0 = vld [vmem:[#allocation9 + $0x148] sm:$0xff]  }
0x1db3   :  { %4257 = vmatpush1.bf16.msra.mxu0 %v6193_v56  ;;  %v6241_v56 = vld [vmem:[#allocation9 + $0x180] sm:$0xff]  }
0x1db4   :  { %4258 = vmatprep.subr.bf16.mxu0 %v6201_v61  ;;  %v6244_v61 = vld [vmem:[#allocation9 + $0x108] sm:$0xff]  }
0x1db7   :  { %4259 = vmatpush1.bf16.msra.mxu0 %v6199_v45  ;;  %v6246_v45 = vld [vmem:[#allocation9 + $0x150] sm:$0xff]  }
0x1db8   :  { %4260 = vmatprep.subr.bf16.mxu0 %v6207_v12  ;;  %v6256_v12 = vld [vmem:[#allocation9 + $0x120] sm:$0xff]  }
0x1dbb   :  { %4261 = vmatpush1.bf16.msra.mxu0 %v6205_v4  ;;  %v6258_v4 = vld [vmem:[#allocation9 + $0x168] sm:$0xff]  }
0x1dbc   :  { %4262 = vmatprep.subr.bf16.mxu0 %v6213_v25  ;;  %v6260_v25 = vld [vmem:[#allocation9 + $0x128] sm:$0xff]  }
0x1dbf   :  { %4263 = vmatpush1.bf16.msra.mxu0 %v6211_v47  ;;  %v6262_v47 = vld [vmem:[#allocation9 + $0x170] sm:$0xff]  }
0x1dc0   :  { %4264 = vmatprep.subr.bf16.mxu0 %v6219_v35  ;;  %v6264_v35 = vld [vmem:[#allocation9 + $0x130] sm:$0xff]  }
0x1dc3   :  { %4265 = vmatpush1.bf16.msra.mxu0 %v6217_v3  ;;  %v6266_v3 = vld [vmem:[#allocation9 + $0x178] sm:$0xff]  }
0x1dc4   :  { %4266 = vmatprep.subr.bf16.mxu0 %v6225_v17  ;;  %v6268_v17 = vld [vmem:[#allocation9 + $0x138] sm:$0xff]  }
0x1dc7   :  { %4267 = vmatpush1.bf16.msra.mxu0 %v6223_v16  ;;  %v5216_v16 = vld [vmem:[%s7636_s15 + $0x4] sm:$0xf] }
0x1dc8   :  { %4268 = vmatprep.subr.bf16.mxu0 %v6231_v24  ;;  %v4036_v22 = vrot.slane %v5216_v16, %v6960_v9  ;;  %v4044_v24 = vrot.slane %v5216_v16, %v6963_v10  ;;  %v4040_v26 = vrot.slane %v5216_v16, %v6954_v7 }
0x1dcb   :  { %4269 = vmatpush1.bf16.msra.mxu0 %v6229_v28  ;;  %v4048_v28 = vrot.slane %v5216_v16, %v1940_v50 }
0x1dcc   :  { %4270 = vmatprep.subr.bf16.mxu0 %v6237_v33 }
0x1dcf   :  { %4271 = vmatpush1.bf16.msra.mxu0 %v6235_v38 }
0x1dd0   :  { %5559 = vmatprep.subr.bf16.mxu0 %v6239_v52 }
0x1e83   :  { %v3945_v21 = vpop.f32.mrb[72].mxu0 }
0x1e84   :  { %v3946_v8 = vadd.f32 %v5203_v48, %v3945_v21  ;;  %v5869_v36 = vpop.f32.mrb[73].mxu0 }
0x1e85   :  { %v3948_v11 = vpop.f32.mrb[74].mxu0  ;;  %v5215_v36 = vld [vmem:[%s7634_s13 + $0x1] ss:$0 sm:$0xff] }
0x1e86   :  { %v3949_v44 = vadd.f32 %v5203_v48, %v3948_v11  ;;  %v5870_v46 = vpop.f32.mrb[75].mxu0  ;;  %v3952_v49 = vadd.f32 %v3946_v8, %v7288_v51 }
0x1e88   :  { %3958 = vadd.xlane.f32.xlu0 %v3952_v49  ;;  %v3953_v54 = vadd.f32 %v3949_v44, %v7290_v53 }
0x1e8a   :  { %3960 = vadd.xlane.f32.xlu1 %v3953_v54 }
0x1f15   :  { %v3959_v51 = vpop.xlane.xlu0 %3958 }
0x1f16   :  { %v3962_v1 = vmul.f32 0.0078125, %v3959_v51  ;;  %v6247_v51 = vld [vmem:[#allocation9 + $0x1d0] sm:$0xff]  }
0x1f17   :  { %v3961_v53 = vpop.xlane.xlu1 %3960 }
0x1f18   :  { %v7501_v14 = vsub.f32 %v3952_v49, %v3962_v1  ;;  %v3963_v57 = vmul.f32 0.0078125, %v3961_v53  ;;  %v6248_v1 = vld [vmem:[#allocation9 + $0x110] sm:$0xff]  }
0x1f19   :  { %v6249_v53 = vld [vmem:[#allocation9 + $0x190] sm:$0xff]  }
0x1f1a   :  { %v7503_v13 = vsub.f32 %v3953_v54, %v3963_v57  ;;  %v3966_v23 = vmul.f32 %v7501_v14, %v7501_v14  ;;  %v6238_v54 = vld [vmem:[#allocation9 + $0x140] sm:$0xff]   ;;  %v6251_v57 = vld [vmem:[#allocation9 + $0x1d8] sm:$0xff]  }
0x1f1b   :  { %5537 = vmatprep.subr.bf16.mxu1 %v6238_v54 }
0x1f1c   :  { %3968 = vadd.xlane.f32.xlu0 %v3966_v23  ;;  %v3967_v27 = vmul.f32 %v7503_v13, %v7503_v13  ;;  %v6253_v23 = vld [vmem:[#allocation9 + $0x198] sm:$0xff]  }
0x1f20   :  { %3970 = vadd.xlane.f32.xlu0 %v3967_v27  ;;  %v6254_v27 = vld [vmem:[#allocation9 + $0x160] sm:$0xff]  }
0x1fa9   :  { %v3969_v39 = vpop.xlane.xlu0 %3968 }
0x1faa   :  { %v3972_v40 = vmul.f32 0.0078125, %v3969_v39 }
0x1fac   :  { %v3974_v41 = vadd.f32 1e-12, %v3972_v40 }
0x1fad   :  { %v3971_v58 = vpop.xlane.xlu0 %3970 }
0x1fae   :  { %6378 = vrsqrt.f32 %v3974_v41  ;;  %v3973_v59 = vmul.f32 0.0078125, %v3971_v58 }
0x1fb0   :  { %v3975_v62 = vadd.f32 1e-12, %v3973_v59 }
0x1fb2   :  { %6380 = vrsqrt.f32 %v3975_v62 }
0x1fb8   :  { %v6379_v63 = vpop.eup %6378 }
0x1fb9   :  { %v3978_v43 = vmul.f32 %v6379_v63, %v7501_v14  ;;  %v6250_v14 = vld [vmem:[#allocation9 + $0x158] sm:$0xff]  }
0x1fbb   :  { %v3986_v8 = vmul.f32 %v5214_v5, %v3978_v43 }
0x1fbc   :  { %v6381_v48 = vpop.eup %6380 }
0x1fbd   :  { %v3979_v21 = vmul.f32 %v6381_v48, %v7503_v13  ;;  %v7517_v44 = vadd.f32 %v5215_v36, %v3986_v8  ;;  %v6252_v13 = vld [vmem:[#allocation9 + $0x118] sm:$0xff]  }
0x1fbf   :  { %v3987_v11 = vmul.f32 %v5214_v5, %v3979_v21 }
0x1fc1   :  { %v7519_v46 = vadd.f32 %v5215_v36, %v3987_v11 }
0x1fc3   :  { %v3996_v49 = vpack.c.bf16 %v7519_v46, %v7517_v44 }
0x1fc5   :  { %4246 = vmatmul.mubr.bf16.vlgmr.msra.gmra.mrb[100].mxu1 %v3996_v49  ;;  %4289 = vmatmul.mubr.bf16.vlgmr.msra.gmra.mrb[76].mxu0 %v3996_v49 }
0x1fc6   :  { %5538 = vmatpush3.bf16.msra.mxu1 %v6240_v55  ;;  %5560 = vmatpush3.bf16.msra.mxu0 %v6241_v56 }
0x1fc7   :  { %5539 = vmatprep.subr.bf16.mxu1 %v6242_v0  ;;  %5561 = vmatprep.subr.bf16.mxu0 %v6243_v60 }
0x1fca   :  { %5540 = vmatpush3.bf16.msra.mxu1 %v6244_v61  ;;  %5562 = vmatpush3.bf16.msra.mxu0 %v6245_v30 }
0x1fcb   :  { %5541 = vmatprep.subr.bf16.mxu1 %v6246_v45  ;;  %5563 = vmatprep.subr.bf16.mxu0 %v6247_v51 }
0x1fce   :  { %5542 = vmatpush3.bf16.msra.mxu1 %v6248_v1  ;;  %5564 = vmatpush3.bf16.msra.mxu0 %v6249_v53 }
0x1fcf   :  { %5543 = vmatprep.subr.bf16.mxu1 %v6250_v14  ;;  %5565 = vmatprep.subr.bf16.mxu0 %v6251_v57 }
0x1fd2   :  { %5544 = vmatpush3.bf16.msra.mxu1 %v6252_v13  ;;  %5566 = vmatpush3.bf16.msra.mxu0 %v6253_v23 }
0x1fd3   :  { %5545 = vmatprep.subr.bf16.mxu1 %v6254_v27  ;;  %5567 = vmatprep.subr.bf16.mxu0 %v6255_v37 }
0x1fd6   :  { %5546 = vmatpush3.bf16.msra.mxu1 %v6256_v12  ;;  %5568 = vmatpush3.bf16.msra.mxu0 %v6257_v2 }
0x1fd7   :  { %5547 = vmatprep.subr.bf16.mxu1 %v6258_v4  ;;  %5569 = vmatprep.subr.bf16.mxu0 %v6259_v19 }
0x1fda   :  { %5548 = vmatpush3.bf16.msra.mxu1 %v6260_v25  ;;  %5570 = vmatpush3.bf16.msra.mxu0 %v6261_v31 }
0x1fdb   :  { %5549 = vmatprep.subr.bf16.mxu1 %v6262_v47  ;;  %5571 = vmatprep.subr.bf16.mxu0 %v6263_v29 }
0x1fde   :  { %5550 = vmatpush3.bf16.msra.mxu1 %v6264_v35  ;;  %5572 = vmatpush3.bf16.msra.mxu0 %v6265_v42 }
0x1fdf   :  { %5551 = vmatprep.subr.bf16.mxu1 %v6266_v3  ;;  %5573 = vmatprep.subr.bf16.mxu0 %v6267_v15 }
0x1fe2   :  { %5552 = vmatpush3.bf16.msra.mxu1 %v6268_v17  ;;  %5574 = vmatpush3.bf16.msra.mxu0 %v6269_v18 }
0x1fe3   :  { %5871 = vmatprep.subr.bf16.mxu1 %v6631_v20  ;;  %5891 = vmatprep.subr.bf16.mxu0 %v6631_v20 }
0x2098   :  { %v4247_v32 = vpop.f32.mrb[100].mxu1  ;;  %v4290_v33 = vpop.f32.mrb[76].mxu0 }
0x2099   :  { %v7533_v34 = vadd.f32 %v4247_v32, %v4036_v22  ;;  %v7535_v38 = vadd.f32 %v4290_v33, %v4044_v24  ;;  %v4249_v39 = vpop.f32.mrb[101].mxu1  ;;  %v4292_v40 = vpop.f32.mrb[77].mxu0 }
0x209a   :  { %v7537_v41 = vadd.f32 %v4249_v39, %v4040_v26  ;;  %v7539_v58 = vadd.f32 %v4292_v40, %v4048_v28  ;;  %v4251_v9 = vpop.f32.mrb[102].mxu1  ;;  %v4294_v59 = vpop.f32.mrb[78].mxu0 }
0x209b   :  { %v4299_v7 = vmul.f32 %v7533_v34, %v7533_v34  ;;  %v4301_v6 = vmul.f32 %v7535_v38, %v7535_v38  ;;  %v7545_v10 = vadd.f32 %v4251_v9, %v4036_v22  ;;  %v7547_v50 = vadd.f32 %v4294_v59, %v4044_v24  ;;  %v4253_v62 = vpop.f32.mrb[103].mxu1  ;;  %v4296_v63 = vpop.f32.mrb[79].mxu0 }
0x209c   :  { %v4300_v43 = vmul.f32 %v7537_v41, %v7537_v41  ;;  %v4302_v5 = vmul.f32 %v7539_v58, %v7539_v58  ;;  %v7553_v48 = vadd.f32 %v4253_v62, %v4040_v26  ;;  %v7555_v21 = vadd.f32 %v4296_v63, %v4048_v28 }
0x209d   :  { %v4307_v8 = vmul.f32 %v4299_v7, %v7533_v34  ;;  %v4309_v36 = vmul.f32 %v4301_v6, %v7535_v38  ;;  %v4303_v11 = vmul.f32 %v7545_v10, %v7545_v10  ;;  %v4305_v49 = vmul.f32 %v7547_v50, %v7547_v50 }
0x209e   :  { %v4308_v54 = vmul.f32 %v4300_v43, %v7537_v41  ;;  %v4310_v52 = vmul.f32 %v4302_v5, %v7539_v58  ;;  %v4304_v55 = vmul.f32 %v7553_v48, %v7553_v48  ;;  %v4306_v56 = vmul.f32 %v7555_v21, %v7555_v21 }
0x209f   :  { %v4315_v0 = vmul.f32 0.044715, %v4307_v8  ;;  %v4317_v60 = vmul.f32 0.044715, %v4309_v36  ;;  %v4311_v61 = vmul.f32 %v4303_v11, %v7545_v10  ;;  %v4313_v30 = vmul.f32 %v4305_v49, %v7547_v50 }
0x20a0   :  { %v4316_v45 = vmul.f32 0.044715, %v4308_v54  ;;  %v4318_v51 = vmul.f32 0.044715, %v4310_v52  ;;  %v4312_v1 = vmul.f32 %v4304_v55, %v7553_v48  ;;  %v4314_v53 = vmul.f32 %v4306_v56, %v7555_v21 }
0x20a1   :  { %v4323_v14 = vadd.f32 %v4315_v0, %v7533_v34  ;;  %v4325_v57 = vadd.f32 %v4317_v60, %v7535_v38  ;;  %v4319_v13 = vmul.f32 0.044715, %v4311_v61  ;;  %v4321_v23 = vmul.f32 0.044715, %v4313_v30 }
0x20a2   :  { %v4324_v27 = vadd.f32 %v4316_v45, %v7537_v41  ;;  %v4326_v37 = vadd.f32 %v4318_v51, %v7539_v58  ;;  %v4320_v12 = vmul.f32 0.044715, %v4312_v1  ;;  %v4322_v2 = vmul.f32 0.044715, %v4314_v53 }
0x20a3   :  { %v4331_v4 = vmul.f32 0.7978846, %v4323_v14  ;;  %v4333_v19 = vmul.f32 0.7978846, %v4325_v57  ;;  %v4327_v25 = vadd.f32 %v4319_v13, %v7545_v10  ;;  %v4329_v31 = vadd.f32 %v4321_v23, %v7547_v50 }
0x20a4   :  { %v4332_v47 = vmul.f32 0.7978846, %v4324_v27  ;;  %v4334_v29 = vmul.f32 0.7978846, %v4326_v37  ;;  %v4328_v35 = vadd.f32 %v4320_v12, %v7553_v48  ;;  %v4330_v42 = vadd.f32 %v4322_v2, %v7555_v21 }
0x20a5   :  { %6382 = vtanh.f32 %v4331_v4  ;;  %v4335_v3 = vmul.f32 0.7978846, %v4327_v25  ;;  %v4337_v15 = vmul.f32 0.7978846, %v4329_v31 }
0x20a6   :  { %6384 = vtanh.f32 %v4333_v19  ;;  %v4336_v17 = vmul.f32 0.7978846, %v4328_v35  ;;  %v4338_v18 = vmul.f32 0.7978846, %v4330_v42 }
0x20a7   :  { %6386 = vtanh.f32 %v4332_v47 }
0x20a8   :  { %6388 = vtanh.f32 %v4334_v29 }
0x20a9   :  { %6390 = vtanh.f32 %v4335_v3 }
0x20aa   :  { %6392 = vtanh.f32 %v4337_v15 }
0x20ab   :  { %6394 = vtanh.f32 %v4336_v17 }
0x20ac   :  { %6396 = vtanh.f32 %v4338_v18 }
0x20af   :  { %v6383_v16 = vpop.eup %6382 }
0x20b0   :  { %v6385_v22 = vpop.eup %6384  ;;  %v4347_v24 = vadd.f32 1.0, %v6383_v16 }
0x20b1   :  { %v6387_v26 = vpop.eup %6386  ;;  %v4349_v28 = vadd.f32 1.0, %v6385_v22 }
0x20b2   :  { %v6389_v32 = vpop.eup %6388  ;;  %v4348_v33 = vadd.f32 1.0, %v6387_v26  ;;  %v4355_v59 = vmul.f32 0.5, %v4347_v24  ;;  %v6270_v24 = vld [vmem:[#allocation10] sm:$0xff]   ;;  %v6271_v26 = vld [vmem:[#allocation10 + $0x8] sm:$0xff]  }
0x20b3   :  { %v6391_v39 = vpop.eup %6390  ;;  %v4350_v40 = vadd.f32 1.0, %v6389_v32  ;;  %v4357_v62 = vmul.f32 0.5, %v4349_v28  ;;  %v6274_v28 = vld [vmem:[#allocation10 + $0x20] sm:$0xff]   ;;  %v6275_v32 = vld [vmem:[#allocation10 + $0x28] sm:$0xff]  }
0x20b4   :  { %v6393_v9 = vpop.eup %6392  ;;  %v4351_v7 = vadd.f32 1.0, %v6391_v39  ;;  %v4356_v36 = vmul.f32 0.5, %v4348_v33  ;;  %v4363_v52 = vmul.f32 %v4355_v59, %v7533_v34  ;;  %v6276_v33 = vld [vmem:[#allocation10 + $0x30] sm:$0xff]   ;;  %v6277_v39 = vld [vmem:[#allocation10 + $0x38] sm:$0xff]  }
0x20b5   :  { %v6395_v6 = vpop.eup %6394  ;;  %v4353_v63 = vadd.f32 1.0, %v6393_v9  ;;  %v4358_v54 = vmul.f32 0.5, %v4350_v40  ;;  %v4365_v0 = vmul.f32 %v4357_v62, %v7535_v38  ;;  %v6278_v40 = vld [vmem:[#allocation13] sm:$0xff]   ;;  %v6279_v9 = vld [vmem:[#allocation13 + $0x8] sm:$0xff]   ;;  %v6280_v59 = vld [vmem:[#allocation13 + $0x10] sm:$0xff]  }
0x20b6   :  { %v6397_v43 = vpop.eup %6396  ;;  %v4359_v5 = vmul.f32 0.5, %v4351_v7  ;;  %v4352_v8 = vadd.f32 1.0, %v6395_v6  ;;  %v4364_v30 = vmul.f32 %v4356_v36, %v7537_v41  ;;  %v6281_v7 = vld [vmem:[#allocation13 + $0x18] sm:$0xff]  }
0x20b7   :  { %v4361_v11 = vmul.f32 0.5, %v4353_v63  ;;  %v4354_v49 = vadd.f32 1.0, %v6397_v43  ;;  %v4366_v1 = vmul.f32 %v4358_v54, %v7539_v58  ;;  %v5250_v58 = vld [vmem:[%s7638_s17 + $0x1] ss:$0 sm:$0xff] }
0x20b8   :  { %v4367_v55 = vmul.f32 %v4359_v5, %v7545_v10  ;;  %v4360_v56 = vmul.f32 0.5, %v4352_v8 }
0x20b9   :  { %v4369_v60 = vmul.f32 %v4361_v11, %v7547_v50  ;;  %v4362_v61 = vmul.f32 0.5, %v4354_v49  ;;  %v5285_v11 = vld [vmem:[%s7639_s18 + $0x1] ss:$0 sm:$0xff] }
0x20ba   :  { %v4368_v45 = vmul.f32 %v4360_v56, %v7553_v48  ;;  %v4371_v51 = vpack.c.bf16 %v4367_v55, %v4363_v52  ;;  %v5286_v52 = vld [vmem:[%s7640_s19 + $0x1] ss:$0 sm:$0xff] }
0x20bb   :  { %v4370_v53 = vmul.f32 %v4362_v61, %v7555_v21  ;;  %v4373_v14 = vpack.c.bf16 %v4369_v60, %v4365_v0 }
0x20bc   :  { %v4372_v57 = vpack.c.bf16 %v4368_v45, %v4364_v30 }
0x20bd   :  { %v4374_v34 = vpack.c.bf16 %v4370_v53, %v4366_v1 }
0x20be   :  { %4672 = vmatprep.mubr.bf16.mxu1 %v4372_v57 }
0x20bf   :  { %4713 = vmatprep.mubr.bf16.mxu0 %v4374_v34  ;;  %4673 = vmatmul.mubr.bf16.vlgmr.msra.gmra.mrb[104].mxu1 %v4371_v51  ;;  %v6282_v34 = vld [vmem:[#allocation13 + $0x20] sm:$0xff]  }
0x20c0   :  { %4714 = vmatmul.mubr.bf16.vlgmr.msra.gmra.mrb[80].mxu0 %v4373_v14  ;;  %5887 = vmatprep.mubr.msk.bf16.mxu1 %vm6632_vm8, %v6631_v20 }
0x20c1   :  { %5907 = vmatprep.mubr.msk.bf16.mxu0 %vm6632_vm8, %v6631_v20  ;;  %5872 = vmatpush3.bf16.msra.mxu1 %v6270_v24 }
0x20c2   :  { %5873 = vmatprep.subr.bf16.mxu1 %v6631_v20  ;;  %5892 = vmatpush3.bf16.msra.mxu0 %v6278_v40 }
0x20c3   :  { %5893 = vmatprep.subr.bf16.mxu0 %v6631_v20 }
0x20c5   :  { %5874 = vmatpush3.bf16.msra.mxu1 %v6271_v26 }
0x20c6   :  { %5875 = vmatprep.subr.bf16.mxu1 %v6631_v20  ;;  %5894 = vmatpush3.bf16.msra.mxu0 %v6279_v9 }
0x20c7   :  { %5895 = vmatprep.subr.bf16.mxu0 %v6631_v20 }
0x20ca   :  { %5896 = vmatpush3.bf16.msra.mxu0 %v6280_v59 }
0x20cb   :  { %5897 = vmatprep.subr.bf16.mxu0 %v6631_v20 }
0x20ce   :  { %5898 = vmatpush3.bf16.msra.mxu0 %v6281_v7 }
0x20cf   :  { %5899 = vmatprep.subr.bf16.mxu0 %v6631_v20 }
0x20d2   :  { %5900 = vmatpush3.bf16.msra.mxu0 %v6282_v34 }
0x20d3   :  { %5901 = vmatprep.subr.bf16.mxu0 %v6631_v20 }
0x2192   :  { %v5553_v38 = vpop.f32.mrb[104].mxu1 }
0x2193   :  { %v5575_v41 = vpop.f32.mrb[80].mxu0  ;;  %v5554_v10 = vpop.f32.mrb[105].mxu1 }
0x2194   :  { %v5555_v50 = vadd.f32 %v5554_v10, %v5553_v38  ;;  %v5576_v48 = vpop.f32.mrb[81].mxu0  ;;  %v5556_v21 = vpop.f32.mrb[106].mxu1  ;;  %v6283_v38 = vld [vmem:[#allocation13 + $0x28] sm:$0xff]   ;;  %v5287_v10 = vld [vmem:[#allocation12] ss:$0 sm:$0xff] }
0x2195   :  { %v5577_v13 = vadd.f32 %v5576_v48, %v5575_v41  ;;  %v5578_v23 = vpop.f32.mrb[82].mxu0  ;;  %v5557_v27 = vpop.f32.mrb[107].mxu1  ;;  %5902 = vmatpush3.bf16.msra.mxu0 %v6283_v38  ;;  %v6284_v41 = vld [vmem:[#allocation13 + $0x30] sm:$0xff]  }
0x2196   :  { %v4675_v37 = vadd.f32 %v5555_v50, %v5250_v58  ;;  %v5558_v12 = vadd.f32 %v5557_v27, %v5556_v21  ;;  %v5579_v2 = vpop.f32.mrb[83].mxu0  ;;  %5903 = vmatprep.subr.bf16.mxu0 %v6631_v20 }
0x2197   :  { %v5580_v4 = vadd.f32 %v5579_v2, %v5578_v23 }
0x2198   :  { %v4716_v19 = vadd.f32 %v5577_v13, %v4675_v37  ;;  %v4678_v25 = vadd.f32 %v5558_v12, %v5250_v58  ;;  %v6285_v58 = vld [vmem:[#allocation13 + $0x38] sm:$0xff]   ;;  %v5296_v12 = vld [vmem:[#allocation15] ss:$0 sm:$0xff] }
0x2199   :  { %5904 = vmatpush3.bf16.msra.mxu0 %v6284_v41 }
0x219a   :  { %v4719_v31 = vadd.f32 %v5580_v4, %v4678_v25  ;;  %v4722_v47 = vadd.f32 %v4716_v19, %v7517_v44  ;;  %v6272_v44 = vld [vmem:[#allocation10 + $0x10] sm:$0xff]   ;;  %5905 = vmatprep.subr.bf16.mxu0 %v6631_v20 }
0x219b   :  { %5876 = vmatpush3.bf16.msra.mxu1 %v6272_v44 }
0x219c   :  { %4728 = vadd.xlane.f32.xlu0 %v4722_v47  ;;  %v4723_v29 = vadd.f32 %v4719_v31, %v7519_v46  ;;  %5877 = vmatprep.subr.bf16.mxu1 %v6631_v20  ;;  %v6273_v46 = vld [vmem:[#allocation10 + $0x18] sm:$0xff]  }
0x219d   :  { %5906 = vmatpush3.bf16.msra.mxu0 %v6285_v58 }
0x219e   :  { %4730 = vadd.xlane.f32.xlu1 %v4723_v29 }
0x219f   :  { %5878 = vmatpush3.bf16.msra.mxu1 %v6273_v46 }
0x21a0   :  { %5879 = vmatprep.subr.bf16.mxu1 %v6631_v20 }
0x21a3   :  { %5880 = vmatpush3.bf16.msra.mxu1 %v6274_v28 }
0x21a4   :  { %5881 = vmatprep.subr.bf16.mxu1 %v6631_v20 }
0x21a7   :  { %5882 = vmatpush3.bf16.msra.mxu1 %v6275_v32 }
0x21a8   :  { %5883 = vmatprep.subr.bf16.mxu1 %v6631_v20 }
0x21ab   :  { %5884 = vmatpush3.bf16.msra.mxu1 %v6276_v33 }
0x21ac   :  { %5885 = vmatprep.subr.bf16.mxu1 %v6631_v20 }
0x21af   :  { %5886 = vmatpush3.bf16.msra.mxu1 %v6277_v39 }
0x2229   :  { %v4729_v35 = vpop.xlane.xlu0 %4728 }
0x222a   :  { %v4732_v42 = vmul.f32 0.0078125, %v4729_v35 }
0x222b   :  { %v4731_v3 = vpop.xlane.xlu1 %4730 }
0x222c   :  { %v4734_v15 = vsub.f32 %v4722_v47, %v4732_v42  ;;  %v4733_v17 = vmul.f32 0.0078125, %v4731_v3 }
0x222e   :  { %v4735_v18 = vsub.f32 %v4723_v29, %v4733_v17  ;;  %v4736_v16 = vmul.f32 %v4734_v15, %v4734_v15 }
0x2230   :  { %4738 = vadd.xlane.f32.xlu0 %v4736_v16  ;;  %v4737_v22 = vmul.f32 %v4735_v18, %v4735_v18 }
0x2232   :  { %4740 = vadd.xlane.f32.xlu1 %v4737_v22 }
0x22bd   :  { %v4739_v6 = vpop.xlane.xlu0 %4738 }
0x22be   :  { %v4742_v62 = vmul.f32 0.0078125, %v4739_v6 }
0x22bf   :  { %v4741_v63 = vpop.xlane.xlu1 %4740 }
0x22c0   :  { %v4744_v43 = vadd.f32 1e-12, %v4742_v62  ;;  %v4743_v5 = vmul.f32 0.0078125, %v4741_v63 }
0x22c2   :  { %6398 = vrsqrt.f32 %v4744_v43  ;;  %v4745_v8 = vadd.f32 1e-12, %v4743_v5 }
0x22c4   :  { %6400 = vrsqrt.f32 %v4745_v8 }
0x22cc   :  { %v6399_v36 = vpop.eup %6398 }
0x22cd   :  { %v4748_v49 = vmul.f32 %v6399_v36, %v4734_v15 }
0x22ce   :  { %v6401_v54 = vpop.eup %6400 }
0x22cf   :  { %v4756_v55 = vmul.f32 %v5285_v11, %v4748_v49  ;;  %v4749_v56 = vmul.f32 %v6401_v54, %v4735_v18 }
0x22d1   :  { %v4757_v0 = vmul.f32 %v5285_v11, %v4749_v56  ;;  %v4764_v60 = vadd.f32 %v5286_v52, %v4756_v55 }
0x22d3   :  { %v4765_v61 = vadd.f32 %v5286_v52, %v4757_v0  ;;  %v4766_v30 = vpack.c.bf16 %v4764_v60, %v4764_v60 }
0x22d5   :  { %v4767_v45 = vpack.c.bf16 %v4765_v61, %v4765_v61  ;;  %v4793_v1 = vunpack.c.l.b16 %v4766_v30 }
0x22d7   :  { %v4794_v51 = vunpack.c.l.b16 %v4767_v45 }
0x22d9   :  { %v4795_v53 = vrot.slane %v4794_v51, 7 }
0x22db   :  { %v4797_v14 = vsel %vm4796_vm14, %v4795_v53, %v4793_v1 }
0x22dc   :  { %v4798_v57 = vpack.c.b16 %v4797_v14, %v4797_v14 }
0x22de   :  { %5888 = vmatmul.mubr.bf16.vlgmr.msra.gmra.mrb[108].mxu1 %v4798_v57 }
0x23b1   :  { %v4882_v50 = vpop.f32.mrb[108].mxu1 }
0x23b2   :  { %v4883_v48 = vadd.f32 %v5287_v10, %v4882_v50  ;;  %v5889_v21 = vpop.f32.mrb[109].mxu1 }
0x23b3   :  { %v4885_v13 = vpop.f32.mrb[110].mxu1 }
0x23b4   :  { %6402 = vtanh.f32 %v4883_v48  ;;  %v5890_v23 = vpop.f32.mrb[111].mxu1 }
0x23be   :  { %v6403_v27 = vpop.eup %6402 }
0x23bf   :  { %v4889_v37 = vpack.c.bf16 %v6403_v27, %v6403_v27 }
0x23c1   :  { %5908 = vmatmul.mubr.bf16.vlgmr.msra.gmra.mrb[84].mxu0 %v4889_v37 }
0x2494   :  { %v4995_v2 = vpop.f32.mrb[84].mxu0 }
0x2495   :  { %v4996_v4 = vadd.f32 %v5296_v12, %v4995_v2  ;;  %v5909_v19 = vpop.f32.mrb[85].mxu0 }
0x2496   :  { %v4998_v25 = vpop.f32.mrb[86].mxu0 }
0x2497   :  { %5001 = vst [vmem:[%s7671_s8] sm:$0x3] %v4996_v4  ;;  %v5910_v20 = vpop.f32.mrb[87].mxu0 }
0x2498   :  { %5006 = vsyncpa [#allocation3], 1 }
0x2499   :  { %5007 = vsyncpa [#allocation5], 1 }
0x249a   :  { %5008 = vsyncpa [#allocation8], 1 }
0x249b   :  { %5009 = vsyncpa [#allocation11], 1 }
0x249c   :  { %5010 = vsyncpa [#allocation14], 1 }

</bundles_post_ra>
